<compile_context>
chip_gen: v7x
topology: tpu7x:2x2x1
jax: 0.10.0
libtpu: 0.0.40
codegen_flags: <defaults>
</compile_context>

<pallas_src>
import functools

import jax
import jax.numpy as jnp
from jax.experimental import pallas as pl
from jax.experimental.pallas import tpu as pltpu


# ---------------------------------------------------------------------------
# Kernel: TS LSTM steps (unrolled) + one batched Linear+softmax per grid iter.
# ---------------------------------------------------------------------------
def _attn_decoder_kernel(x_ref, h0_ref, c0_ref,
                         wx_ref, wh_ref, b_ref, wout_ref, bout_ref,
                         probs_ref, h_out_ref, c_out_ref,
                         h_scr, c_scr, hblk_scr,
                         *, block_steps, total_steps):
    B, H = h0_ref.shape
    t_blk = pl.program_id(0)
    needs_mask = (total_steps % block_steps) != 0   # static Python bool

    # h/c carried on-chip across grid iterations in VMEM scratch.
    @pl.when(t_blk == 0)
    def _():
        h_scr[...] = h0_ref[...]
        c_scr[...] = c0_ref[...]

    # Resident weights (constant block index -> DMA'd once, live in VMEM).
    wx = wx_ref[...]          # (6H, 4H) bf16, gate columns [i | f | o | g]
    wh = wh_ref[...]          # (H, 4H)  bf16
    b = b_ref[...]            # (1, 4H)  f32   (b_ih + b_hh, reordered)

    h = h_scr[...]            # (B, H) f32
    c = c_scr[...]            # (B, H) f32

    # Statically unrolled loop over the TS steps of this block.
    for s in range(block_steps):
        x = x_ref[s]          # (B, 6H) bf16 (pre-cast in the wrapper)
        gates = (jnp.dot(x, wx, preferred_element_type=jnp.float32)
                 + jnp.dot(h.astype(jnp.bfloat16), wh,
                           preferred_element_type=jnp.float32)
                 + b)                                   # (B, 4H) f32
        # Reordered gates: one sigmoid over [i|f|o], one tanh over g.
        act = jax.nn.sigmoid(gates[:, :3 * H])
        g_g = jnp.tanh(gates[:, 3 * H:])
        i_g = act[:, :H]
        f_g = act[:, H:2 * H]
        o_g = act[:, 2 * H:]
        c1 = f_g * c + i_g * g_g
        h1 = o_g * jnp.tanh(c1)
        if needs_mask:
            # Freeze the state on padded (past-the-end) steps.
            valid = (t_blk * block_steps + s) < total_steps
            h1 = jnp.where(valid, h1, h)
            c1 = jnp.where(valid, c1, c)
        h, c = h1, c1
        # Stage this step's hidden state for the batched projection below.
        hblk_scr[s * B:(s + 1) * B, :] = h1

    h_scr[...] = h
    c_scr[...] = c

    # Batched projection + softmax over all TS steps -> one dense store.
    # Padded bias lanes are -1e30, so the softmax over the pad is exactly 0.
    logits = (jnp.dot(hblk_scr[...].astype(jnp.bfloat16), wout_ref[...],
                      preferred_element_type=jnp.float32)
              + bout_ref[...])                          # (TS*B, O_pad) f32
    m = jnp.max(logits, axis=-1, keepdims=True)
    e = jnp.exp(logits - m)
    probs = e / jnp.sum(e, axis=-1, keepdims=True)      # exact normalization
    probs_ref[...] = probs.astype(probs_ref.dtype)

    # Single end-of-decode HBM writeback of the final hidden state.
    @pl.when(t_blk == pl.num_programs(0) - 1)
    def _():
        h_out_ref[...] = h
        c_out_ref[...] = c


# ---------------------------------------------------------------------------
# One-time parameter preparation (hoisted out of the per-call path).
# ---------------------------------------------------------------------------
def prepare_params(params):
    H = params["w_hh"].shape[1]
    O = params["w_out"].shape[0]
    O_pad = ((O + 127) // 128) * 128

    def reorder(m):
        # PyTorch LSTM gate order [i | f | g | o] -> [i | f | o | g] so the
        # kernel can apply one sigmoid over the first 3H columns.
        return jnp.concatenate(
            [m[..., :2 * H], m[..., 3 * H:], m[..., 2 * H:3 * H]], axis=-1)

    w_x = reorder(params["w_ih"].T).astype(jnp.bfloat16)         # (6H, 4H)
    w_h = reorder(params["w_hh"].T).astype(jnp.bfloat16)         # (H, 4H)
    b_gates = reorder(
        (params["b_ih"] + params["b_hh"]).reshape(1, 4 * H)).astype(jnp.float32)
    # Output projection padded to a full 128-lane block (lane-dense stores);
    # padded bias lanes = -1e30 so their softmax contribution is exactly 0.
    w_out = jnp.zeros((H, O_pad), jnp.bfloat16).at[:, :O].set(
        params["w_out"].T.astype(jnp.bfloat16))
    b_out = jnp.full((1, O_pad), -1e30, jnp.float32).at[0, :O].set(
        params["b_out"].astype(jnp.float32))

    return {"w_x": w_x, "w_h": w_h, "b_gates": b_gates,
            "w_out": w_out, "b_out": b_out,
            "hidden_size": H, "output_size": O, "padded_output_size": O_pad}


# ---------------------------------------------------------------------------
# Multi-step decode: one pallas_call, TS steps per grid iteration.
# ---------------------------------------------------------------------------
def attn_decoder_decode(encoder_outputs_seq, hidden, prep, block_steps=16):
    """encoder_outputs_seq: (T, B, 6H) f32; hidden=(h0,c0) each (1,B,H) f32.
    Step t uses encoder_outputs_seq[t] and the state produced by step t-1.
    Returns (probs (T,B,O), (h_T, c_T) each (1,B,H))."""
    h0, c0 = hidden
    T, B, in_dim = encoder_outputs_seq.shape
    H = prep["hidden_size"]
    O = prep["output_size"]
    O_pad = prep["padded_output_size"]
    assert in_dim == 6 * H

    # Steps per grid iteration: amortizes per-step pipeline overhead; keep the
    # probs slab sublane-dense ((TS*B) % 8 == 0) unless one block covers T.
    TS = max(1, min(block_steps, T))
    while TS < T and (TS * B) % 8 != 0:
        TS += 1
    if TS >= T:
        TS = T
    n_blocks = -(-T // TS)
    T_pad = n_blocks * TS

    # Stream x as bf16 (halves the only per-step DMA); pad T to a multiple of
    # TS (padded steps are masked inside the kernel).
    x = encoder_outputs_seq.astype(jnp.bfloat16)
    if T_pad != T:
        x = jnp.pad(x, ((0, T_pad - T), (0, 0), (0, 0)))

    h0_2d = h0.reshape(B, H).astype(jnp.float32)
    c0_2d = c0.reshape(B, H).astype(jnp.float32)

    kernel = functools.partial(_attn_decoder_kernel,
                               block_steps=TS, total_steps=T)

    # NOTE: for very large H on v7x (64 MiB VMEM) add pipeline_mode=
    # pl.Buffered(1) on the constant-index weight specs; and for large B on
    # v7x, add a leading "parallel" grid axis splitting the batch across the
    # two TensorCores.  Both are no-ops at these shapes.
    grid_spec = pltpu.PrefetchScalarGridSpec(
        num_scalar_prefetch=0,
        grid=(n_blocks,),
        in_specs=[
            # x: one block of TS steps streamed per grid iteration.
            pl.BlockSpec((TS, B, 6 * H), lambda t: (t, 0, 0)),
            # Initial state + all weights: constant block index -> DMA'd once,
            # resident in VMEM for the whole decode.
            pl.BlockSpec((B, H), lambda t: (0, 0)),
            pl.BlockSpec((B, H), lambda t: (0, 0)),
            pl.BlockSpec((6 * H, 4 * H), lambda t: (0, 0)),   # W_ih^T [i|f|o|g]
            pl.BlockSpec((H, 4 * H), lambda t: (0, 0)),       # W_hh^T [i|f|o|g]
            pl.BlockSpec((1, 4 * H), lambda t: (0, 0)),       # b_ih + b_hh
            pl.BlockSpec((H, O_pad), lambda t: (0, 0)),       # W_out^T (padded)
            pl.BlockSpec((1, O_pad), lambda t: (0, 0)),       # b_out (padded)
        ],
        out_specs=(
            # Flat (T_pad*B, O_pad) probs: dense (TS*B, 128) slab per grid step.
            pl.BlockSpec((TS * B, O_pad), lambda t: (t, 0)),
            # Final h/c, written once on the last grid iteration.
            pl.BlockSpec((B, H), lambda t: (0, 0)),
            pl.BlockSpec((B, H), lambda t: (0, 0)),
        ),
        scratch_shapes=[
            pltpu.VMEM((B, H), jnp.float32),          # h carry
            pltpu.VMEM((B, H), jnp.float32),          # c carry
            pltpu.VMEM((TS * B, H), jnp.float32),     # staged h's of this block
        ],
    )

    probs_flat, h_t, c_t = pl.pallas_call(
        kernel,
        out_shape=(
            jax.ShapeDtypeStruct((T_pad * B, O_pad), jnp.float32),
            jax.ShapeDtypeStruct((B, H), jnp.float32),
            jax.ShapeDtypeStruct((B, H), jnp.float32),
        ),
        grid_spec=grid_spec,
        compiler_params=pltpu.CompilerParams(
            dimension_semantics=("arbitrary",),       # serial recurrence over T
            vmem_limit_bytes=64 * 1024 * 1024,
        ),
    )(x, h0_2d, c0_2d,
      prep["w_x"], prep["w_h"], prep["b_gates"], prep["w_out"], prep["b_out"])

    probs = probs_flat.reshape(T_pad, B, O_pad)[:T, :, :O]
    return probs, (h_t[None, :, :], c_t[None, :, :])


# ---------------------------------------------------------------------------
# Single-call forward, matching the PyTorch module exactly (T = 1).
# ---------------------------------------------------------------------------
def attn_decoder_forward(encoder_outputs, hidden, prep):
    """encoder_outputs: (B, 6H); hidden=(h0,c0) each (1,B,H).
    Returns (output (1,B,O), (h1,c1) each (1,B,H))."""
    probs, hidden_out = attn_decoder_decode(encoder_outputs[None], hidden, prep,
                                            block_steps=1)
    return probs, hidden_out


# ---------------------------------------------------------------------------
# Parameter init mirroring nn.LSTM / nn.Linear shapes.
# ---------------------------------------------------------------------------
def init_params(key, hidden_size, output_size):
    H, O = hidden_size, output_size
    k = 1.0 / jnp.sqrt(jnp.float32(H))
    keys = jax.random.split(key, 6)
    u = lambda kk, shape: jax.random.uniform(kk, shape, jnp.float32, -k, k)
    return {
        "w_ih": u(keys[0], (4 * H, 6 * H)),   # LSTM weight_ih_l0  [i|f|g|o]
        "w_hh": u(keys[1], (4 * H, H)),       # LSTM weight_hh_l0  [i|f|g|o]
        "b_ih": u(keys[2], (4 * H,)),
        "b_hh": u(keys[3], (4 * H,)),
        "w_out": u(keys[4], (O, H)),          # Linear weight
        "b_out": u(keys[5], (O,)),            # Linear bias
    }


# ---------------------------------------------------------------------------
# Pure-JAX reference from the ORIGINAL (PyTorch-ordered) params, with the same
# bf16 quantization of x / h / weights that the kernel applies.
# ---------------------------------------------------------------------------
def _reference_decode(encoder_outputs_seq, hidden, params):
    H = params["w_hh"].shape[1]
    h, c = hidden
    B = encoder_outputs_seq.shape[1]
    h = h.reshape(B, H).astype(jnp.float32)
    c = c.reshape(B, H).astype(jnp.float32)
    q = lambda a: a.astype(jnp.bfloat16).astype(jnp.float32)
    w_ih = q(params["w_ih"])
    w_hh = q(params["w_hh"])
    b = (params["b_ih"] + params["b_hh"]).astype(jnp.float32)
    w_out = q(params["w_out"])
    b_out = params["b_out"].astype(jnp.float32)
    outs = []
    for t in range(encoder_outputs_seq.shape[0]):
        x = q(encoder_outputs_seq[t])
        gates = x @ w_ih.T + q(h) @ w_hh.T + b
        i_g = jax.nn.sigmoid(gates[:, :H])
        f_g = jax.nn.sigmoid(gates[:, H:2 * H])
        g_g = jnp.tanh(gates[:, 2 * H:3 * H])
        o_g = jax.nn.sigmoid(gates[:, 3 * H:])
        c = f_g * c + i_g * g_g
        h = o_g * jnp.tanh(c)
        logits = q(h) @ w_out.T + b_out
        outs.append(jax.nn.softmax(logits, axis=-1))
    return jnp.stack(outs), (h[None], c[None])


if __name__ == "__main__":
    B, H, O, T = 2, 32, 16, 32   # batch, hidden_size, output_size, decode steps

    key = jax.random.PRNGKey(0)
    k_p, k_x, k_h, k_c = jax.random.split(key, 4)

    params = init_params(k_p, H, O)
    prep = prepare_params(params)   # one-time: transpose, gate reorder, bias
                                    # fusion, bf16 cast, output lane padding

    encoder_outputs_seq = jax.random.normal(k_x, (T, B, 6 * H), jnp.float32)
    h0 = jax.random.normal(k_h, (1, B, H), jnp.float32)
    c0 = jax.random.normal(k_c, (1, B, H), jnp.float32)

    # Multi-step decode: 16 steps per grid iteration, weights VMEM-resident,
    # state carried on-chip, dense per-block probs writeback.
    probs, (h_t, c_t) = attn_decoder_decode(encoder_outputs_seq, (h0, c0), prep,
                                            block_steps=16)
    probs, h_t, c_t = jax.block_until_ready((probs, h_t, c_t))

    ref_probs, (ref_h, ref_c) = _reference_decode(encoder_outputs_seq, (h0, c0), params)
    assert probs.shape == (T, B, O)
    assert h_t.shape == (1, B, H) and c_t.shape == (1, B, H)
    assert jnp.allclose(probs, ref_probs, atol=2e-3), float(jnp.abs(probs - ref_probs).max())
    assert jnp.allclose(h_t, ref_h, atol=2e-3), float(jnp.abs(h_t - ref_h).max())
    assert jnp.allclose(c_t, ref_c, atol=2e-3), float(jnp.abs(c_t - ref_c).max())

    # Ragged tail (T not a multiple of the step block) -> padded/masked path.
    T2 = 7
    probs2, (h2, c2) = attn_decoder_decode(encoder_outputs_seq[:T2], (h0, c0), prep,
                                           block_steps=4)
    probs2, h2, c2 = jax.block_until_ready((probs2, h2, c2))
    ref_p2, (ref_h2, ref_c2) = _reference_decode(encoder_outputs_seq[:T2], (h0, c0), params)
    assert probs2.shape == (T2, B, O)
    assert jnp.allclose(probs2, ref_p2, atol=2e-3), float(jnp.abs(probs2 - ref_p2).max())
    assert jnp.allclose(h2, ref_h2, atol=2e-3)
    assert jnp.allclose(c2, ref_c2, atol=2e-3)

    # Single-call forward (exact PyTorch module signature: one step).
    out1, (h1, c1) = attn_decoder_forward(encoder_outputs_seq[0], (h0, c0), prep)
    out1, h1, c1 = jax.block_until_ready((out1, h1, c1))
    assert out1.shape == (1, B, O) and h1.shape == (1, B, H) and c1.shape == (1, B, H)
    assert jnp.allclose(out1[0], ref_probs[0], atol=2e-3)

    # TODO(synk): self.dropout is defined but never applied in forward(); omitted.
    print("KERNEL_OK")
</pallas_src>

<mosaic_0001>
module attributes {stable_mosaic.version = 11 : i64} {
  func.func @_attn_decoder_kernel(%arg0: i32, %arg1: memref<16x2x192xbf16, #tpu.memory_space<vmem>>, %arg2: memref<2x32xf32, #tpu.memory_space<vmem>>, %arg3: memref<2x32xf32, #tpu.memory_space<vmem>>, %arg4: memref<192x128xbf16, #tpu.memory_space<vmem>>, %arg5: memref<32x128xbf16, #tpu.memory_space<vmem>>, %arg6: memref<1x128xf32, #tpu.memory_space<vmem>>, %arg7: memref<32x128xbf16, #tpu.memory_space<vmem>>, %arg8: memref<1x128xf32, #tpu.memory_space<vmem>>, %arg9: memref<32x128xf32, #tpu.memory_space<vmem>>, %arg10: memref<2x32xf32, #tpu.memory_space<vmem>>, %arg11: memref<2x32xf32, #tpu.memory_space<vmem>>, %arg12: memref<2x32xf32, #tpu.memory_space<vmem>>, %arg13: memref<2x32xf32, #tpu.memory_space<vmem>>, %arg14: memref<32x32xf32, #tpu.memory_space<vmem>>) attributes {dimension_semantics = [#tpu.dimension_semantics<arbitrary>], iteration_bounds = array<i64: 2>, scalar_prefetch = 0 : i64, scratch_operands = 3 : i64, tpu.core_type = #tpu.core_type<tc>, window_params = [{transform_indices = @transform_0, window_bounds = array<i64: 16, 2, 192>}, {pipeline_mode = #tpu.pipeline_mode<synchronous>, transform_indices = @transform_1, window_bounds = array<i64: 2, 32>}, {pipeline_mode = #tpu.pipeline_mode<synchronous>, transform_indices = @transform_2, window_bounds = array<i64: 2, 32>}, {pipeline_mode = #tpu.pipeline_mode<synchronous>, transform_indices = @transform_3, window_bounds = array<i64: 192, 128>}, {pipeline_mode = #tpu.pipeline_mode<synchronous>, transform_indices = @transform_4, window_bounds = array<i64: 32, 128>}, {pipeline_mode = #tpu.pipeline_mode<synchronous>, transform_indices = @transform_5, window_bounds = array<i64: 1, 128>}, {pipeline_mode = #tpu.pipeline_mode<synchronous>, transform_indices = @transform_6, window_bounds = array<i64: 32, 128>}, {pipeline_mode = #tpu.pipeline_mode<synchronous>, transform_indices = @transform_7, window_bounds = array<i64: 1, 128>}, {transform_indices = @transform_8, window_bounds = array<i64: 32, 128>}, {pipeline_mode = #tpu.pipeline_mode<synchronous>, transform_indices = @transform_9, window_bounds = array<i64: 2, 32>}, {pipeline_mode = #tpu.pipeline_mode<synchronous>, transform_indices = @transform_10, window_bounds = array<i64: 2, 32>}]} {
    %c0_i32 = arith.constant 0 : i32
    %0 = arith.cmpi eq, %arg0, %c0_i32 : i32
    %1 = arith.extui %0 : i1 to i32
    %c0_i32_0 = arith.constant 0 : i32
    %2 = arith.cmpi ne, %1, %c0_i32_0 : i32
    scf.if %2 {
      %c0_130 = arith.constant 0 : index
      %c0_131 = arith.constant 0 : index
      %430 = vector.load %arg2[%c0_130, %c0_131] : memref<2x32xf32, #tpu.memory_space<vmem>>, vector<2x32xf32>
      %c0_132 = arith.constant 0 : index
      %c0_133 = arith.constant 0 : index
      %431 = vector.load %arg12[%c0_132, %c0_133] : memref<2x32xf32, #tpu.memory_space<vmem>>, vector<2x32xf32>
      tpu.vector_store %arg12[%c0_132, %c0_133], %430 {strides = array<i32>} : memref<2x32xf32, #tpu.memory_space<vmem>>, vector<2x32xf32>,
      %c0_134 = arith.constant 0 : index
      %c0_135 = arith.constant 0 : index
      %432 = vector.load %arg3[%c0_134, %c0_135] : memref<2x32xf32, #tpu.memory_space<vmem>>, vector<2x32xf32>
      %c0_136 = arith.constant 0 : index
      %c0_137 = arith.constant 0 : index
      %433 = vector.load %arg13[%c0_136, %c0_137] : memref<2x32xf32, #tpu.memory_space<vmem>>, vector<2x32xf32>
      tpu.vector_store %arg13[%c0_136, %c0_137], %432 {strides = array<i32>} : memref<2x32xf32, #tpu.memory_space<vmem>>, vector<2x32xf32>,
    } else {
    }
    %c0 = arith.constant 0 : index
    %c0_1 = arith.constant 0 : index
    %3 = vector.load %arg4[%c0, %c0_1] : memref<192x128xbf16, #tpu.memory_space<vmem>>, vector<192x128xbf16>
    %c0_2 = arith.constant 0 : index
    %c0_3 = arith.constant 0 : index
    %4 = vector.load %arg5[%c0_2, %c0_3] : memref<32x128xbf16, #tpu.memory_space<vmem>>, vector<32x128xbf16>
    %c0_4 = arith.constant 0 : index
    %c0_5 = arith.constant 0 : index
    %5 = vector.load %arg6[%c0_4, %c0_5] : memref<1x128xf32, #tpu.memory_space<vmem>>, vector<1x128xf32>
    %c0_6 = arith.constant 0 : index
    %c0_7 = arith.constant 0 : index
    %6 = vector.load %arg12[%c0_6, %c0_7] : memref<2x32xf32, #tpu.memory_space<vmem>>, vector<2x32xf32>
    %c0_8 = arith.constant 0 : index
    %c0_9 = arith.constant 0 : index
    %7 = vector.load %arg13[%c0_8, %c0_9] : memref<2x32xf32, #tpu.memory_space<vmem>>, vector<2x32xf32>
    %c0_10 = arith.constant 0 : index
    %c0_11 = arith.constant 0 : index
    %c0_12 = arith.constant 0 : index
    %8 = vector.load %arg1[%c0_10, %c0_11, %c0_12] : memref<16x2x192xbf16, #tpu.memory_space<vmem>>, vector<1x2x192xbf16>
    %9 = vector.shape_cast %8 : vector<1x2x192xbf16> to vector<2x192xbf16>
    %cst = arith.constant dense<0.000000e+00> : vector<2x128xf32>
    %10 = tpu.matmul %9, %3, %cst {dimension_numbers = #tpu.dot_dimension_numbers<[1], [0], [0], [1], [0, 0, 1, 1], [], []>} : vector<2x192xbf16>, vector<192x128xbf16>, vector<2x128xf32> -> vector<2x128xf32>
    %11 = arith.truncf %6 : vector<2x32xf32> to vector<2x32xbf16>
    %cst_13 = arith.constant dense<0.000000e+00> : vector<2x128xf32>
    %12 = tpu.matmul %11, %4, %cst_13 {dimension_numbers = #tpu.dot_dimension_numbers<[1], [0], [0], [1], [0, 0, 1, 1], [], []>} : vector<2x32xbf16>, vector<32x128xbf16>, vector<2x128xf32> -> vector<2x128xf32>
    %13 = arith.addf %10, %12 : vector<2x128xf32>
    %14 = vector.broadcast %5 : vector<1x128xf32> to vector<2x128xf32>
    %15 = arith.addf %13, %14 : vector<2x128xf32>
    %16 = vector.extract_strided_slice %15 {offsets = [0, 0], sizes = [2, 96], strides = [1, 1]} : vector<2x128xf32> to vector<2x96xf32>
    %17 = arith.negf %16 : vector<2x96xf32>
    %18 = math.exp %17 : vector<2x96xf32>
    %cst_14 = arith.constant 1.000000e+00 : f32
    %19 = vector.broadcast %cst_14 : f32 to vector<2x96xf32>
    %20 = arith.addf %19, %18 : vector<2x96xf32>
    %21 = arith.divf %19, %20 : vector<2x96xf32>
    %22 = vector.extract_strided_slice %15 {offsets = [0, 96], sizes = [2, 32], strides = [1, 1]} : vector<2x128xf32> to vector<2x32xf32>
    %23 = math.tanh %22 : vector<2x32xf32>
    %24 = vector.extract_strided_slice %21 {offsets = [0, 0], sizes = [2, 32], strides = [1, 1]} : vector<2x96xf32> to vector<2x32xf32>
    %25 = vector.extract_strided_slice %21 {offsets = [0, 32], sizes = [2, 32], strides = [1, 1]} : vector<2x96xf32> to vector<2x32xf32>
    %26 = vector.extract_strided_slice %21 {offsets = [0, 64], sizes = [2, 32], strides = [1, 1]} : vector<2x96xf32> to vector<2x32xf32>
    %27 = arith.mulf %25, %7 : vector<2x32xf32>
    %28 = arith.mulf %24, %23 : vector<2x32xf32>
    %29 = arith.addf %27, %28 : vector<2x32xf32>
    %30 = math.tanh %29 : vector<2x32xf32>
    %31 = arith.mulf %26, %30 : vector<2x32xf32>
    %c0_15 = arith.constant 0 : index
    %c0_16 = arith.constant 0 : index
    %32 = vector.load %arg14[%c0_15, %c0_16] : memref<32x32xf32, #tpu.memory_space<vmem>>, vector<2x32xf32>
    tpu.vector_store %arg14[%c0_15, %c0_16], %31 {strides = array<i32>} : memref<32x32xf32, #tpu.memory_space<vmem>>, vector<2x32xf32>,
    %c1 = arith.constant 1 : index
    %c0_17 = arith.constant 0 : index
    %c0_18 = arith.constant 0 : index
    %33 = vector.load %arg1[%c1, %c0_17, %c0_18] : memref<16x2x192xbf16, #tpu.memory_space<vmem>>, vector<1x2x192xbf16>
    %34 = vector.shape_cast %33 : vector<1x2x192xbf16> to vector<2x192xbf16>
    %cst_19 = arith.constant dense<0.000000e+00> : vector<2x128xf32>
    %35 = tpu.matmul %34, %3, %cst_19 {dimension_numbers = #tpu.dot_dimension_numbers<[1], [0], [0], [1], [0, 0, 1, 1], [], []>} : vector<2x192xbf16>, vector<192x128xbf16>, vector<2x128xf32> -> vector<2x128xf32>
    %36 = arith.truncf %31 : vector<2x32xf32> to vector<2x32xbf16>
    %cst_20 = arith.constant dense<0.000000e+00> : vector<2x128xf32>
    %37 = tpu.matmul %36, %4, %cst_20 {dimension_numbers = #tpu.dot_dimension_numbers<[1], [0], [0], [1], [0, 0, 1, 1], [], []>} : vector<2x32xbf16>, vector<32x128xbf16>, vector<2x128xf32> -> vector<2x128xf32>
    %38 = arith.addf %35, %37 : vector<2x128xf32>
    %39 = vector.broadcast %5 : vector<1x128xf32> to vector<2x128xf32>
    %40 = arith.addf %38, %39 : vector<2x128xf32>
    %41 = vector.extract_strided_slice %40 {offsets = [0, 0], sizes = [2, 96], strides = [1, 1]} : vector<2x128xf32> to vector<2x96xf32>
    %42 = arith.negf %41 : vector<2x96xf32>
    %43 = math.exp %42 : vector<2x96xf32>
    %cst_21 = arith.constant 1.000000e+00 : f32
    %44 = vector.broadcast %cst_21 : f32 to vector<2x96xf32>
    %45 = arith.addf %44, %43 : vector<2x96xf32>
    %46 = arith.divf %44, %45 : vector<2x96xf32>
    %47 = vector.extract_strided_slice %40 {offsets = [0, 96], sizes = [2, 32], strides = [1, 1]} : vector<2x128xf32> to vector<2x32xf32>
    %48 = math.tanh %47 : vector<2x32xf32>
    %49 = vector.extract_strided_slice %46 {offsets = [0, 0], sizes = [2, 32], strides = [1, 1]} : vector<2x96xf32> to vector<2x32xf32>
    %50 = vector.extract_strided_slice %46 {offsets = [0, 32], sizes = [2, 32], strides = [1, 1]} : vector<2x96xf32> to vector<2x32xf32>
    %51 = vector.extract_strided_slice %46 {offsets = [0, 64], sizes = [2, 32], strides = [1, 1]} : vector<2x96xf32> to vector<2x32xf32>
    %52 = arith.mulf %50, %29 : vector<2x32xf32>
    %53 = arith.mulf %49, %48 : vector<2x32xf32>
    %54 = arith.addf %52, %53 : vector<2x32xf32>
    %55 = math.tanh %54 : vector<2x32xf32>
    %56 = arith.mulf %51, %55 : vector<2x32xf32>
    %c2 = arith.constant 2 : index
    %c0_22 = arith.constant 0 : index
    %57 = vector.load %arg14[%c2, %c0_22] : memref<32x32xf32, #tpu.memory_space<vmem>>, vector<2x32xf32>
    tpu.vector_store %arg14[%c2, %c0_22], %56 {strides = array<i32>} : memref<32x32xf32, #tpu.memory_space<vmem>>, vector<2x32xf32>,
    %c2_23 = arith.constant 2 : index
    %c0_24 = arith.constant 0 : index
    %c0_25 = arith.constant 0 : index
    %58 = vector.load %arg1[%c2_23, %c0_24, %c0_25] : memref<16x2x192xbf16, #tpu.memory_space<vmem>>, vector<1x2x192xbf16>
    %59 = vector.shape_cast %58 : vector<1x2x192xbf16> to vector<2x192xbf16>
    %cst_26 = arith.constant dense<0.000000e+00> : vector<2x128xf32>
    %60 = tpu.matmul %59, %3, %cst_26 {dimension_numbers = #tpu.dot_dimension_numbers<[1], [0], [0], [1], [0, 0, 1, 1], [], []>} : vector<2x192xbf16>, vector<192x128xbf16>, vector<2x128xf32> -> vector<2x128xf32>
    %61 = arith.truncf %56 : vector<2x32xf32> to vector<2x32xbf16>
    %cst_27 = arith.constant dense<0.000000e+00> : vector<2x128xf32>
    %62 = tpu.matmul %61, %4, %cst_27 {dimension_numbers = #tpu.dot_dimension_numbers<[1], [0], [0], [1], [0, 0, 1, 1], [], []>} : vector<2x32xbf16>, vector<32x128xbf16>, vector<2x128xf32> -> vector<2x128xf32>
    %63 = arith.addf %60, %62 : vector<2x128xf32>
    %64 = vector.broadcast %5 : vector<1x128xf32> to vector<2x128xf32>
    %65 = arith.addf %63, %64 : vector<2x128xf32>
    %66 = vector.extract_strided_slice %65 {offsets = [0, 0], sizes = [2, 96], strides = [1, 1]} : vector<2x128xf32> to vector<2x96xf32>
    %67 = arith.negf %66 : vector<2x96xf32>
    %68 = math.exp %67 : vector<2x96xf32>
    %cst_28 = arith.constant 1.000000e+00 : f32
    %69 = vector.broadcast %cst_28 : f32 to vector<2x96xf32>
    %70 = arith.addf %69, %68 : vector<2x96xf32>
    %71 = arith.divf %69, %70 : vector<2x96xf32>
    %72 = vector.extract_strided_slice %65 {offsets = [0, 96], sizes = [2, 32], strides = [1, 1]} : vector<2x128xf32> to vector<2x32xf32>
    %73 = math.tanh %72 : vector<2x32xf32>
    %74 = vector.extract_strided_slice %71 {offsets = [0, 0], sizes = [2, 32], strides = [1, 1]} : vector<2x96xf32> to vector<2x32xf32>
    %75 = vector.extract_strided_slice %71 {offsets = [0, 32], sizes = [2, 32], strides = [1, 1]} : vector<2x96xf32> to vector<2x32xf32>
    %76 = vector.extract_strided_slice %71 {offsets = [0, 64], sizes = [2, 32], strides = [1, 1]} : vector<2x96xf32> to vector<2x32xf32>
    %77 = arith.mulf %75, %54 : vector<2x32xf32>
    %78 = arith.mulf %74, %73 : vector<2x32xf32>
    %79 = arith.addf %77, %78 : vector<2x32xf32>
    %80 = math.tanh %79 : vector<2x32xf32>
    %81 = arith.mulf %76, %80 : vector<2x32xf32>
    %c4 = arith.constant 4 : index
    %c0_29 = arith.constant 0 : index
    %82 = vector.load %arg14[%c4, %c0_29] : memref<32x32xf32, #tpu.memory_space<vmem>>, vector<2x32xf32>
    tpu.vector_store %arg14[%c4, %c0_29], %81 {strides = array<i32>} : memref<32x32xf32, #tpu.memory_space<vmem>>, vector<2x32xf32>,
    %c3 = arith.constant 3 : index
    %c0_30 = arith.constant 0 : index
    %c0_31 = arith.constant 0 : index
    %83 = vector.load %arg1[%c3, %c0_30, %c0_31] : memref<16x2x192xbf16, #tpu.memory_space<vmem>>, vector<1x2x192xbf16>
    %84 = vector.shape_cast %83 : vector<1x2x192xbf16> to vector<2x192xbf16>
    %cst_32 = arith.constant dense<0.000000e+00> : vector<2x128xf32>
    %85 = tpu.matmul %84, %3, %cst_32 {dimension_numbers = #tpu.dot_dimension_numbers<[1], [0], [0], [1], [0, 0, 1, 1], [], []>} : vector<2x192xbf16>, vector<192x128xbf16>, vector<2x128xf32> -> vector<2x128xf32>
    %86 = arith.truncf %81 : vector<2x32xf32> to vector<2x32xbf16>
    %cst_33 = arith.constant dense<0.000000e+00> : vector<2x128xf32>
    %87 = tpu.matmul %86, %4, %cst_33 {dimension_numbers = #tpu.dot_dimension_numbers<[1], [0], [0], [1], [0, 0, 1, 1], [], []>} : vector<2x32xbf16>, vector<32x128xbf16>, vector<2x128xf32> -> vector<2x128xf32>
    %88 = arith.addf %85, %87 : vector<2x128xf32>
    %89 = vector.broadcast %5 : vector<1x128xf32> to vector<2x128xf32>
    %90 = arith.addf %88, %89 : vector<2x128xf32>
    %91 = vector.extract_strided_slice %90 {offsets = [0, 0], sizes = [2, 96], strides = [1, 1]} : vector<2x128xf32> to vector<2x96xf32>
    %92 = arith.negf %91 : vector<2x96xf32>
    %93 = math.exp %92 : vector<2x96xf32>
    %cst_34 = arith.constant 1.000000e+00 : f32
    %94 = vector.broadcast %cst_34 : f32 to vector<2x96xf32>
    %95 = arith.addf %94, %93 : vector<2x96xf32>
    %96 = arith.divf %94, %95 : vector<2x96xf32>
    %97 = vector.extract_strided_slice %90 {offsets = [0, 96], sizes = [2, 32], strides = [1, 1]} : vector<2x128xf32> to vector<2x32xf32>
    %98 = math.tanh %97 : vector<2x32xf32>
    %99 = vector.extract_strided_slice %96 {offsets = [0, 0], sizes = [2, 32], strides = [1, 1]} : vector<2x96xf32> to vector<2x32xf32>
    %100 = vector.extract_strided_slice %96 {offsets = [0, 32], sizes = [2, 32], strides = [1, 1]} : vector<2x96xf32> to vector<2x32xf32>
    %101 = vector.extract_strided_slice %96 {offsets = [0, 64], sizes = [2, 32], strides = [1, 1]} : vector<2x96xf32> to vector<2x32xf32>
    %102 = arith.mulf %100, %79 : vector<2x32xf32>
    %103 = arith.mulf %99, %98 : vector<2x32xf32>
    %104 = arith.addf %102, %103 : vector<2x32xf32>
    %105 = math.tanh %104 : vector<2x32xf32>
    %106 = arith.mulf %101, %105 : vector<2x32xf32>
    %c6 = arith.constant 6 : index
    %c0_35 = arith.constant 0 : index
    %107 = vector.load %arg14[%c6, %c0_35] : memref<32x32xf32, #tpu.memory_space<vmem>>, vector<2x32xf32>
    tpu.vector_store %arg14[%c6, %c0_35], %106 {strides = array<i32>} : memref<32x32xf32, #tpu.memory_space<vmem>>, vector<2x32xf32>,
    %c4_36 = arith.constant 4 : index
    %c0_37 = arith.constant 0 : index
    %c0_38 = arith.constant 0 : index
    %108 = vector.load %arg1[%c4_36, %c0_37, %c0_38] : memref<16x2x192xbf16, #tpu.memory_space<vmem>>, vector<1x2x192xbf16>
    %109 = vector.shape_cast %108 : vector<1x2x192xbf16> to vector<2x192xbf16>
    %cst_39 = arith.constant dense<0.000000e+00> : vector<2x128xf32>
    %110 = tpu.matmul %109, %3, %cst_39 {dimension_numbers = #tpu.dot_dimension_numbers<[1], [0], [0], [1], [0, 0, 1, 1], [], []>} : vector<2x192xbf16>, vector<192x128xbf16>, vector<2x128xf32> -> vector<2x128xf32>
    %111 = arith.truncf %106 : vector<2x32xf32> to vector<2x32xbf16>
    %cst_40 = arith.constant dense<0.000000e+00> : vector<2x128xf32>
    %112 = tpu.matmul %111, %4, %cst_40 {dimension_numbers = #tpu.dot_dimension_numbers<[1], [0], [0], [1], [0, 0, 1, 1], [], []>} : vector<2x32xbf16>, vector<32x128xbf16>, vector<2x128xf32> -> vector<2x128xf32>
    %113 = arith.addf %110, %112 : vector<2x128xf32>
    %114 = vector.broadcast %5 : vector<1x128xf32> to vector<2x128xf32>
    %115 = arith.addf %113, %114 : vector<2x128xf32>
    %116 = vector.extract_strided_slice %115 {offsets = [0, 0], sizes = [2, 96], strides = [1, 1]} : vector<2x128xf32> to vector<2x96xf32>
    %117 = arith.negf %116 : vector<2x96xf32>
    %118 = math.exp %117 : vector<2x96xf32>
    %cst_41 = arith.constant 1.000000e+00 : f32
    %119 = vector.broadcast %cst_41 : f32 to vector<2x96xf32>
    %120 = arith.addf %119, %118 : vector<2x96xf32>
    %121 = arith.divf %119, %120 : vector<2x96xf32>
    %122 = vector.extract_strided_slice %115 {offsets = [0, 96], sizes = [2, 32], strides = [1, 1]} : vector<2x128xf32> to vector<2x32xf32>
    %123 = math.tanh %122 : vector<2x32xf32>
    %124 = vector.extract_strided_slice %121 {offsets = [0, 0], sizes = [2, 32], strides = [1, 1]} : vector<2x96xf32> to vector<2x32xf32>
    %125 = vector.extract_strided_slice %121 {offsets = [0, 32], sizes = [2, 32], strides = [1, 1]} : vector<2x96xf32> to vector<2x32xf32>
    %126 = vector.extract_strided_slice %121 {offsets = [0, 64], sizes = [2, 32], strides = [1, 1]} : vector<2x96xf32> to vector<2x32xf32>
    %127 = arith.mulf %125, %104 : vector<2x32xf32>
    %128 = arith.mulf %124, %123 : vector<2x32xf32>
    %129 = arith.addf %127, %128 : vector<2x32xf32>
    %130 = math.tanh %129 : vector<2x32xf32>
    %131 = arith.mulf %126, %130 : vector<2x32xf32>
    %c8 = arith.constant 8 : index
    %c0_42 = arith.constant 0 : index
    %132 = vector.load %arg14[%c8, %c0_42] : memref<32x32xf32, #tpu.memory_space<vmem>>, vector<2x32xf32>
    tpu.vector_store %arg14[%c8, %c0_42], %131 {strides = array<i32>} : memref<32x32xf32, #tpu.memory_space<vmem>>, vector<2x32xf32>,
    %c5 = arith.constant 5 : index
    %c0_43 = arith.constant 0 : index
    %c0_44 = arith.constant 0 : index
    %133 = vector.load %arg1[%c5, %c0_43, %c0_44] : memref<16x2x192xbf16, #tpu.memory_space<vmem>>, vector<1x2x192xbf16>
    %134 = vector.shape_cast %133 : vector<1x2x192xbf16> to vector<2x192xbf16>
    %cst_45 = arith.constant dense<0.000000e+00> : vector<2x128xf32>
    %135 = tpu.matmul %134, %3, %cst_45 {dimension_numbers = #tpu.dot_dimension_numbers<[1], [0], [0], [1], [0, 0, 1, 1], [], []>} : vector<2x192xbf16>, vector<192x128xbf16>, vector<2x128xf32> -> vector<2x128xf32>
    %136 = arith.truncf %131 : vector<2x32xf32> to vector<2x32xbf16>
    %cst_46 = arith.constant dense<0.000000e+00> : vector<2x128xf32>
    %137 = tpu.matmul %136, %4, %cst_46 {dimension_numbers = #tpu.dot_dimension_numbers<[1], [0], [0], [1], [0, 0, 1, 1], [], []>} : vector<2x32xbf16>, vector<32x128xbf16>, vector<2x128xf32> -> vector<2x128xf32>
    %138 = arith.addf %135, %137 : vector<2x128xf32>
    %139 = vector.broadcast %5 : vector<1x128xf32> to vector<2x128xf32>
    %140 = arith.addf %138, %139 : vector<2x128xf32>
    %141 = vector.extract_strided_slice %140 {offsets = [0, 0], sizes = [2, 96], strides = [1, 1]} : vector<2x128xf32> to vector<2x96xf32>
    %142 = arith.negf %141 : vector<2x96xf32>
    %143 = math.exp %142 : vector<2x96xf32>
    %cst_47 = arith.constant 1.000000e+00 : f32
    %144 = vector.broadcast %cst_47 : f32 to vector<2x96xf32>
    %145 = arith.addf %144, %143 : vector<2x96xf32>
    %146 = arith.divf %144, %145 : vector<2x96xf32>
    %147 = vector.extract_strided_slice %140 {offsets = [0, 96], sizes = [2, 32], strides = [1, 1]} : vector<2x128xf32> to vector<2x32xf32>
    %148 = math.tanh %147 : vector<2x32xf32>
    %149 = vector.extract_strided_slice %146 {offsets = [0, 0], sizes = [2, 32], strides = [1, 1]} : vector<2x96xf32> to vector<2x32xf32>
    %150 = vector.extract_strided_slice %146 {offsets = [0, 32], sizes = [2, 32], strides = [1, 1]} : vector<2x96xf32> to vector<2x32xf32>
    %151 = vector.extract_strided_slice %146 {offsets = [0, 64], sizes = [2, 32], strides = [1, 1]} : vector<2x96xf32> to vector<2x32xf32>
    %152 = arith.mulf %150, %129 : vector<2x32xf32>
    %153 = arith.mulf %149, %148 : vector<2x32xf32>
    %154 = arith.addf %152, %153 : vector<2x32xf32>
    %155 = math.tanh %154 : vector<2x32xf32>
    %156 = arith.mulf %151, %155 : vector<2x32xf32>
    %c10 = arith.constant 10 : index
    %c0_48 = arith.constant 0 : index
    %157 = vector.load %arg14[%c10, %c0_48] : memref<32x32xf32, #tpu.memory_space<vmem>>, vector<2x32xf32>
    tpu.vector_store %arg14[%c10, %c0_48], %156 {strides = array<i32>} : memref<32x32xf32, #tpu.memory_space<vmem>>, vector<2x32xf32>,
    %c6_49 = arith.constant 6 : index
    %c0_50 = arith.constant 0 : index
    %c0_51 = arith.constant 0 : index
    %158 = vector.load %arg1[%c6_49, %c0_50, %c0_51] : memref<16x2x192xbf16, #tpu.memory_space<vmem>>, vector<1x2x192xbf16>
    %159 = vector.shape_cast %158 : vector<1x2x192xbf16> to vector<2x192xbf16>
    %cst_52 = arith.constant dense<0.000000e+00> : vector<2x128xf32>
    %160 = tpu.matmul %159, %3, %cst_52 {dimension_numbers = #tpu.dot_dimension_numbers<[1], [0], [0], [1], [0, 0, 1, 1], [], []>} : vector<2x192xbf16>, vector<192x128xbf16>, vector<2x128xf32> -> vector<2x128xf32>
    %161 = arith.truncf %156 : vector<2x32xf32> to vector<2x32xbf16>
    %cst_53 = arith.constant dense<0.000000e+00> : vector<2x128xf32>
    %162 = tpu.matmul %161, %4, %cst_53 {dimension_numbers = #tpu.dot_dimension_numbers<[1], [0], [0], [1], [0, 0, 1, 1], [], []>} : vector<2x32xbf16>, vector<32x128xbf16>, vector<2x128xf32> -> vector<2x128xf32>
    %163 = arith.addf %160, %162 : vector<2x128xf32>
    %164 = vector.broadcast %5 : vector<1x128xf32> to vector<2x128xf32>
    %165 = arith.addf %163, %164 : vector<2x128xf32>
    %166 = vector.extract_strided_slice %165 {offsets = [0, 0], sizes = [2, 96], strides = [1, 1]} : vector<2x128xf32> to vector<2x96xf32>
    %167 = arith.negf %166 : vector<2x96xf32>
    %168 = math.exp %167 : vector<2x96xf32>
    %cst_54 = arith.constant 1.000000e+00 : f32
    %169 = vector.broadcast %cst_54 : f32 to vector<2x96xf32>
    %170 = arith.addf %169, %168 : vector<2x96xf32>
    %171 = arith.divf %169, %170 : vector<2x96xf32>
    %172 = vector.extract_strided_slice %165 {offsets = [0, 96], sizes = [2, 32], strides = [1, 1]} : vector<2x128xf32> to vector<2x32xf32>
    %173 = math.tanh %172 : vector<2x32xf32>
    %174 = vector.extract_strided_slice %171 {offsets = [0, 0], sizes = [2, 32], strides = [1, 1]} : vector<2x96xf32> to vector<2x32xf32>
    %175 = vector.extract_strided_slice %171 {offsets = [0, 32], sizes = [2, 32], strides = [1, 1]} : vector<2x96xf32> to vector<2x32xf32>
    %176 = vector.extract_strided_slice %171 {offsets = [0, 64], sizes = [2, 32], strides = [1, 1]} : vector<2x96xf32> to vector<2x32xf32>
    %177 = arith.mulf %175, %154 : vector<2x32xf32>
    %178 = arith.mulf %174, %173 : vector<2x32xf32>
    %179 = arith.addf %177, %178 : vector<2x32xf32>
    %180 = math.tanh %179 : vector<2x32xf32>
    %181 = arith.mulf %176, %180 : vector<2x32xf32>
    %c12 = arith.constant 12 : index
    %c0_55 = arith.constant 0 : index
    %182 = vector.load %arg14[%c12, %c0_55] : memref<32x32xf32, #tpu.memory_space<vmem>>, vector<2x32xf32>
    tpu.vector_store %arg14[%c12, %c0_55], %181 {strides = array<i32>} : memref<32x32xf32, #tpu.memory_space<vmem>>, vector<2x32xf32>,
    %c7 = arith.constant 7 : index
    %c0_56 = arith.constant 0 : index
    %c0_57 = arith.constant 0 : index
    %183 = vector.load %arg1[%c7, %c0_56, %c0_57] : memref<16x2x192xbf16, #tpu.memory_space<vmem>>, vector<1x2x192xbf16>
    %184 = vector.shape_cast %183 : vector<1x2x192xbf16> to vector<2x192xbf16>
    %cst_58 = arith.constant dense<0.000000e+00> : vector<2x128xf32>
    %185 = tpu.matmul %184, %3, %cst_58 {dimension_numbers = #tpu.dot_dimension_numbers<[1], [0], [0], [1], [0, 0, 1, 1], [], []>} : vector<2x192xbf16>, vector<192x128xbf16>, vector<2x128xf32> -> vector<2x128xf32>
    %186 = arith.truncf %181 : vector<2x32xf32> to vector<2x32xbf16>
    %cst_59 = arith.constant dense<0.000000e+00> : vector<2x128xf32>
    %187 = tpu.matmul %186, %4, %cst_59 {dimension_numbers = #tpu.dot_dimension_numbers<[1], [0], [0], [1], [0, 0, 1, 1], [], []>} : vector<2x32xbf16>, vector<32x128xbf16>, vector<2x128xf32> -> vector<2x128xf32>
    %188 = arith.addf %185, %187 : vector<2x128xf32>
    %189 = vector.broadcast %5 : vector<1x128xf32> to vector<2x128xf32>
    %190 = arith.addf %188, %189 : vector<2x128xf32>
    %191 = vector.extract_strided_slice %190 {offsets = [0, 0], sizes = [2, 96], strides = [1, 1]} : vector<2x128xf32> to vector<2x96xf32>
    %192 = arith.negf %191 : vector<2x96xf32>
    %193 = math.exp %192 : vector<2x96xf32>
    %cst_60 = arith.constant 1.000000e+00 : f32
    %194 = vector.broadcast %cst_60 : f32 to vector<2x96xf32>
    %195 = arith.addf %194, %193 : vector<2x96xf32>
    %196 = arith.divf %194, %195 : vector<2x96xf32>
    %197 = vector.extract_strided_slice %190 {offsets = [0, 96], sizes = [2, 32], strides = [1, 1]} : vector<2x128xf32> to vector<2x32xf32>
    %198 = math.tanh %197 : vector<2x32xf32>
    %199 = vector.extract_strided_slice %196 {offsets = [0, 0], sizes = [2, 32], strides = [1, 1]} : vector<2x96xf32> to vector<2x32xf32>
    %200 = vector.extract_strided_slice %196 {offsets = [0, 32], sizes = [2, 32], strides = [1, 1]} : vector<2x96xf32> to vector<2x32xf32>
    %201 = vector.extract_strided_slice %196 {offsets = [0, 64], sizes = [2, 32], strides = [1, 1]} : vector<2x96xf32> to vector<2x32xf32>
    %202 = arith.mulf %200, %179 : vector<2x32xf32>
    %203 = arith.mulf %199, %198 : vector<2x32xf32>
    %204 = arith.addf %202, %203 : vector<2x32xf32>
    %205 = math.tanh %204 : vector<2x32xf32>
    %206 = arith.mulf %201, %205 : vector<2x32xf32>
    %c14 = arith.constant 14 : index
    %c0_61 = arith.constant 0 : index
    %207 = vector.load %arg14[%c14, %c0_61] : memref<32x32xf32, #tpu.memory_space<vmem>>, vector<2x32xf32>
    tpu.vector_store %arg14[%c14, %c0_61], %206 {strides = array<i32>} : memref<32x32xf32, #tpu.memory_space<vmem>>, vector<2x32xf32>,
    %c8_62 = arith.constant 8 : index
    %c0_63 = arith.constant 0 : index
    %c0_64 = arith.constant 0 : index
    %208 = vector.load %arg1[%c8_62, %c0_63, %c0_64] : memref<16x2x192xbf16, #tpu.memory_space<vmem>>, vector<1x2x192xbf16>
    %209 = vector.shape_cast %208 : vector<1x2x192xbf16> to vector<2x192xbf16>
    %cst_65 = arith.constant dense<0.000000e+00> : vector<2x128xf32>
    %210 = tpu.matmul %209, %3, %cst_65 {dimension_numbers = #tpu.dot_dimension_numbers<[1], [0], [0], [1], [0, 0, 1, 1], [], []>} : vector<2x192xbf16>, vector<192x128xbf16>, vector<2x128xf32> -> vector<2x128xf32>
    %211 = arith.truncf %206 : vector<2x32xf32> to vector<2x32xbf16>
    %cst_66 = arith.constant dense<0.000000e+00> : vector<2x128xf32>
    %212 = tpu.matmul %211, %4, %cst_66 {dimension_numbers = #tpu.dot_dimension_numbers<[1], [0], [0], [1], [0, 0, 1, 1], [], []>} : vector<2x32xbf16>, vector<32x128xbf16>, vector<2x128xf32> -> vector<2x128xf32>
    %213 = arith.addf %210, %212 : vector<2x128xf32>
    %214 = vector.broadcast %5 : vector<1x128xf32> to vector<2x128xf32>
    %215 = arith.addf %213, %214 : vector<2x128xf32>
    %216 = vector.extract_strided_slice %215 {offsets = [0, 0], sizes = [2, 96], strides = [1, 1]} : vector<2x128xf32> to vector<2x96xf32>
    %217 = arith.negf %216 : vector<2x96xf32>
    %218 = math.exp %217 : vector<2x96xf32>
    %cst_67 = arith.constant 1.000000e+00 : f32
    %219 = vector.broadcast %cst_67 : f32 to vector<2x96xf32>
    %220 = arith.addf %219, %218 : vector<2x96xf32>
    %221 = arith.divf %219, %220 : vector<2x96xf32>
    %222 = vector.extract_strided_slice %215 {offsets = [0, 96], sizes = [2, 32], strides = [1, 1]} : vector<2x128xf32> to vector<2x32xf32>
    %223 = math.tanh %222 : vector<2x32xf32>
    %224 = vector.extract_strided_slice %221 {offsets = [0, 0], sizes = [2, 32], strides = [1, 1]} : vector<2x96xf32> to vector<2x32xf32>
    %225 = vector.extract_strided_slice %221 {offsets = [0, 32], sizes = [2, 32], strides = [1, 1]} : vector<2x96xf32> to vector<2x32xf32>
    %226 = vector.extract_strided_slice %221 {offsets = [0, 64], sizes = [2, 32], strides = [1, 1]} : vector<2x96xf32> to vector<2x32xf32>
    %227 = arith.mulf %225, %204 : vector<2x32xf32>
    %228 = arith.mulf %224, %223 : vector<2x32xf32>
    %229 = arith.addf %227, %228 : vector<2x32xf32>
    %230 = math.tanh %229 : vector<2x32xf32>
    %231 = arith.mulf %226, %230 : vector<2x32xf32>
    %c16 = arith.constant 16 : index
    %c0_68 = arith.constant 0 : index
    %232 = vector.load %arg14[%c16, %c0_68] : memref<32x32xf32, #tpu.memory_space<vmem>>, vector<2x32xf32>
    tpu.vector_store %arg14[%c16, %c0_68], %231 {strides = array<i32>} : memref<32x32xf32, #tpu.memory_space<vmem>>, vector<2x32xf32>,
    %c9 = arith.constant 9 : index
    %c0_69 = arith.constant 0 : index
    %c0_70 = arith.constant 0 : index
    %233 = vector.load %arg1[%c9, %c0_69, %c0_70] : memref<16x2x192xbf16, #tpu.memory_space<vmem>>, vector<1x2x192xbf16>
    %234 = vector.shape_cast %233 : vector<1x2x192xbf16> to vector<2x192xbf16>
    %cst_71 = arith.constant dense<0.000000e+00> : vector<2x128xf32>
    %235 = tpu.matmul %234, %3, %cst_71 {dimension_numbers = #tpu.dot_dimension_numbers<[1], [0], [0], [1], [0, 0, 1, 1], [], []>} : vector<2x192xbf16>, vector<192x128xbf16>, vector<2x128xf32> -> vector<2x128xf32>
    %236 = arith.truncf %231 : vector<2x32xf32> to vector<2x32xbf16>
    %cst_72 = arith.constant dense<0.000000e+00> : vector<2x128xf32>
    %237 = tpu.matmul %236, %4, %cst_72 {dimension_numbers = #tpu.dot_dimension_numbers<[1], [0], [0], [1], [0, 0, 1, 1], [], []>} : vector<2x32xbf16>, vector<32x128xbf16>, vector<2x128xf32> -> vector<2x128xf32>
    %238 = arith.addf %235, %237 : vector<2x128xf32>
    %239 = vector.broadcast %5 : vector<1x128xf32> to vector<2x128xf32>
    %240 = arith.addf %238, %239 : vector<2x128xf32>
    %241 = vector.extract_strided_slice %240 {offsets = [0, 0], sizes = [2, 96], strides = [1, 1]} : vector<2x128xf32> to vector<2x96xf32>
    %242 = arith.negf %241 : vector<2x96xf32>
    %243 = math.exp %242 : vector<2x96xf32>
    %cst_73 = arith.constant 1.000000e+00 : f32
    %244 = vector.broadcast %cst_73 : f32 to vector<2x96xf32>
    %245 = arith.addf %244, %243 : vector<2x96xf32>
    %246 = arith.divf %244, %245 : vector<2x96xf32>
    %247 = vector.extract_strided_slice %240 {offsets = [0, 96], sizes = [2, 32], strides = [1, 1]} : vector<2x128xf32> to vector<2x32xf32>
    %248 = math.tanh %247 : vector<2x32xf32>
    %249 = vector.extract_strided_slice %246 {offsets = [0, 0], sizes = [2, 32], strides = [1, 1]} : vector<2x96xf32> to vector<2x32xf32>
    %250 = vector.extract_strided_slice %246 {offsets = [0, 32], sizes = [2, 32], strides = [1, 1]} : vector<2x96xf32> to vector<2x32xf32>
    %251 = vector.extract_strided_slice %246 {offsets = [0, 64], sizes = [2, 32], strides = [1, 1]} : vector<2x96xf32> to vector<2x32xf32>
    %252 = arith.mulf %250, %229 : vector<2x32xf32>
    %253 = arith.mulf %249, %248 : vector<2x32xf32>
    %254 = arith.addf %252, %253 : vector<2x32xf32>
    %255 = math.tanh %254 : vector<2x32xf32>
    %256 = arith.mulf %251, %255 : vector<2x32xf32>
    %c18 = arith.constant 18 : index
    %c0_74 = arith.constant 0 : index
    %257 = vector.load %arg14[%c18, %c0_74] : memref<32x32xf32, #tpu.memory_space<vmem>>, vector<2x32xf32>
    tpu.vector_store %arg14[%c18, %c0_74], %256 {strides = array<i32>} : memref<32x32xf32, #tpu.memory_space<vmem>>, vector<2x32xf32>,
    %c10_75 = arith.constant 10 : index
    %c0_76 = arith.constant 0 : index
    %c0_77 = arith.constant 0 : index
    %258 = vector.load %arg1[%c10_75, %c0_76, %c0_77] : memref<16x2x192xbf16, #tpu.memory_space<vmem>>, vector<1x2x192xbf16>
    %259 = vector.shape_cast %258 : vector<1x2x192xbf16> to vector<2x192xbf16>
    %cst_78 = arith.constant dense<0.000000e+00> : vector<2x128xf32>
    %260 = tpu.matmul %259, %3, %cst_78 {dimension_numbers = #tpu.dot_dimension_numbers<[1], [0], [0], [1], [0, 0, 1, 1], [], []>} : vector<2x192xbf16>, vector<192x128xbf16>, vector<2x128xf32> -> vector<2x128xf32>
    %261 = arith.truncf %256 : vector<2x32xf32> to vector<2x32xbf16>
    %cst_79 = arith.constant dense<0.000000e+00> : vector<2x128xf32>
    %262 = tpu.matmul %261, %4, %cst_79 {dimension_numbers = #tpu.dot_dimension_numbers<[1], [0], [0], [1], [0, 0, 1, 1], [], []>} : vector<2x32xbf16>, vector<32x128xbf16>, vector<2x128xf32> -> vector<2x128xf32>
    %263 = arith.addf %260, %262 : vector<2x128xf32>
    %264 = vector.broadcast %5 : vector<1x128xf32> to vector<2x128xf32>
    %265 = arith.addf %263, %264 : vector<2x128xf32>
    %266 = vector.extract_strided_slice %265 {offsets = [0, 0], sizes = [2, 96], strides = [1, 1]} : vector<2x128xf32> to vector<2x96xf32>
    %267 = arith.negf %266 : vector<2x96xf32>
    %268 = math.exp %267 : vector<2x96xf32>
    %cst_80 = arith.constant 1.000000e+00 : f32
    %269 = vector.broadcast %cst_80 : f32 to vector<2x96xf32>
    %270 = arith.addf %269, %268 : vector<2x96xf32>
    %271 = arith.divf %269, %270 : vector<2x96xf32>
    %272 = vector.extract_strided_slice %265 {offsets = [0, 96], sizes = [2, 32], strides = [1, 1]} : vector<2x128xf32> to vector<2x32xf32>
    %273 = math.tanh %272 : vector<2x32xf32>
    %274 = vector.extract_strided_slice %271 {offsets = [0, 0], sizes = [2, 32], strides = [1, 1]} : vector<2x96xf32> to vector<2x32xf32>
    %275 = vector.extract_strided_slice %271 {offsets = [0, 32], sizes = [2, 32], strides = [1, 1]} : vector<2x96xf32> to vector<2x32xf32>
    %276 = vector.extract_strided_slice %271 {offsets = [0, 64], sizes = [2, 32], strides = [1, 1]} : vector<2x96xf32> to vector<2x32xf32>
    %277 = arith.mulf %275, %254 : vector<2x32xf32>
    %278 = arith.mulf %274, %273 : vector<2x32xf32>
    %279 = arith.addf %277, %278 : vector<2x32xf32>
    %280 = math.tanh %279 : vector<2x32xf32>
    %281 = arith.mulf %276, %280 : vector<2x32xf32>
    %c20 = arith.constant 20 : index
    %c0_81 = arith.constant 0 : index
    %282 = vector.load %arg14[%c20, %c0_81] : memref<32x32xf32, #tpu.memory_space<vmem>>, vector<2x32xf32>
    tpu.vector_store %arg14[%c20, %c0_81], %281 {strides = array<i32>} : memref<32x32xf32, #tpu.memory_space<vmem>>, vector<2x32xf32>,
    %c11 = arith.constant 11 : index
    %c0_82 = arith.constant 0 : index
    %c0_83 = arith.constant 0 : index
    %283 = vector.load %arg1[%c11, %c0_82, %c0_83] : memref<16x2x192xbf16, #tpu.memory_space<vmem>>, vector<1x2x192xbf16>
    %284 = vector.shape_cast %283 : vector<1x2x192xbf16> to vector<2x192xbf16>
    %cst_84 = arith.constant dense<0.000000e+00> : vector<2x128xf32>
    %285 = tpu.matmul %284, %3, %cst_84 {dimension_numbers = #tpu.dot_dimension_numbers<[1], [0], [0], [1], [0, 0, 1, 1], [], []>} : vector<2x192xbf16>, vector<192x128xbf16>, vector<2x128xf32> -> vector<2x128xf32>
    %286 = arith.truncf %281 : vector<2x32xf32> to vector<2x32xbf16>
    %cst_85 = arith.constant dense<0.000000e+00> : vector<2x128xf32>
    %287 = tpu.matmul %286, %4, %cst_85 {dimension_numbers = #tpu.dot_dimension_numbers<[1], [0], [0], [1], [0, 0, 1, 1], [], []>} : vector<2x32xbf16>, vector<32x128xbf16>, vector<2x128xf32> -> vector<2x128xf32>
    %288 = arith.addf %285, %287 : vector<2x128xf32>
    %289 = vector.broadcast %5 : vector<1x128xf32> to vector<2x128xf32>
    %290 = arith.addf %288, %289 : vector<2x128xf32>
    %291 = vector.extract_strided_slice %290 {offsets = [0, 0], sizes = [2, 96], strides = [1, 1]} : vector<2x128xf32> to vector<2x96xf32>
    %292 = arith.negf %291 : vector<2x96xf32>
    %293 = math.exp %292 : vector<2x96xf32>
    %cst_86 = arith.constant 1.000000e+00 : f32
    %294 = vector.broadcast %cst_86 : f32 to vector<2x96xf32>
    %295 = arith.addf %294, %293 : vector<2x96xf32>
    %296 = arith.divf %294, %295 : vector<2x96xf32>
    %297 = vector.extract_strided_slice %290 {offsets = [0, 96], sizes = [2, 32], strides = [1, 1]} : vector<2x128xf32> to vector<2x32xf32>
    %298 = math.tanh %297 : vector<2x32xf32>
    %299 = vector.extract_strided_slice %296 {offsets = [0, 0], sizes = [2, 32], strides = [1, 1]} : vector<2x96xf32> to vector<2x32xf32>
    %300 = vector.extract_strided_slice %296 {offsets = [0, 32], sizes = [2, 32], strides = [1, 1]} : vector<2x96xf32> to vector<2x32xf32>
    %301 = vector.extract_strided_slice %296 {offsets = [0, 64], sizes = [2, 32], strides = [1, 1]} : vector<2x96xf32> to vector<2x32xf32>
    %302 = arith.mulf %300, %279 : vector<2x32xf32>
    %303 = arith.mulf %299, %298 : vector<2x32xf32>
    %304 = arith.addf %302, %303 : vector<2x32xf32>
    %305 = math.tanh %304 : vector<2x32xf32>
    %306 = arith.mulf %301, %305 : vector<2x32xf32>
    %c22 = arith.constant 22 : index
    %c0_87 = arith.constant 0 : index
    %307 = vector.load %arg14[%c22, %c0_87] : memref<32x32xf32, #tpu.memory_space<vmem>>, vector<2x32xf32>
    tpu.vector_store %arg14[%c22, %c0_87], %306 {strides = array<i32>} : memref<32x32xf32, #tpu.memory_space<vmem>>, vector<2x32xf32>,
    %c12_88 = arith.constant 12 : index
    %c0_89 = arith.constant 0 : index
    %c0_90 = arith.constant 0 : index
    %308 = vector.load %arg1[%c12_88, %c0_89, %c0_90] : memref<16x2x192xbf16, #tpu.memory_space<vmem>>, vector<1x2x192xbf16>
    %309 = vector.shape_cast %308 : vector<1x2x192xbf16> to vector<2x192xbf16>
    %cst_91 = arith.constant dense<0.000000e+00> : vector<2x128xf32>
    %310 = tpu.matmul %309, %3, %cst_91 {dimension_numbers = #tpu.dot_dimension_numbers<[1], [0], [0], [1], [0, 0, 1, 1], [], []>} : vector<2x192xbf16>, vector<192x128xbf16>, vector<2x128xf32> -> vector<2x128xf32>
    %311 = arith.truncf %306 : vector<2x32xf32> to vector<2x32xbf16>
    %cst_92 = arith.constant dense<0.000000e+00> : vector<2x128xf32>
    %312 = tpu.matmul %311, %4, %cst_92 {dimension_numbers = #tpu.dot_dimension_numbers<[1], [0], [0], [1], [0, 0, 1, 1], [], []>} : vector<2x32xbf16>, vector<32x128xbf16>, vector<2x128xf32> -> vector<2x128xf32>
    %313 = arith.addf %310, %312 : vector<2x128xf32>
    %314 = vector.broadcast %5 : vector<1x128xf32> to vector<2x128xf32>
    %315 = arith.addf %313, %314 : vector<2x128xf32>
    %316 = vector.extract_strided_slice %315 {offsets = [0, 0], sizes = [2, 96], strides = [1, 1]} : vector<2x128xf32> to vector<2x96xf32>
    %317 = arith.negf %316 : vector<2x96xf32>
    %318 = math.exp %317 : vector<2x96xf32>
    %cst_93 = arith.constant 1.000000e+00 : f32
    %319 = vector.broadcast %cst_93 : f32 to vector<2x96xf32>
    %320 = arith.addf %319, %318 : vector<2x96xf32>
    %321 = arith.divf %319, %320 : vector<2x96xf32>
    %322 = vector.extract_strided_slice %315 {offsets = [0, 96], sizes = [2, 32], strides = [1, 1]} : vector<2x128xf32> to vector<2x32xf32>
    %323 = math.tanh %322 : vector<2x32xf32>
    %324 = vector.extract_strided_slice %321 {offsets = [0, 0], sizes = [2, 32], strides = [1, 1]} : vector<2x96xf32> to vector<2x32xf32>
    %325 = vector.extract_strided_slice %321 {offsets = [0, 32], sizes = [2, 32], strides = [1, 1]} : vector<2x96xf32> to vector<2x32xf32>
    %326 = vector.extract_strided_slice %321 {offsets = [0, 64], sizes = [2, 32], strides = [1, 1]} : vector<2x96xf32> to vector<2x32xf32>
    %327 = arith.mulf %325, %304 : vector<2x32xf32>
    %328 = arith.mulf %324, %323 : vector<2x32xf32>
    %329 = arith.addf %327, %328 : vector<2x32xf32>
    %330 = math.tanh %329 : vector<2x32xf32>
    %331 = arith.mulf %326, %330 : vector<2x32xf32>
    %c24 = arith.constant 24 : index
    %c0_94 = arith.constant 0 : index
    %332 = vector.load %arg14[%c24, %c0_94] : memref<32x32xf32, #tpu.memory_space<vmem>>, vector<2x32xf32>
    tpu.vector_store %arg14[%c24, %c0_94], %331 {strides = array<i32>} : memref<32x32xf32, #tpu.memory_space<vmem>>, vector<2x32xf32>,
    %c13 = arith.constant 13 : index
    %c0_95 = arith.constant 0 : index
    %c0_96 = arith.constant 0 : index
    %333 = vector.load %arg1[%c13, %c0_95, %c0_96] : memref<16x2x192xbf16, #tpu.memory_space<vmem>>, vector<1x2x192xbf16>
    %334 = vector.shape_cast %333 : vector<1x2x192xbf16> to vector<2x192xbf16>
    %cst_97 = arith.constant dense<0.000000e+00> : vector<2x128xf32>
    %335 = tpu.matmul %334, %3, %cst_97 {dimension_numbers = #tpu.dot_dimension_numbers<[1], [0], [0], [1], [0, 0, 1, 1], [], []>} : vector<2x192xbf16>, vector<192x128xbf16>, vector<2x128xf32> -> vector<2x128xf32>
    %336 = arith.truncf %331 : vector<2x32xf32> to vector<2x32xbf16>
    %cst_98 = arith.constant dense<0.000000e+00> : vector<2x128xf32>
    %337 = tpu.matmul %336, %4, %cst_98 {dimension_numbers = #tpu.dot_dimension_numbers<[1], [0], [0], [1], [0, 0, 1, 1], [], []>} : vector<2x32xbf16>, vector<32x128xbf16>, vector<2x128xf32> -> vector<2x128xf32>
    %338 = arith.addf %335, %337 : vector<2x128xf32>
    %339 = vector.broadcast %5 : vector<1x128xf32> to vector<2x128xf32>
    %340 = arith.addf %338, %339 : vector<2x128xf32>
    %341 = vector.extract_strided_slice %340 {offsets = [0, 0], sizes = [2, 96], strides = [1, 1]} : vector<2x128xf32> to vector<2x96xf32>
    %342 = arith.negf %341 : vector<2x96xf32>
    %343 = math.exp %342 : vector<2x96xf32>
    %cst_99 = arith.constant 1.000000e+00 : f32
    %344 = vector.broadcast %cst_99 : f32 to vector<2x96xf32>
    %345 = arith.addf %344, %343 : vector<2x96xf32>
    %346 = arith.divf %344, %345 : vector<2x96xf32>
    %347 = vector.extract_strided_slice %340 {offsets = [0, 96], sizes = [2, 32], strides = [1, 1]} : vector<2x128xf32> to vector<2x32xf32>
    %348 = math.tanh %347 : vector<2x32xf32>
    %349 = vector.extract_strided_slice %346 {offsets = [0, 0], sizes = [2, 32], strides = [1, 1]} : vector<2x96xf32> to vector<2x32xf32>
    %350 = vector.extract_strided_slice %346 {offsets = [0, 32], sizes = [2, 32], strides = [1, 1]} : vector<2x96xf32> to vector<2x32xf32>
    %351 = vector.extract_strided_slice %346 {offsets = [0, 64], sizes = [2, 32], strides = [1, 1]} : vector<2x96xf32> to vector<2x32xf32>
    %352 = arith.mulf %350, %329 : vector<2x32xf32>
    %353 = arith.mulf %349, %348 : vector<2x32xf32>
    %354 = arith.addf %352, %353 : vector<2x32xf32>
    %355 = math.tanh %354 : vector<2x32xf32>
    %356 = arith.mulf %351, %355 : vector<2x32xf32>
    %c26 = arith.constant 26 : index
    %c0_100 = arith.constant 0 : index
    %357 = vector.load %arg14[%c26, %c0_100] : memref<32x32xf32, #tpu.memory_space<vmem>>, vector<2x32xf32>
    tpu.vector_store %arg14[%c26, %c0_100], %356 {strides = array<i32>} : memref<32x32xf32, #tpu.memory_space<vmem>>, vector<2x32xf32>,
    %c14_101 = arith.constant 14 : index
    %c0_102 = arith.constant 0 : index
    %c0_103 = arith.constant 0 : index
    %358 = vector.load %arg1[%c14_101, %c0_102, %c0_103] : memref<16x2x192xbf16, #tpu.memory_space<vmem>>, vector<1x2x192xbf16>
    %359 = vector.shape_cast %358 : vector<1x2x192xbf16> to vector<2x192xbf16>
    %cst_104 = arith.constant dense<0.000000e+00> : vector<2x128xf32>
    %360 = tpu.matmul %359, %3, %cst_104 {dimension_numbers = #tpu.dot_dimension_numbers<[1], [0], [0], [1], [0, 0, 1, 1], [], []>} : vector<2x192xbf16>, vector<192x128xbf16>, vector<2x128xf32> -> vector<2x128xf32>
    %361 = arith.truncf %356 : vector<2x32xf32> to vector<2x32xbf16>
    %cst_105 = arith.constant dense<0.000000e+00> : vector<2x128xf32>
    %362 = tpu.matmul %361, %4, %cst_105 {dimension_numbers = #tpu.dot_dimension_numbers<[1], [0], [0], [1], [0, 0, 1, 1], [], []>} : vector<2x32xbf16>, vector<32x128xbf16>, vector<2x128xf32> -> vector<2x128xf32>
    %363 = arith.addf %360, %362 : vector<2x128xf32>
    %364 = vector.broadcast %5 : vector<1x128xf32> to vector<2x128xf32>
    %365 = arith.addf %363, %364 : vector<2x128xf32>
    %366 = vector.extract_strided_slice %365 {offsets = [0, 0], sizes = [2, 96], strides = [1, 1]} : vector<2x128xf32> to vector<2x96xf32>
    %367 = arith.negf %366 : vector<2x96xf32>
    %368 = math.exp %367 : vector<2x96xf32>
    %cst_106 = arith.constant 1.000000e+00 : f32
    %369 = vector.broadcast %cst_106 : f32 to vector<2x96xf32>
    %370 = arith.addf %369, %368 : vector<2x96xf32>
    %371 = arith.divf %369, %370 : vector<2x96xf32>
    %372 = vector.extract_strided_slice %365 {offsets = [0, 96], sizes = [2, 32], strides = [1, 1]} : vector<2x128xf32> to vector<2x32xf32>
    %373 = math.tanh %372 : vector<2x32xf32>
    %374 = vector.extract_strided_slice %371 {offsets = [0, 0], sizes = [2, 32], strides = [1, 1]} : vector<2x96xf32> to vector<2x32xf32>
    %375 = vector.extract_strided_slice %371 {offsets = [0, 32], sizes = [2, 32], strides = [1, 1]} : vector<2x96xf32> to vector<2x32xf32>
    %376 = vector.extract_strided_slice %371 {offsets = [0, 64], sizes = [2, 32], strides = [1, 1]} : vector<2x96xf32> to vector<2x32xf32>
    %377 = arith.mulf %375, %354 : vector<2x32xf32>
    %378 = arith.mulf %374, %373 : vector<2x32xf32>
    %379 = arith.addf %377, %378 : vector<2x32xf32>
    %380 = math.tanh %379 : vector<2x32xf32>
    %381 = arith.mulf %376, %380 : vector<2x32xf32>
    %c28 = arith.constant 28 : index
    %c0_107 = arith.constant 0 : index
    %382 = vector.load %arg14[%c28, %c0_107] : memref<32x32xf32, #tpu.memory_space<vmem>>, vector<2x32xf32>
    tpu.vector_store %arg14[%c28, %c0_107], %381 {strides = array<i32>} : memref<32x32xf32, #tpu.memory_space<vmem>>, vector<2x32xf32>,
    %c15 = arith.constant 15 : index
    %c0_108 = arith.constant 0 : index
    %c0_109 = arith.constant 0 : index
    %383 = vector.load %arg1[%c15, %c0_108, %c0_109] : memref<16x2x192xbf16, #tpu.memory_space<vmem>>, vector<1x2x192xbf16>
    %384 = vector.shape_cast %383 : vector<1x2x192xbf16> to vector<2x192xbf16>
    %cst_110 = arith.constant dense<0.000000e+00> : vector<2x128xf32>
    %385 = tpu.matmul %384, %3, %cst_110 {dimension_numbers = #tpu.dot_dimension_numbers<[1], [0], [0], [1], [0, 0, 1, 1], [], []>} : vector<2x192xbf16>, vector<192x128xbf16>, vector<2x128xf32> -> vector<2x128xf32>
    %386 = arith.truncf %381 : vector<2x32xf32> to vector<2x32xbf16>
    %cst_111 = arith.constant dense<0.000000e+00> : vector<2x128xf32>
    %387 = tpu.matmul %386, %4, %cst_111 {dimension_numbers = #tpu.dot_dimension_numbers<[1], [0], [0], [1], [0, 0, 1, 1], [], []>} : vector<2x32xbf16>, vector<32x128xbf16>, vector<2x128xf32> -> vector<2x128xf32>
    %388 = arith.addf %385, %387 : vector<2x128xf32>
    %389 = vector.broadcast %5 : vector<1x128xf32> to vector<2x128xf32>
    %390 = arith.addf %388, %389 : vector<2x128xf32>
    %391 = vector.extract_strided_slice %390 {offsets = [0, 0], sizes = [2, 96], strides = [1, 1]} : vector<2x128xf32> to vector<2x96xf32>
    %392 = arith.negf %391 : vector<2x96xf32>
    %393 = math.exp %392 : vector<2x96xf32>
    %cst_112 = arith.constant 1.000000e+00 : f32
    %394 = vector.broadcast %cst_112 : f32 to vector<2x96xf32>
    %395 = arith.addf %394, %393 : vector<2x96xf32>
    %396 = arith.divf %394, %395 : vector<2x96xf32>
    %397 = vector.extract_strided_slice %390 {offsets = [0, 96], sizes = [2, 32], strides = [1, 1]} : vector<2x128xf32> to vector<2x32xf32>
    %398 = math.tanh %397 : vector<2x32xf32>
    %399 = vector.extract_strided_slice %396 {offsets = [0, 0], sizes = [2, 32], strides = [1, 1]} : vector<2x96xf32> to vector<2x32xf32>
    %400 = vector.extract_strided_slice %396 {offsets = [0, 32], sizes = [2, 32], strides = [1, 1]} : vector<2x96xf32> to vector<2x32xf32>
    %401 = vector.extract_strided_slice %396 {offsets = [0, 64], sizes = [2, 32], strides = [1, 1]} : vector<2x96xf32> to vector<2x32xf32>
    %402 = arith.mulf %400, %379 : vector<2x32xf32>
    %403 = arith.mulf %399, %398 : vector<2x32xf32>
    %404 = arith.addf %402, %403 : vector<2x32xf32>
    %405 = math.tanh %404 : vector<2x32xf32>
    %406 = arith.mulf %401, %405 : vector<2x32xf32>
    %c30 = arith.constant 30 : index
    %c0_113 = arith.constant 0 : index
    %407 = vector.load %arg14[%c30, %c0_113] : memref<32x32xf32, #tpu.memory_space<vmem>>, vector<2x32xf32>
    tpu.vector_store %arg14[%c30, %c0_113], %406 {strides = array<i32>} : memref<32x32xf32, #tpu.memory_space<vmem>>, vector<2x32xf32>,
    %c0_114 = arith.constant 0 : index
    %c0_115 = arith.constant 0 : index
    %408 = vector.load %arg12[%c0_114, %c0_115] : memref<2x32xf32, #tpu.memory_space<vmem>>, vector<2x32xf32>
    tpu.vector_store %arg12[%c0_114, %c0_115], %406 {strides = array<i32>} : memref<2x32xf32, #tpu.memory_space<vmem>>, vector<2x32xf32>,
    %c0_116 = arith.constant 0 : index
    %c0_117 = arith.constant 0 : index
    %409 = vector.load %arg13[%c0_116, %c0_117] : memref<2x32xf32, #tpu.memory_space<vmem>>, vector<2x32xf32>
    tpu.vector_store %arg13[%c0_116, %c0_117], %404 {strides = array<i32>} : memref<2x32xf32, #tpu.memory_space<vmem>>, vector<2x32xf32>,
    %c0_118 = arith.constant 0 : index
    %c0_119 = arith.constant 0 : index
    %410 = vector.load %arg14[%c0_118, %c0_119] : memref<32x32xf32, #tpu.memory_space<vmem>>, vector<32x32xf32>
    %411 = arith.truncf %410 : vector<32x32xf32> to vector<32x32xbf16>
    %c0_120 = arith.constant 0 : index
    %c0_121 = arith.constant 0 : index
    %412 = vector.load %arg7[%c0_120, %c0_121] : memref<32x128xbf16, #tpu.memory_space<vmem>>, vector<32x128xbf16>
    %cst_122 = arith.constant dense<0.000000e+00> : vector<32x128xf32>
    %413 = tpu.matmul %411, %412, %cst_122 {dimension_numbers = #tpu.dot_dimension_numbers<[1], [0], [0], [1], [0, 0, 1, 1], [], []>} : vector<32x32xbf16>, vector<32x128xbf16>, vector<32x128xf32> -> vector<32x128xf32>
    %c0_123 = arith.constant 0 : index
    %c0_124 = arith.constant 0 : index
    %414 = vector.load %arg8[%c0_123, %c0_124] : memref<1x128xf32, #tpu.memory_space<vmem>>, vector<1x128xf32>
    %415 = vector.broadcast %414 : vector<1x128xf32> to vector<32x128xf32>
    %416 = arith.addf %413, %415 : vector<32x128xf32>
    %cst_125 = arith.constant dense<0xFF800000> : vector<32xf32>
    %417 = vector.multi_reduction <maximumf>, %416, %cst_125 [1] : vector<32x128xf32> to vector<32xf32>
    %418 = vector.shape_cast %417 : vector<32xf32> to vector<32x1xf32>
    %419 = vector.broadcast %418 : vector<32x1xf32> to vector<32x128xf32>
    %420 = arith.subf %416, %419 : vector<32x128xf32>
    %421 = math.exp %420 : vector<32x128xf32>
    %cst_126 = arith.constant dense<0.000000e+00> : vector<32xf32>
    %422 = vector.multi_reduction <add>, %421, %cst_126 [1] : vector<32x128xf32> to vector<32xf32>
    %423 = vector.shape_cast %422 : vector<32xf32> to vector<32x1xf32>
    %424 = vector.broadcast %423 : vector<32x1xf32> to vector<32x128xf32>
    %425 = arith.divf %421, %424 : vector<32x128xf32>
    %c0_127 = arith.constant 0 : index
    %c0_128 = arith.constant 0 : index
    %426 = vector.load %arg9[%c0_127, %c0_128] : memref<32x128xf32, #tpu.memory_space<vmem>>, vector<32x128xf32>
    tpu.vector_store %arg9[%c0_127, %c0_128], %425 {strides = array<i32>} : memref<32x128xf32, #tpu.memory_space<vmem>>, vector<32x128xf32>,
    %c1_i32 = arith.constant 1 : i32
    %427 = arith.cmpi eq, %arg0, %c1_i32 : i32
    %428 = arith.extui %427 : i1 to i32
    %c0_i32_129 = arith.constant 0 : i32
    %429 = arith.cmpi ne, %428, %c0_i32_129 : i32
    scf.if %429 {
      %c0_130 = arith.constant 0 : index
      %c0_131 = arith.constant 0 : index
      %430 = vector.load %arg10[%c0_130, %c0_131] : memref<2x32xf32, #tpu.memory_space<vmem>>, vector<2x32xf32>
      tpu.vector_store %arg10[%c0_130, %c0_131], %406 {strides = array<i32>} : memref<2x32xf32, #tpu.memory_space<vmem>>, vector<2x32xf32>,
      %c0_132 = arith.constant 0 : index
      %c0_133 = arith.constant 0 : index
      %431 = vector.load %arg11[%c0_132, %c0_133] : memref<2x32xf32, #tpu.memory_space<vmem>>, vector<2x32xf32>
      tpu.vector_store %arg11[%c0_132, %c0_133], %404 {strides = array<i32>} : memref<2x32xf32, #tpu.memory_space<vmem>>, vector<2x32xf32>,
    } else {
    }
    return
  }
  func.func @transform_0(%arg0: i32) -> (i32, i32, i32) {
    %c0_i32 = arith.constant 0 : i32
    %c0_i32_0 = arith.constant 0 : i32
    %c0_i32_1 = arith.constant 0 : i32
    return %arg0, %c0_i32, %c0_i32_0 : i32, i32, i32
  }
  func.func @transform_1(%arg0: i32) -> (i32, i32) {
    %c0_i32 = arith.constant 0 : i32
    %c0_i32_0 = arith.constant 0 : i32
    %c0_i32_1 = arith.constant 0 : i32
    return %c0_i32, %c0_i32_0 : i32, i32
  }
  func.func @transform_2(%arg0: i32) -> (i32, i32) {
    %c0_i32 = arith.constant 0 : i32
    %c0_i32_0 = arith.constant 0 : i32
    %c0_i32_1 = arith.constant 0 : i32
    return %c0_i32, %c0_i32_0 : i32, i32
  }
  func.func @transform_3(%arg0: i32) -> (i32, i32) {
    %c0_i32 = arith.constant 0 : i32
    %c0_i32_0 = arith.constant 0 : i32
    %c0_i32_1 = arith.constant 0 : i32
    return %c0_i32, %c0_i32_0 : i32, i32
  }
  func.func @transform_4(%arg0: i32) -> (i32, i32) {
    %c0_i32 = arith.constant 0 : i32
    %c0_i32_0 = arith.constant 0 : i32
    %c0_i32_1 = arith.constant 0 : i32
    return %c0_i32, %c0_i32_0 : i32, i32
  }
  func.func @transform_5(%arg0: i32) -> (i32, i32) {
    %c0_i32 = arith.constant 0 : i32
    %c0_i32_0 = arith.constant 0 : i32
    %c0_i32_1 = arith.constant 0 : i32
    return %c0_i32, %c0_i32_0 : i32, i32
  }
  func.func @transform_6(%arg0: i32) -> (i32, i32) {
    %c0_i32 = arith.constant 0 : i32
    %c0_i32_0 = arith.constant 0 : i32
    %c0_i32_1 = arith.constant 0 : i32
    return %c0_i32, %c0_i32_0 : i32, i32
  }
  func.func @transform_7(%arg0: i32) -> (i32, i32) {
    %c0_i32 = arith.constant 0 : i32
    %c0_i32_0 = arith.constant 0 : i32
    %c0_i32_1 = arith.constant 0 : i32
    return %c0_i32, %c0_i32_0 : i32, i32
  }
  func.func @transform_8(%arg0: i32) -> (i32, i32) {
    %c0_i32 = arith.constant 0 : i32
    %c0_i32_0 = arith.constant 0 : i32
    return %arg0, %c0_i32 : i32, i32
  }
  func.func @transform_9(%arg0: i32) -> (i32, i32) {
    %c0_i32 = arith.constant 0 : i32
    %c0_i32_0 = arith.constant 0 : i32
    %c0_i32_1 = arith.constant 0 : i32
    return %c0_i32, %c0_i32_0 : i32, i32
  }
  func.func @transform_10(%arg0: i32) -> (i32, i32) {
    %c0_i32 = arith.constant 0 : i32
    %c0_i32_0 = arith.constant 0 : i32
    %c0_i32_1 = arith.constant 0 : i32
    return %c0_i32, %c0_i32_0 : i32, i32
  }
}

</mosaic_0001>

<bundles_post_ra>
// kernel: tpu_custom_call.1
= control target key start
LH: loop header
LB: loop body
LE: loop exit
PB: predicated region body
PF: predicated region fallthrough
CT: control target
= control target key end

     0   :  { %s5642_s0 = inlined_call_operand.hbm [shape: bf16[32,2,192], index: 0, kind: input, shape index: {}]   ;;  %s5643_s1 = inlined_call_operand.hbm [shape: f32[2,32], index: 1, kind: input, shape index: {}]   ;;  %s5644_s2 = inlined_call_operand.hbm [shape: f32[2,32], index: 2, kind: input, shape index: {}]   ;;  %s5645_s3 = inlined_call_operand.hbm [shape: bf16[192,128], index: 3, kind: input, shape index: {}]   ;;  %s5646_s4 = inlined_call_operand.hbm [shape: bf16[32,128], index: 4, kind: input, shape index: {}]   ;;  %s5647_s5 = inlined_call_operand.hbm [shape: f32[1,128], index: 5, kind: input, shape index: {}]   ;;  %s5648_s6 = inlined_call_operand.hbm [shape: bf16[32,128], index: 6, kind: input, shape index: {}]   ;;  %s5649_s7 = inlined_call_operand.hbm [shape: f32[1,128], index: 7, kind: input, shape index: {}]   ;;  %s5650_s8 = inlined_call_operand.hbm [shape: f32[64,128], index: 8, kind: output, shape index: {0}]   ;;  %s5651_s9 = inlined_call_operand.hbm [shape: f32[2,32], index: 9, kind: output, shape index: {1}]   ;;  %s5652_s10 = inlined_call_operand.hbm [shape: f32[2,32], index: 10, kind: output, shape index: {2}]  }
   0x1   :  { %5661 = sst [smem:[#allocation30_spill]] %s5643_s1 }
   0x2   :  { %5662 = sst [smem:[#allocation31_spill]] %s5644_s2 }
   0x3   :  { %5663 = sst [smem:[#allocation32_spill]] %s5645_s3 }
   0x4   :  { %16 = vsyncpa [#allocation6], 0 }
   0x5   :  { %18 = vsyncpa [#allocation6 + $0x1], 0 }
   0x6   :  { %19 = vsyncpa [#allocation9], 0 }
   0x7   :  { %20 = vsyncpa [#allocation12], 0 }
   0x8   :  { %21 = vsyncpa [#allocation15], 0 }
   0x9   :  { %22 = vsyncpa [#allocation18], 0 }
   0xa   :  { %23 = vsyncpa [#allocation7], 0 }
   0xb   :  { %25 = vsyncpa [#allocation7 + $0x1], 0 }
   0xc   :  { %26 = vsyncpa [#allocation21], 0  ;;  %s4368_s13 = smov 0   ;;  %s4370_s14 = smov 0  }
   0xd   :  { %s4372_s15 = smov 0   ;;  %s4374_s16 = smov 0  }
   0xe LB: > { %s4289_s17 = smov [#allocation8]   ;;  %s4389_s19 = sadd.s32 4294967295, %s4287_s16   ;;  %s4287_s16 = sphi %s4374_s16, %s5701_s16   ;;  %s4283_s15 = sphi %s4372_s15, %s5700_s15   ;;  %s4279_s14 = sphi %s4370_s14, %s5699_s14   ;;  %s4275_s13 = sphi %s4368_s13, %s5698_s13  }
   0xf   : > { %s291_s18 = sshll.u32 %s4289_s17, 4  ;;  %p3275_p0 = scmp.ge.s32.totalorder %s4287_s16, 1  ;;  %s292_s18 = int_to_ptr.vmem [resolvable:$true] %s291_s18 }
  0x10   : > { %p5653_p1 = scmp.eq.s32.totalorder %s4389_s19, 0  ;;  %p278_p2 = scmp.lt.s32.totalorder %s4287_s16, 3 }
  0x11   : > { %s4290_s21 = smov [#allocation11]   ;;  %s4291_s24 = smov [#allocation14]  }
  0x12   : > { %p4395_p4 = pnand %p3275_p0, %p278_p2  ;;  %s312_s22 = sshll.u32 %s4290_s21, 4  ;;  %s4402_s22 = int_to_ptr.vmem [resolvable:$true] %s312_s22 }
  0x13   : > { %s339_s25 = sshll.u32 %s4291_s24, 4  ;;  %s5666_s1 = sld [smem:[#allocation30_spill]]  ;;  %s4410_s25 = int_to_ptr.vmem [resolvable:$true] %s339_s25 }
  0x14   : > { %s5664_s20 = scalar_select %p4395_p4, 1, 0 }
  0x15   : > { %p3639_p6 = pneg %p4395_p4 }
  0x17   : > { %p4406_p7 = pnand %p3639_p6, %p5653_p1 }
  0x19   : > { %s3923_s28 = scalar_lea.hbm %s5666_s1, 32  ;;  %p4420_p9 = pneg %p4406_p7 }
  0x1a   : > { %p3924_p8 = scmp.ne.s32.totalorder %s5666_s1, %s3923_s28  ;;  %p3930_p12 = scmp.lt.u32.totalorder %s3923_s28, %s5666_s1 }
  0x1c   : > { %p3926_p10 = pnand %p4420_p9, %p3924_p8 }
  0x1e   : > { %p3927_p11 = pneg %p3926_p10 }
  0x20   : > { %p3932_p13 = pnand %p3930_p12, %p3927_p11 }
  0x22   : > { %3935 = shalt.err (!%p3932_p13)
}
  0x23   : > { %s3936_s21 = scalar_lea.vmem %s292_s18, 32  ;;  %p3944_p5 = scmp.lt.s32.totalorder %s292_s18, %s292_s18 }
  0x24   : > { %p3937_p0 = scmp.ne.s32.totalorder %s292_s18, %s3936_s21  ;;  %p3945_p3 = scmp.lt.s32.totalorder %s3936_s21, %s3936_s21 }
  0x26   : > { %p3939_p2 = pnand %p3937_p0, %p4420_p9  ;;  %p3946_p1 = por %p3945_p3, %p3944_p5 }
  0x28   : > { %p3940_p6 = pneg %p3939_p2 }
  0x2a   : > { %p3947_p4 = pnand %p3946_p1, %p3940_p6 }
  0x2c   : > { %3950 = shalt.err (!%p3947_p4)
}
  0x2d   : > { %3642 = dma.hbm_to_vmem [thread:$0]  (!%p4406_p7), %s5666_s1, 32, %s292_s18, [#allocation9]  }
  0x2e   : > { %s5668_s3 = sld [smem:[#allocation32_spill]] }
  0x34   : > { %s3951_s29 = scalar_lea.hbm %s5668_s3, 1536 }
  0x35   : > { %p3952_p8 = scmp.ne.s32.totalorder %s5668_s3, %s3951_s29  ;;  %p3958_p1 = scmp.lt.u32.totalorder %s3951_s29, %s5668_s3 }
  0x37   : > { %p3954_p10 = pnand %p3952_p8, %p4420_p9 }
  0x39   : > { %p3955_p3 = pneg %p3954_p10 }
  0x3b   : > { %p3960_p4 = pnand %p3958_p1, %p3955_p3 }
  0x3d   : > { %3963 = shalt.err (!%p3960_p4)
}
  0x3e   : > { %s3964_s18 = scalar_lea.vmem %s4402_s22, 1536  ;;  %p3972_p13 = scmp.lt.s32.totalorder %s4402_s22, %s4402_s22 }
  0x3f   : > { %p3965_p5 = scmp.ne.s32.totalorder %s4402_s22, %s3964_s18  ;;  %p3973_p0 = scmp.lt.s32.totalorder %s3964_s18, %s3964_s18 }
  0x41   : > { %p3967_p11 = pnand %p3965_p5, %p4420_p9  ;;  %p3974_p2 = por %p3973_p0, %p3972_p13 }
  0x43   : > { %p3968_p12 = pneg %p3967_p11 }
  0x45   : > { %p3975_p6 = pnand %p3974_p2, %p3968_p12 }
  0x47   : > { %3978 = shalt.err (!%p3975_p6)
}
  0x48   : > { %s5655_s24 = smov 64   ;;  %s5657_s26 = smov 4  }
  0x49   : > { %3648 = dma.hbm_to_vmem [thread:$0]  (!%p4406_p7), %s5668_s3, 1536, %s4402_s22, [#allocation12], %s5655_s24, %s5655_s24, %s5657_s26  }
  0x4a   : > { %s3979_s12 = scalar_lea.hbm %s5647_s5, 16 }
  0x4b   : > { %p3980_p8 = scmp.ne.s32.totalorder %s5647_s5, %s3979_s12  ;;  %p3986_p1 = scmp.lt.u32.totalorder %s3979_s12, %s5647_s5 }
  0x4d   : > { %p3982_p10 = pnand %p3980_p8, %p4420_p9 }
  0x4f   : > { %p3983_p3 = pneg %p3982_p10 }
  0x51   : > { %p3988_p4 = pnand %p3986_p1, %p3983_p3 }
  0x53   : > { %3991 = shalt.err (!%p3988_p4)
}
  0x54   : > { %s3992_s22 = scalar_lea.vmem %s4410_s25, 16  ;;  %s3999_s27 = scalar_lea.vmem %s4410_s25, 32 }
  0x55   : > { %p3993_p5 = scmp.ne.s32.totalorder %s4410_s25, %s3992_s22  ;;  %p4000_p13 = scmp.lt.s32.totalorder %s4410_s25, %s4410_s25 }
  0x56   : > { %p4001_p0 = scmp.lt.s32.totalorder %s3999_s27, %s3992_s22 }
  0x57   : > { %p3995_p11 = pnand %p3993_p5, %p4420_p9 }
  0x58   : > { %p4002_p2 = por %p4001_p0, %p4000_p13 }
  0x59   : > { %p3996_p12 = pneg %p3995_p11 }
  0x5b   : > { %p4003_p6 = pnand %p4002_p2, %p3996_p12 }
  0x5d   : > { %4006 = shalt.err (!%p4003_p6)
}
  0x5e   : > { %3654 = dma.hbm_to_vmem [thread:$0]  (!%p4406_p7), %s5647_s5, 16, %s4410_s25, [#allocation15]  }
  0x5f   : > { %s4294_s29 = smov [#allocation10]   ;;  %s4295_s12 = smov [#allocation13]  }
  0x60   : > { %s302_s30 = sshll.u32 %s4294_s29, 4  ;;  %s325_s17 = sshll.u32 %s4295_s12, 4  ;;  %s303_s30 = int_to_ptr.vmem [resolvable:$true] %s302_s30  ;;  %s326_s17 = int_to_ptr.vmem [resolvable:$true] %s325_s17 }
  0x61   : > { %s5669_s2 = sld [smem:[#allocation31_spill]] }
  0x67   : > { %s4007_s22 = scalar_lea.hbm %s5669_s2, 32 }
  0x68   : > { %p4008_p8 = scmp.ne.s32.totalorder %s5669_s2, %s4007_s22  ;;  %p4014_p1 = scmp.lt.u32.totalorder %s4007_s22, %s5669_s2 }
  0x6a   : > { %p4010_p10 = pnand %p4008_p8, %p4420_p9 }
  0x6c   : > { %p4011_p3 = pneg %p4010_p10 }
  0x6e   : > { %p4016_p4 = pnand %p4014_p1, %p4011_p3 }
  0x70   : > { %4019 = shalt.err (!%p4016_p4)
}
  0x71   : > { %s4020_s25 = scalar_lea.vmem %s303_s30, 32  ;;  %p4028_p13 = scmp.lt.s32.totalorder %s303_s30, %s303_s30 }
  0x72   : > { %p4021_p5 = scmp.ne.s32.totalorder %s303_s30, %s4020_s25  ;;  %p4029_p0 = scmp.lt.s32.totalorder %s4020_s25, %s4020_s25 }
  0x74   : > { %p4023_p11 = pnand %p4021_p5, %p4420_p9  ;;  %p4030_p2 = por %p4029_p0, %p4028_p13 }
  0x76   : > { %p4024_p12 = pneg %p4023_p11 }
  0x78   : > { %p4031_p6 = pnand %p4030_p2, %p4024_p12 }
  0x7a   : > { %4034 = shalt.err (!%p4031_p6)
}
  0x7b   : > { %3645 = dma.hbm_to_vmem [thread:$0]  (!%p4406_p7), %s5669_s2, 32, %s303_s30, [#allocation9]  }
  0x7c   : > { %s4035_s12 = scalar_lea.hbm %s5646_s4, 256 }
  0x7d   : > { %p4036_p8 = scmp.ne.s32.totalorder %s5646_s4, %s4035_s12  ;;  %p4042_p1 = scmp.lt.u32.totalorder %s4035_s12, %s5646_s4 }
  0x7f   : > { %p4038_p10 = pnand %p4036_p8, %p4420_p9 }
  0x81   : > { %p4039_p3 = pneg %p4038_p10 }
  0x83   : > { %p4044_p4 = pnand %p4042_p1, %p4039_p3 }
  0x85   : > { %4047 = shalt.err (!%p4044_p4)
}
  0x86   : > { %s4048_s1 = scalar_lea.vmem %s326_s17, 256  ;;  %p4056_p13 = scmp.lt.s32.totalorder %s326_s17, %s326_s17 }
  0x87   : > { %p4049_p5 = scmp.ne.s32.totalorder %s326_s17, %s4048_s1  ;;  %p4057_p0 = scmp.lt.s32.totalorder %s4048_s1, %s4048_s1 }
  0x89   : > { %p4051_p11 = pnand %p4049_p5, %p4420_p9  ;;  %p4058_p2 = por %p4057_p0, %p4056_p13 }
  0x8b   : > { %p4052_p12 = pneg %p4051_p11 }
  0x8d   : > { %p4059_p6 = pnand %p4058_p2, %p4052_p12 }
  0x8f   : > { %4062 = shalt.err (!%p4059_p6)
}
  0x90   : > { %s5670_s30 = smov 4   ;;  %s5671_s25 = smov 64  }
  0x91   : > { %3651 = dma.hbm_to_vmem [thread:$0]  (!%p4406_p7), %s5646_s4, 256, %s326_s17, [#allocation12], %s5671_s25, %s5671_s25, %s5670_s30  }
  0x92   : > { %s4296_s26 = smov [#allocation16]   ;;  %s4297_s12 = smov [#allocation17]  }
  0x93   : > { %s349_s29 = sshll.u32 %s4296_s26, 4  ;;  %s363_s21 = sshll.u32 %s4297_s12, 4  ;;  %s350_s29 = int_to_ptr.vmem [resolvable:$true] %s349_s29  ;;  %s364_s21 = int_to_ptr.vmem [resolvable:$true] %s363_s21 }
  0x94   : > { %s4063_s27 = scalar_lea.hbm %s5648_s6, 256 }
  0x95   : > { %p4064_p8 = scmp.ne.s32.totalorder %s5648_s6, %s4063_s27  ;;  %p4070_p1 = scmp.lt.u32.totalorder %s4063_s27, %s5648_s6 }
  0x97   : > { %p4066_p10 = pnand %p4064_p8, %p4420_p9 }
  0x99   : > { %p4067_p3 = pneg %p4066_p10 }
  0x9b   : > { %p4072_p4 = pnand %p4070_p1, %p4067_p3 }
  0x9d   : > { %4075 = shalt.err (!%p4072_p4)
}
  0x9e   : > { %s4076_s17 = scalar_lea.vmem %s350_s29, 256  ;;  %p4084_p13 = scmp.lt.s32.totalorder %s350_s29, %s350_s29 }
  0x9f   : > { %p4077_p5 = scmp.ne.s32.totalorder %s350_s29, %s4076_s17  ;;  %p4085_p0 = scmp.lt.s32.totalorder %s4076_s17, %s4076_s17 }
  0xa1   : > { %p4079_p11 = pnand %p4077_p5, %p4420_p9  ;;  %p4086_p2 = por %p4085_p0, %p4084_p13 }
  0xa3   : > { %p4080_p12 = pneg %p4079_p11 }
  0xa5   : > { %p4087_p6 = pnand %p4086_p2, %p4080_p12 }
  0xa7   : > { %4090 = shalt.err (!%p4087_p6)
}
  0xa8   : > { %3657 = dma.hbm_to_vmem [thread:$0]  (!%p4406_p7), %s5648_s6, 256, %s350_s29, [#allocation15], %s5671_s25, %s5671_s25, %s5670_s30  }
  0xa9   : > { %s4091_s12 = scalar_lea.hbm %s5649_s7, 16 }
  0xaa   : > { %p4092_p8 = scmp.ne.s32.totalorder %s5649_s7, %s4091_s12  ;;  %p4098_p1 = scmp.lt.u32.totalorder %s4091_s12, %s5649_s7 }
  0xac   : > { %p4094_p10 = pnand %p4092_p8, %p4420_p9 }
  0xae   : > { %p4095_p3 = pneg %p4094_p10 }
  0xb0   : > { %p4100_p4 = pnand %p4098_p1, %p4095_p3 }
  0xb2   : > { %4103 = shalt.err (!%p4100_p4)
}
  0xb3   : > { %s4104_s24 = scalar_lea.vmem %s364_s21, 16  ;;  %s4111_s30 = scalar_lea.vmem %s364_s21, 32 }
  0xb4   : > { %p4105_p5 = scmp.ne.s32.totalorder %s364_s21, %s4104_s24  ;;  %p4112_p13 = scmp.lt.s32.totalorder %s364_s21, %s364_s21 }
  0xb5   : > { %p4113_p0 = scmp.lt.s32.totalorder %s4111_s30, %s4104_s24 }
  0xb6   : > { %p4107_p11 = pnand %p4105_p5, %p4420_p9 }
  0xb7   : > { %p4114_p2 = por %p4113_p0, %p4112_p13 }
  0xb8   : > { %p4108_p12 = pneg %p4107_p11 }
  0xba   : > { %p4115_p6 = pnand %p4114_p2, %p4108_p12 }
  0xbc   : > { %4118 = shalt.err (!%p4115_p6)
}
  0xbd   : > { %3660 = dma.hbm_to_vmem [thread:$0]  (!%p4406_p7), %s5649_s7, 16, %s364_s21, [#allocation18]  }
  0xbe   : > { %s3274_s23 = sadd.s32 4294967294, %s4287_s16   ;;  %s4566_s11 = sadd.s32 1, %s4287_s16  }
  0xbf   : > { %s39_s17 = sadd.s32 1, %s4283_s15  ;;  %s36_s2 = ssub.s32 %s4287_s16, %s4566_s11 }
  0xc0   : > { %p46_p9 = scmp.ne.s32.totalorder %s4283_s15, %s4279_s14  ;;  %p37_p8 = scmp.eq.s32.totalorder %s36_s2, 0 }
  0xc1   : > { %p47_p10 = scmp.eq.s32.totalorder %s4287_s16, 0  ;;  %p52_p3 = scmp.ne.s32.totalorder %s4279_s14, %s4275_s13 }
  0xc2   : > { %p5659_p1 = scmp.eq.s32.totalorder %s4389_s19, 1  ;;  %p5672_p5 = scmp.eq.s32.totalorder %s4389_s19, 0 }
  0xc3   : > { %s4578_s3 = scalar_select %p37_p8, %s4283_s15, %s39_s17  }
  0xc4   : > { %p48_p4 = por %p47_p10, %p46_p9  ;;  %p4582_p11 = por %p5672_p5, %p52_p3 }
  0xc5   : > { %p4588_p7 = por %p5659_p1, %p46_p9  ;;  %p229_p12 = scmp.eq.s32.totalorder %s3274_s23, 1 }
  0xc6   : > { %p3676_p13 = scmp.lt.s32.totalorder %s4287_s16, 2  ;;  %s374_s26 = sand.u32 1, %s4283_s15  }
  0xc7   : > { %s5674_s21 = scalar_select %p4588_p7, 1, 0 }
  0xc8   : > { %p4594_p0 = por %p229_p12, %p52_p3  ;;  %s3284_s18 = sshll.u32 %s374_s26, 5 }
  0xc9   : > { %s3409_s22 = sshll.u32 %s4287_s16, 9  ;;  %s378_s30 = scalar_lea.vmem [#allocation5], %s3284_s18 }
  0xca   : > { %s5675_s12 = scalar_select %p4594_p0, 1, 0 }
  0xcb   : > { %s4602_s24 = scalar_lea.hbm %s5642_s0, %s3409_s22  ;;  %s386_s25 = sshll.u32 %s378_s30, 4  ;;  %s4608_s25 = int_to_ptr.vmem [resolvable:$true] %s386_s25 }
  0xcc   : > { %p4604_p2 = pnand %p3676_p13, %p48_p4  ;;  %s4610_s23 = scalar_lea.sflag [#allocation6], %s374_s26 }
  0xcd   : > { %s4119_s17 = scalar_lea.hbm %s4602_s24, 512  ;;  %s4124_s22 = scalar_lea.hbm %s5642_s0, 1024 }
  0xce   : > { %p4120_p6 = scmp.ne.s32.totalorder %s4602_s24, %s4119_s17  ;;  %p4121_p9 = pneg %p4604_p2 }
  0xcf   : > { %p4125_p3 = scmp.lt.u32.totalorder %s4602_s24, %s5642_s0  ;;  %p4126_p4 = scmp.lt.u32.totalorder %s4124_s22, %s4119_s17 }
  0xd0   : > { %p4122_p8 = pnand %p4121_p9, %p4120_p6  ;;  %p4128_p12 = scmp.lt.u32.totalorder %s4119_s17, %s4602_s24 }
  0xd1   : > { %p4127_p5 = por %p4126_p4, %p4125_p3 }
  0xd2   : > { %p4123_p10 = pneg %p4122_p8 }
  0xd3   : > { %p4129_p13 = por %p4128_p12, %p4127_p5 }
  0xd5   : > { %p4130_p1 = pnand %p4129_p13, %p4123_p10 }
  0xd7   : > { %4133 = shalt.err (!%p4130_p1)
}
  0xd8   : > { %s4134_s26 = scalar_lea.vmem %s4608_s25, 512  ;;  %s4298_s30 = smov [#allocation5]  }
  0xd9   : > { %p4135_p6 = scmp.ne.s32.totalorder %s4608_s25, %s4134_s26  ;;  %s4139_s2 = sshll.u32 %s4298_s30, 4  ;;  %s4140_s2 = int_to_ptr.vmem [resolvable:$false] %s4139_s2 }
  0xda   : > { %s4141_s18 = scalar_lea.vmem %s4140_s2, 1024  ;;  %p4142_p7 = scmp.lt.s32.totalorder %s4608_s25, %s4140_s2 }
  0xdb   : > { %p4137_p8 = pnand %p4135_p6, %p4121_p9  ;;  %p4143_p3 = scmp.lt.s32.totalorder %s4141_s18, %s4134_s26 }
  0xdd   : > { %p4138_p0 = pneg %p4137_p8  ;;  %p4144_p4 = por %p4143_p3, %p4142_p7 }
  0xdf   : > { %p4145_p5 = pnand %p4144_p4, %p4138_p0 }
  0xe1   : > { %4148 = shalt.err (!%p4145_p5)
}
  0xe2   : > { %s4299_s17 = smov 32   ;;  %s4300_s22 = smov 2  }
  0xe3   : > { %3664 = dma.hbm_to_vmem [thread:$0]  (!%p4604_p2), %s4602_s24, 512, %s4608_s25, %s4610_s23, %s4299_s17, %s4299_s17, %s4300_s22  }
  0xe4   : > { %p5677_p1 = scmp.ne.s32.totalorder %s5664_s20, 0 }
  0xe5   : > { %s4641_s27 = sand.u32 (!%p5677_p1), 1, %s4279_s14  }
  0xe6   : > { %398 = sbr.rel (%p5677_p1) target bundleno = 12948 (0x3294), region = 52  ;;  %s3289_s1 = sshll.u32 (!%p5677_p1), %s4641_s27, 5 }
  0xe7   : > { %s401_s26 = scalar_lea.sflag (!%p5677_p1), [#allocation6], %s4641_s27  ;;  %s4645_s30 = scalar_lea.vmem (!%p5677_p1), [#allocation5], %s3289_s1 }
  0xed   : > { %4246 = dma.done.wait (%p4582_p11), %s401_s26, 512  }
  0xee   : > { %4248 = vsyncadd (%p4582_p11), %s401_s26, 4294966784  ;;  %p5678_p7 = scmp.eq.s32.totalorder %s4389_s19, 0 }
  0xf0   : > { %4250 = dma.done.wait (%p5678_p7), [#allocation9], 64   ;;  %p5679_p0 = pmov %p5678_p7 }
  0xf2   : > { %4252 = vsyncadd (%p5679_p0), [#allocation9], 4294967232  ;;  %p5680_p2 = pmov %p5679_p0 }
  0xf3   : > { %p5681_p9 = pmov %p5679_p0 }
  0xf4   : > { %4254 = dma.done.wait (%p5680_p2), [#allocation12], 1792  }
  0xf5   : > { %4256 = vsyncadd (%p5681_p9), [#allocation12], 4294965504  ;;  %p5682_p10 = pmov %p5679_p0 }
  0xf6   : > { %p5683_p12 = pmov %p5679_p0 }
  0xf7   : > { %4258 = dma.done.wait (%p5682_p10), [#allocation15], 272  }
  0xf8   : > { %4260 = vsyncadd (%p5683_p12), [#allocation15], 4294967024  ;;  %p5684_p11 = pmov %p5679_p0 }
  0xf9   : > { %p5685_p13 = pmov %p5679_p0 }
  0xfa   : > { %4262 = dma.done.wait (%p5684_p11), [#allocation18], 16  }
  0xfb   : > { %4264 = vsyncadd (%p5685_p13), [#allocation18], 4294967280  ;;  %s4667_s20 = scalar_lea.vmem [#allocation19], %s3289_s1  ;;  %p5686_p6 = scmp.ne.s32.totalorder %s4389_s19, 0 }
  0xfc   : > { %v476_v0 = vld [vmem:[#allocation8] sm:$0x3] (!%p5686_p6)  ;;  %vm477_vm0 = vcmask (!%p5686_p6), 254976   ;;  %v479_v1 = vld [vmem:[#allocation10] sm:$0x3] (!%p5686_p6) }
  0xfd   : > { %475 = sbr.rel (%p5686_p6) target bundleno = 260 (0x104), region = 88  ;;  %478 = vst.msk [vmem:[#allocation2] sm:$0x3] (!%p5686_p6), %vm477_vm0, %v476_v0  ;;  %480 = vst.msk [vmem:[#allocation3] sm:$0x3] (!%p5686_p6), %vm477_vm0, %v479_v1 }
 0x104 PF: > { %v4671_v2 = vld [vmem:[#allocation11] sm:$0xff]   ;;  %v4301_v3 = vmov 0   ;;  %v4675_v4 = vld [vmem:[#allocation11 + $0x8] sm:$0xff]   ;;  %v4302_v5 = vmov 0.0   ;;  %vm4303_vm1 = vmmov 0   ;;  %v4682_v6 = vld [vmem:[#allocation11 + $0x10] sm:$0xff]   ;;  %v582_v10 = vlaneseq }
 0x105   : > { %670 = vmatprep.subr.bf16.mxu1 %v4301_v3  ;;  %3463 = vmatprep.subr.bf16.mxu0 %v4302_v5  ;;  %v4685_v7 = vld [vmem:[#allocation11 + $0x18] sm:$0xff]   ;;  %v4688_v8 = vld [vmem:[#allocation13] sm:$0xff]   ;;  %v4692_v9 = vld [vmem:[#allocation13 + $0x8] sm:$0xff]   ;;  %vm526_vm2 = vcmask 261120   ;;  %v4304_v15 = vmov 1966171168  }
 0x106   : > { %671 = vmatpush1.bf16.msra.mxu1 %v4671_v2  ;;  %3467 = vmatprep.mubr.msk.bf16.mxu0 %vm4303_vm1, %v4302_v5  ;;  %v510_v11 = vld [vmem:[#allocation2] sm:$0x3]  ;;  %v4696_v12 = vld [vmem:[#allocation11 + $0x20] sm:$0xff]   ;;  %v580_v16 = vunpack.c.l.s4 %v4304_v15  ;;  %v583_v17 = vshrl.u32 %v582_v10, 7  ;;  %v4703_v18 = vld [vmem:[#allocation11 + $0x28] sm:$0xff]   ;;  %vm666_vm3 = vcmask 523264  }
 0x107   : > { %672 = vmatprep.subr.bf16.mxu1 %v4301_v3  ;;  %3464 = vmatpush3.bf16.msra.mxu0 %v4688_v8  ;;  %v3302_v13 = vld.sshfl [vmem:[%s4645_s30] sm:$0x11 pattern:$0x75316420]  ;;  %v513_v14 = vpack.c.bf16 %v510_v11, %v510_v11  ;;  %v4714_v22 = vld [vmem:[#allocation11 + $0x30] sm:$0xff]   ;;  %v4726_v25 = vld [vmem:[#allocation11 + $0x40] sm:$0xff]  }
 0x108   : > { %3465 = vmatprep.subr.bf16.mxu0 %v4302_v5  ;;  %v578_v19 = vcombine.high %v3302_v13, %v3302_v13  ;;  %v581_v20 = vunpack.c.0.s8 %v580_v16  ;;  %v4722_v24 = vld [vmem:[#allocation11 + $0x38] sm:$0xff]   ;;  %v4730_v26 = vld [vmem:[#allocation11 + $0x48] sm:$0xff]   ;;  %v4734_v27 = vld [vmem:[#allocation11 + $0x50] sm:$0xff]   ;;  %s4305_s28 = smov 32   ;;  %s4306_s24 = smov 64   ;;  %vm749_vm4 = vcmask 254976  }
 0x109   : > { %v4738_v28 = vld [vmem:[#allocation11 + $0x58] sm:$0xff]   ;;  %v4750_v34 = vld [vmem:[#allocation14] ss:$0 sm:$0xff]  ;;  %s4307_s25 = smov 96   ;;  %p3398_p8 = scmp.ne.s32.totalorder %s4389_s19, 1 }
 0x10a   : > { %673 = vmatpush1.bf16.msra.mxu1 %v4675_v4  ;;  %v4707_v21 = vsub.s32 %v581_v20, %v583_v17  ;;  %v511_v42 = vld [vmem:[#allocation3] sm:$0x3]  ;;  %v3320_v57 = vld.sshfl [vmem:[%s4645_s30 + $0x2] sm:$0x11 pattern:$0x75316420] }
 0x10b   : > { %674 = vmatprep.subr.bf16.mxu1 %v4301_v3  ;;  %3466 = vmatpush3.bf16.msra.mxu0 %v4692_v9  ;;  %v808_v58 = vcombine.high %v3320_v57, %v3320_v57 }
 0x10c   : > { %3471 = vmatprep.subr.bf16.mxu0 %v4302_v5  ;;  %v592_v23 = vrot.slane %v578_v19, %v4707_v21  ;;  %v585_v29 = vrot.slane %v3302_v13, %v4707_v21  ;;  %v815_v61 = vrot.slane %v3320_v57, %v4707_v21 }
 0x10d   : > { %v822_v59 = vrot.slane %v808_v58, %v4707_v21 }
 0x10e   : > { %675 = vmatpush1.bf16.msra.mxu1 %v4682_v6  ;;  %3468 = vmatmul.mubr.msk.bf16.vlgmr.msra.gmra.mrb[0].mxu0 %vm526_vm2, %v513_v14 }
 0x10f   : > { %676 = vmatprep.subr.bf16.mxu1 %v4301_v3  ;;  %3472 = vmatpush3.bf16.msra.mxu0 %v4688_v8 }
 0x110   : > { %3475 = vmatprep.mubr.msk.bf16.mxu0 %vm4303_vm1, %v4302_v5  ;;  %3473 = vmatprep.subr.bf16.mxu0 %v4302_v5 }
 0x111   : > { %3315 = vmatprep.mubr.msk.bf16.mxu1 %vm666_vm3, %v592_v23 }
 0x112   : > { %677 = vmatpush1.bf16.msra.mxu1 %v4685_v7 }
 0x113   : > { %678 = vmatprep.subr.bf16.mxu1 %v4301_v3  ;;  %3474 = vmatpush3.bf16.msra.mxu0 %v4692_v9 }
 0x114   : > { %827 = vmatprep.subr.bf16.mxu0 %v4301_v3 }
 0x116   : > { %679 = vmatpush1.bf16.msra.mxu1 %v4696_v12 }
 0x117   : > { %680 = vmatprep.subr.bf16.mxu1 %v4301_v3 }
 0x11a   : > { %681 = vmatpush1.bf16.msra.mxu1 %v4703_v18 }
 0x11b   : > { %682 = vmatprep.subr.bf16.mxu1 %v4301_v3 }
 0x11e   : > { %683 = vmatpush1.bf16.msra.mxu1 %v4714_v22 }
 0x11f   : > { %684 = vmatprep.subr.bf16.mxu1 %v4301_v3 }
 0x122   : > { %685 = vmatpush1.bf16.msra.mxu1 %v4722_v24 }
 0x123   : > { %686 = vmatprep.subr.bf16.mxu1 %v4301_v3 }
 0x126   : > { %687 = vmatpush1.bf16.msra.mxu1 %v4726_v25 }
 0x127   : > { %688 = vmatprep.subr.bf16.mxu1 %v4301_v3 }
 0x12a   : > { %689 = vmatpush1.bf16.msra.mxu1 %v4730_v26 }
 0x12b   : > { %690 = vmatprep.subr.bf16.mxu1 %v4301_v3 }
 0x12e   : > { %691 = vmatpush1.bf16.msra.mxu1 %v4734_v27 }
 0x12f   : > { %692 = vmatprep.subr.bf16.mxu1 %v4301_v3 }
 0x132   : > { %693 = vmatpush1.bf16.msra.mxu1 %v4738_v28 }
 0x133   : > { %3479 = vmatprep.subr.bf16.mxu1 %v4302_v5 }
 0x135   : > { %703 = vmatmul.mubr.bf16.vlgmr.msra.gmra.mrb[0].mxu1 %v585_v29 }
 0x136   : > { %3480 = vmatpush3.bf16.msra.mxu1 %v4688_v8  ;;  %3483 = vmatprep.mubr.msk.bf16.mxu1 %vm4303_vm1, %v4302_v5 }
 0x137   : > { %3481 = vmatprep.subr.bf16.mxu1 %v4302_v5 }
 0x13a   : > { %3482 = vmatpush3.bf16.msra.mxu1 %v4692_v9 }
 0x13b   : > { %973 = vmatprep.subr.bf16.mxu1 %v4301_v3 }
 0x1e1   : > { %v564_v30 = vpop.f32.mrb[0].mxu0 }
 0x1e2   : > { %v3469_v31 = vpop.f32.mrb[1].mxu0 }
 0x1e3   : > { %v567_v32 = vpop.f32.mrb[2].mxu0 }
 0x1e4   : > { %v3470_v33 = vpop.f32.mrb[3].mxu0 }
 0x208   : > { %v704_v35 = vpop.f32.mrb[0].mxu1 }
 0x209   : > { %v705_v36 = vadd.f32 %v704_v35, %v564_v30  ;;  %v706_v37 = vpop.f32.mrb[1].mxu1 }
 0x20a   : > { %v707_v38 = vpop.f32.mrb[2].mxu1 }
 0x20b   : > { %v716_v39 = vadd.f32 %v4750_v34, %v705_v36  ;;  %v708_v40 = vpop.f32.mrb[3].mxu1 }
 0x20c   : > { %v3325_v40 = vld.sshfl [vmem:[%s4645_s30 + $0x4] sm:$0x11 pattern:$0x75316420] }
 0x20d   : > { %3759 = vtanh.f32 %v716_v39  ;;  %v3317_v43 = vmul.f32 -1.442695, %v716_v39 }
 0x20f   : > { %3761 = vpow2.f32 %v3317_v43 }
 0x217   : > { %v3760_v41 = vpop.eup %3759 }
 0x218   : > { %730 = vrot.lane.b32.xlu0 %v3760_v41, %s4305_s28  ;;  %v954_v41 = vcombine.high %v3325_v40, %v3325_v40 }
 0x219   : > { %v3762_v44 = vpop.eup %3761 }
 0x21a   : > { %v720_v45 = vadd.f32 1.0, %v3762_v44  ;;  %v961_v44 = vrot.slane %v3325_v40, %v4707_v21 }
 0x21c   : > { %725 = vrot.lane.b32.xlu0 %v511_v42, %s4305_s28  ;;  %3763 = vrcp.f32 %v720_v45  ;;  %v968_v42 = vrot.slane %v954_v41, %v4707_v21 }
 0x226   : > { %v3764_v46 = vpop.eup %3763 }
 0x28a   : > { %v731_v47 = vpop.permute.xlu0 %730 }
 0x28b   : > { %v733_v48 = vmul.f32 %v3764_v46, %v731_v47 }
 0x28d   : > { %735 = vrot.lane.b32.xlu1 %v733_v48, %s4305_s28 }
 0x28e   : > { %v726_v49 = vpop.permute.xlu0 %725 }
 0x28f   : > { %v728_v50 = vmul.f32 %v3764_v46, %v726_v49 }
 0x2ff   : > { %v736_v51 = vpop.permute.xlu1 %735 }
 0x300   : > { %v4756_v52 = vadd.f32 %v736_v51, %v728_v50 }
 0x302   : > { %3765 = vtanh.f32 %v4756_v52 }
 0x30c   : > { %v3766_v53 = vpop.eup %3765 }
 0x30d   : > { %741 = vrot.lane.b32.xlu1 %v3766_v53, %s4305_s28 }
 0x37f   : > { %v742_v54 = vpop.permute.xlu1 %741 }
 0x380   : > { %v4760_v55 = vmul.f32 %v3764_v46, %v742_v54 }
 0x382   : > { %v753_v56 = vpack.c.bf16 %v4760_v55, %v4760_v55 }
 0x384   : > { %755 = vrot.lane.b32.xlu0 %v753_v56, %s4306_s24 }
 0x3f6   : > { %v756_v60 = vpop.permute.xlu0 %755 }
 0x3f7   : > { %3476 = vmatmul.mubr.msk.bf16.vlgmr.msra.gmra.mrb[4].mxu0 %vm526_vm2, %v756_v60 }
 0x3f8   : > { %828 = vmatpush1.bf16.msra.mxu0 %v4671_v2  ;;  %3321 = vmatprep.mubr.msk.bf16.mxu0 %vm666_vm3, %v822_v59 }
 0x3f9   : > { %829 = vmatprep.subr.bf16.mxu0 %v4301_v3 }
 0x3fc   : > { %830 = vmatpush1.bf16.msra.mxu0 %v4675_v4 }
 0x3fd   : > { %831 = vmatprep.subr.bf16.mxu0 %v4301_v3 }
 0x400   : > { %832 = vmatpush1.bf16.msra.mxu0 %v4682_v6 }
 0x401   : > { %833 = vmatprep.subr.bf16.mxu0 %v4301_v3 }
 0x404   : > { %834 = vmatpush1.bf16.msra.mxu0 %v4685_v7 }
 0x405   : > { %835 = vmatprep.subr.bf16.mxu0 %v4301_v3 }
 0x408   : > { %836 = vmatpush1.bf16.msra.mxu0 %v4696_v12 }
 0x409   : > { %837 = vmatprep.subr.bf16.mxu0 %v4301_v3 }
 0x40c   : > { %838 = vmatpush1.bf16.msra.mxu0 %v4703_v18 }
 0x40d   : > { %839 = vmatprep.subr.bf16.mxu0 %v4301_v3 }
 0x410   : > { %840 = vmatpush1.bf16.msra.mxu0 %v4714_v22 }
 0x411   : > { %841 = vmatprep.subr.bf16.mxu0 %v4301_v3 }
 0x414   : > { %842 = vmatpush1.bf16.msra.mxu0 %v4722_v24 }
 0x415   : > { %843 = vmatprep.subr.bf16.mxu0 %v4301_v3 }
 0x418   : > { %844 = vmatpush1.bf16.msra.mxu0 %v4726_v25 }
 0x419   : > { %845 = vmatprep.subr.bf16.mxu0 %v4301_v3 }
 0x41c   : > { %846 = vmatpush1.bf16.msra.mxu0 %v4730_v26 }
 0x41d   : > { %847 = vmatprep.subr.bf16.mxu0 %v4301_v3 }
 0x420   : > { %848 = vmatpush1.bf16.msra.mxu0 %v4734_v27 }
 0x421   : > { %849 = vmatprep.subr.bf16.mxu0 %v4301_v3 }
 0x424   : > { %850 = vmatpush1.bf16.msra.mxu0 %v4738_v28 }
 0x425   : > { %3487 = vmatprep.subr.bf16.mxu0 %v4302_v5 }
 0x427   : > { %860 = vmatmul.mubr.bf16.vlgmr.msra.gmra.mrb[8].mxu0 %v815_v61 }
 0x428   : > { %3488 = vmatpush3.bf16.msra.mxu0 %v4688_v8  ;;  %3491 = vmatprep.mubr.msk.bf16.mxu0 %vm4303_vm1, %v4302_v5 }
 0x429   : > { %3489 = vmatprep.subr.bf16.mxu0 %v4302_v5 }
 0x42c   : > { %3490 = vmatpush3.bf16.msra.mxu0 %v4692_v9 }
 0x42d   : > { %1119 = vmatprep.subr.bf16.mxu0 %v4301_v3 }
 0x4ca   : > { %v794_v62 = vpop.f32.mrb[4].mxu0 }
 0x4cb   : > { %v3477_v63 = vpop.f32.mrb[5].mxu0 }
 0x4cc   : > { %v797_v0 = vpop.f32.mrb[6].mxu0 }
 0x4cd   : > { %v3478_v1 = vpop.f32.mrb[7].mxu0 }
 0x4fa   : > { %v861_v10 = vpop.f32.mrb[8].mxu0 }
 0x4fb   : > { %v862_v11 = vadd.f32 %v861_v10, %v794_v62  ;;  %v863_v13 = vpop.f32.mrb[9].mxu0 }
 0x4fc   : > { %v864_v14 = vpop.f32.mrb[10].mxu0 }
 0x4fd   : > { %v867_v15 = vadd.f32 %v4750_v34, %v862_v11  ;;  %v865_v16 = vpop.f32.mrb[11].mxu0 }
 0x4ff   : > { %3767 = vtanh.f32 %v867_v15  ;;  %v3322_v19 = vmul.f32 -1.442695, %v867_v15  ;;  %v3330_v15 = vld.sshfl [vmem:[%s4645_s30 + $0x6] sm:$0x11 pattern:$0x75316420] }
 0x500   : > { %v1100_v16 = vcombine.high %v3330_v15, %v3330_v15 }
 0x501   : > { %3769 = vpow2.f32 %v3322_v19 }
 0x509   : > { %v3768_v17 = vpop.eup %3767 }
 0x50a   : > { %877 = vrot.lane.b32.xlu1 %v3768_v17, %s4305_s28  ;;  %v1114_v17 = vrot.slane %v1100_v16, %v4707_v21 }
 0x50b   : > { %v3770_v20 = vpop.eup %3769 }
 0x50c   : > { %v871_v23 = vadd.f32 1.0, %v3770_v20  ;;  %v1107_v20 = vrot.slane %v3330_v15, %v4707_v21 }
 0x50e   : > { %3771 = vrcp.f32 %v871_v23 }
 0x518   : > { %v3772_v29 = vpop.eup %3771 }
 0x519   : > { %v875_v32 = vmul.f32 %v3772_v29, %v4756_v52 }
 0x57c   : > { %v878_v30 = vpop.permute.xlu1 %877 }
 0x57d   : > { %v880_v31 = vmul.f32 %v3772_v29, %v878_v30 }
 0x57f   : > { %882 = vrot.lane.b32.xlu0 %v880_v31, %s4305_s28 }
 0x5f1   : > { %v883_v33 = vpop.permute.xlu0 %882 }
 0x5f2   : > { %v4804_v35 = vadd.f32 %v883_v33, %v875_v32 }
 0x5f4   : > { %3773 = vtanh.f32 %v4804_v35 }
 0x5fe   : > { %v3774_v36 = vpop.eup %3773 }
 0x5ff   : > { %888 = vrot.lane.b32.xlu1 %v3774_v36, %s4305_s28 }
 0x671   : > { %v889_v37 = vpop.permute.xlu1 %888 }
 0x672   : > { %v4808_v38 = vmul.f32 %v3772_v29, %v889_v37 }
 0x674   : > { %v899_v39 = vpack.c.bf16 %v4808_v38, %v4808_v38 }
 0x676   : > { %901 = vrot.lane.b32.xlu0 %v899_v39, %s4306_s24 }
 0x6e8   : > { %v902_v43 = vpop.permute.xlu0 %901 }
 0x6e9   : > { %3484 = vmatmul.mubr.msk.bf16.vlgmr.msra.gmra.mrb[4].mxu1 %vm526_vm2, %v902_v43 }
 0x6ea   : > { %974 = vmatpush1.bf16.msra.mxu1 %v4671_v2  ;;  %3326 = vmatprep.mubr.msk.bf16.mxu1 %vm666_vm3, %v968_v42 }
 0x6eb   : > { %975 = vmatprep.subr.bf16.mxu1 %v4301_v3 }
 0x6ee   : > { %976 = vmatpush1.bf16.msra.mxu1 %v4675_v4 }
 0x6ef   : > { %977 = vmatprep.subr.bf16.mxu1 %v4301_v3 }
 0x6f2   : > { %978 = vmatpush1.bf16.msra.mxu1 %v4682_v6 }
 0x6f3   : > { %979 = vmatprep.subr.bf16.mxu1 %v4301_v3 }
 0x6f6   : > { %980 = vmatpush1.bf16.msra.mxu1 %v4685_v7 }
 0x6f7   : > { %981 = vmatprep.subr.bf16.mxu1 %v4301_v3 }
 0x6fa   : > { %982 = vmatpush1.bf16.msra.mxu1 %v4696_v12 }
 0x6fb   : > { %983 = vmatprep.subr.bf16.mxu1 %v4301_v3 }
 0x6fe   : > { %984 = vmatpush1.bf16.msra.mxu1 %v4703_v18 }
 0x6ff   : > { %985 = vmatprep.subr.bf16.mxu1 %v4301_v3 }
 0x702   : > { %986 = vmatpush1.bf16.msra.mxu1 %v4714_v22 }
 0x703   : > { %987 = vmatprep.subr.bf16.mxu1 %v4301_v3 }
 0x706   : > { %988 = vmatpush1.bf16.msra.mxu1 %v4722_v24 }
 0x707   : > { %989 = vmatprep.subr.bf16.mxu1 %v4301_v3 }
 0x70a   : > { %990 = vmatpush1.bf16.msra.mxu1 %v4726_v25 }
 0x70b   : > { %991 = vmatprep.subr.bf16.mxu1 %v4301_v3 }
 0x70e   : > { %992 = vmatpush1.bf16.msra.mxu1 %v4730_v26 }
 0x70f   : > { %993 = vmatprep.subr.bf16.mxu1 %v4301_v3 }
 0x712   : > { %994 = vmatpush1.bf16.msra.mxu1 %v4734_v27 }
 0x713   : > { %995 = vmatprep.subr.bf16.mxu1 %v4301_v3 }
 0x716   : > { %996 = vmatpush1.bf16.msra.mxu1 %v4738_v28 }
 0x717   : > { %3495 = vmatprep.subr.bf16.mxu1 %v4302_v5 }
 0x719   : > { %1006 = vmatmul.mubr.bf16.vlgmr.msra.gmra.mrb[8].mxu1 %v961_v44 }
 0x71a   : > { %3496 = vmatpush3.bf16.msra.mxu1 %v4688_v8  ;;  %3499 = vmatprep.mubr.msk.bf16.mxu1 %vm4303_vm1, %v4302_v5 }
 0x71b   : > { %3497 = vmatprep.subr.bf16.mxu1 %v4302_v5 }
 0x71e   : > { %3498 = vmatpush3.bf16.msra.mxu1 %v4692_v9 }
 0x71f   : > { %1265 = vmatprep.subr.bf16.mxu1 %v4301_v3 }
 0x7bc   : > { %v940_v45 = vpop.f32.mrb[4].mxu1 }
 0x7bd   : > { %v3485_v46 = vpop.f32.mrb[5].mxu1 }
 0x7be   : > { %v943_v47 = vpop.f32.mrb[6].mxu1 }
 0x7bf   : > { %v3486_v48 = vpop.f32.mrb[7].mxu1 }
 0x7ec   : > { %v1007_v49 = vpop.f32.mrb[8].mxu1 }
 0x7ed   : > { %v1008_v50 = vadd.f32 %v1007_v49, %v940_v45  ;;  %v1009_v51 = vpop.f32.mrb[9].mxu1 }
 0x7ee   : > { %v1010_v52 = vpop.f32.mrb[10].mxu1 }
 0x7ef   : > { %v1013_v53 = vadd.f32 %v4750_v34, %v1008_v50  ;;  %v1011_v54 = vpop.f32.mrb[11].mxu1 }
 0x7f0   : > { %v3335_v54 = vld.sshfl [vmem:[%s4645_s30 + $0x8] sm:$0x11 pattern:$0x75316420] }
 0x7f1   : > { %3775 = vtanh.f32 %v1013_v53  ;;  %v3327_v57 = vmul.f32 -1.442695, %v1013_v53 }
 0x7f3   : > { %3777 = vpow2.f32 %v3327_v57 }
 0x7fb   : > { %v3776_v56 = vpop.eup %3775 }
 0x7fc   : > { %1023 = vrot.lane.b32.xlu1 %v3776_v56, %s4305_s28  ;;  %v1246_v56 = vcombine.high %v3335_v54, %v3335_v54 }
 0x7fd   : > { %v3778_v58 = vpop.eup %3777 }
 0x7fe   : > { %v1017_v59 = vadd.f32 1.0, %v3778_v58  ;;  %v1260_v57 = vrot.slane %v1246_v56, %v4707_v21 }
 0x800   : > { %3779 = vrcp.f32 %v1017_v59  ;;  %v1253_v59 = vrot.slane %v3335_v54, %v4707_v21 }
 0x80a   : > { %v3780_v60 = vpop.eup %3779 }
 0x80b   : > { %v1021_v63 = vmul.f32 %v3780_v60, %v4804_v35 }
 0x86e   : > { %v1024_v61 = vpop.permute.xlu1 %1023 }
 0x86f   : > { %v1026_v62 = vmul.f32 %v3780_v60, %v1024_v61 }
 0x871   : > { %1028 = vrot.lane.b32.xlu0 %v1026_v62, %s4305_s28 }
 0x8e3   : > { %v1029_v0 = vpop.permute.xlu0 %1028 }
 0x8e4   : > { %v4852_v1 = vadd.f32 %v1029_v0, %v1021_v63 }
 0x8e6   : > { %3781 = vtanh.f32 %v4852_v1 }
 0x8f0   : > { %v3782_v10 = vpop.eup %3781 }
 0x8f1   : > { %1034 = vrot.lane.b32.xlu1 %v3782_v10, %s4305_s28 }
 0x963   : > { %v1035_v11 = vpop.permute.xlu1 %1034 }
 0x964   : > { %v4856_v13 = vmul.f32 %v3780_v60, %v1035_v11 }
 0x966   : > { %v1045_v14 = vpack.c.bf16 %v4856_v13, %v4856_v13 }
 0x968   : > { %1047 = vrot.lane.b32.xlu0 %v1045_v14, %s4306_s24 }
 0x9da   : > { %v1048_v19 = vpop.permute.xlu0 %1047 }
 0x9db   : > { %3492 = vmatmul.mubr.msk.bf16.vlgmr.msra.gmra.mrb[12].mxu0 %vm526_vm2, %v1048_v19 }
 0x9dc   : > { %1120 = vmatpush1.bf16.msra.mxu0 %v4671_v2  ;;  %3331 = vmatprep.mubr.msk.bf16.mxu0 %vm666_vm3, %v1114_v17 }
 0x9dd   : > { %1121 = vmatprep.subr.bf16.mxu0 %v4301_v3 }
 0x9e0   : > { %1122 = vmatpush1.bf16.msra.mxu0 %v4675_v4 }
 0x9e1   : > { %1123 = vmatprep.subr.bf16.mxu0 %v4301_v3 }
 0x9e4   : > { %1124 = vmatpush1.bf16.msra.mxu0 %v4682_v6 }
 0x9e5   : > { %1125 = vmatprep.subr.bf16.mxu0 %v4301_v3 }
 0x9e8   : > { %1126 = vmatpush1.bf16.msra.mxu0 %v4685_v7 }
 0x9e9   : > { %1127 = vmatprep.subr.bf16.mxu0 %v4301_v3 }
 0x9ec   : > { %1128 = vmatpush1.bf16.msra.mxu0 %v4696_v12 }
 0x9ed   : > { %1129 = vmatprep.subr.bf16.mxu0 %v4301_v3 }
 0x9f0   : > { %1130 = vmatpush1.bf16.msra.mxu0 %v4703_v18 }
 0x9f1   : > { %1131 = vmatprep.subr.bf16.mxu0 %v4301_v3 }
 0x9f4   : > { %1132 = vmatpush1.bf16.msra.mxu0 %v4714_v22 }
 0x9f5   : > { %1133 = vmatprep.subr.bf16.mxu0 %v4301_v3 }
 0x9f8   : > { %1134 = vmatpush1.bf16.msra.mxu0 %v4722_v24 }
 0x9f9   : > { %1135 = vmatprep.subr.bf16.mxu0 %v4301_v3 }
 0x9fc   : > { %1136 = vmatpush1.bf16.msra.mxu0 %v4726_v25 }
 0x9fd   : > { %1137 = vmatprep.subr.bf16.mxu0 %v4301_v3 }
 0xa00   : > { %1138 = vmatpush1.bf16.msra.mxu0 %v4730_v26 }
 0xa01   : > { %1139 = vmatprep.subr.bf16.mxu0 %v4301_v3 }
 0xa04   : > { %1140 = vmatpush1.bf16.msra.mxu0 %v4734_v27 }
 0xa05   : > { %1141 = vmatprep.subr.bf16.mxu0 %v4301_v3 }
 0xa08   : > { %1142 = vmatpush1.bf16.msra.mxu0 %v4738_v28 }
 0xa09   : > { %3503 = vmatprep.subr.bf16.mxu0 %v4302_v5 }
 0xa0b   : > { %1152 = vmatmul.mubr.bf16.vlgmr.msra.gmra.mrb[16].mxu0 %v1107_v20 }
 0xa0c   : > { %3504 = vmatpush3.bf16.msra.mxu0 %v4688_v8  ;;  %3507 = vmatprep.mubr.msk.bf16.mxu0 %vm4303_vm1, %v4302_v5 }
 0xa0d   : > { %3505 = vmatprep.subr.bf16.mxu0 %v4302_v5 }
 0xa10   : > { %3506 = vmatpush3.bf16.msra.mxu0 %v4692_v9 }
 0xa11   : > { %1411 = vmatprep.subr.bf16.mxu0 %v4301_v3 }
 0xaae   : > { %v1086_v23 = vpop.f32.mrb[12].mxu0 }
 0xaaf   : > { %v3493_v29 = vpop.f32.mrb[13].mxu0 }
 0xab0   : > { %v1089_v30 = vpop.f32.mrb[14].mxu0 }
 0xab1   : > { %v3494_v31 = vpop.f32.mrb[15].mxu0 }
 0xade   : > { %v1153_v32 = vpop.f32.mrb[16].mxu0 }
 0xadf   : > { %v1154_v33 = vadd.f32 %v1153_v32, %v1086_v23  ;;  %v1155_v35 = vpop.f32.mrb[17].mxu0 }
 0xae0   : > { %v1156_v36 = vpop.f32.mrb[18].mxu0 }
 0xae1   : > { %v1159_v37 = vadd.f32 %v4750_v34, %v1154_v33  ;;  %v1157_v39 = vpop.f32.mrb[19].mxu0 }
 0xae3   : > { %3783 = vtanh.f32 %v1159_v37  ;;  %v3332_v41 = vmul.f32 -1.442695, %v1159_v37 }
 0xae5   : > { %3785 = vpow2.f32 %v3332_v41 }
 0xaed   : > { %v3784_v40 = vpop.eup %3783 }
 0xaee   : > { %1169 = vrot.lane.b32.xlu1 %v3784_v40, %s4305_s28  ;;  %v3340_v40 = vld.sshfl [vmem:[%s4645_s30 + $0xa] sm:$0x11 pattern:$0x75316420] }
 0xaef   : > { %v3786_v42 = vpop.eup %3785  ;;  %v1392_v41 = vcombine.high %v3340_v40, %v3340_v40 }
 0xaf0   : > { %v1163_v43 = vadd.f32 1.0, %v3786_v42 }
 0xaf1   : > { %v1406_v42 = vrot.slane %v1392_v41, %v4707_v21 }
 0xaf2   : > { %3787 = vrcp.f32 %v1163_v43 }
 0xafc   : > { %v3788_v44 = vpop.eup %3787 }
 0xafd   : > { %v1167_v47 = vmul.f32 %v3788_v44, %v4852_v1 }
 0xb60   : > { %v1170_v45 = vpop.permute.xlu1 %1169 }
 0xb61   : > { %v1172_v46 = vmul.f32 %v3788_v44, %v1170_v45 }
 0xb63   : > { %1174 = vrot.lane.b32.xlu0 %v1172_v46, %s4305_s28 }
 0xbd5   : > { %v1175_v48 = vpop.permute.xlu0 %1174 }
 0xbd6   : > { %v4900_v49 = vadd.f32 %v1175_v48, %v1167_v47 }
 0xbd8   : > { %3789 = vtanh.f32 %v4900_v49 }
 0xbe2   : > { %v3790_v50 = vpop.eup %3789 }
 0xbe3   : > { %1180 = vrot.lane.b32.xlu1 %v3790_v50, %s4305_s28 }
 0xc55   : > { %v1181_v51 = vpop.permute.xlu1 %1180 }
 0xc56   : > { %v4904_v52 = vmul.f32 %v3788_v44, %v1181_v51  ;;  %v1399_v44 = vrot.slane %v3340_v40, %v4707_v21 }
 0xc58   : > { %v1191_v53 = vpack.c.bf16 %v4904_v52, %v4904_v52 }
 0xc5a   : > { %1193 = vrot.lane.b32.xlu0 %v1191_v53, %s4306_s24 }
 0xccc   : > { %v1194_v58 = vpop.permute.xlu0 %1193 }
 0xccd   : > { %3500 = vmatmul.mubr.msk.bf16.vlgmr.msra.gmra.mrb[12].mxu1 %vm526_vm2, %v1194_v58 }
 0xcce   : > { %1266 = vmatpush1.bf16.msra.mxu1 %v4671_v2  ;;  %3336 = vmatprep.mubr.msk.bf16.mxu1 %vm666_vm3, %v1260_v57 }
 0xccf   : > { %1267 = vmatprep.subr.bf16.mxu1 %v4301_v3 }
 0xcd2   : > { %1268 = vmatpush1.bf16.msra.mxu1 %v4675_v4 }
 0xcd3   : > { %1269 = vmatprep.subr.bf16.mxu1 %v4301_v3 }
 0xcd6   : > { %1270 = vmatpush1.bf16.msra.mxu1 %v4682_v6 }
 0xcd7   : > { %1271 = vmatprep.subr.bf16.mxu1 %v4301_v3 }
 0xcda   : > { %1272 = vmatpush1.bf16.msra.mxu1 %v4685_v7 }
 0xcdb   : > { %1273 = vmatprep.subr.bf16.mxu1 %v4301_v3 }
 0xcde   : > { %1274 = vmatpush1.bf16.msra.mxu1 %v4696_v12 }
 0xcdf   : > { %1275 = vmatprep.subr.bf16.mxu1 %v4301_v3 }
 0xce2   : > { %1276 = vmatpush1.bf16.msra.mxu1 %v4703_v18 }
 0xce3   : > { %1277 = vmatprep.subr.bf16.mxu1 %v4301_v3 }
 0xce6   : > { %1278 = vmatpush1.bf16.msra.mxu1 %v4714_v22 }
 0xce7   : > { %1279 = vmatprep.subr.bf16.mxu1 %v4301_v3 }
 0xcea   : > { %1280 = vmatpush1.bf16.msra.mxu1 %v4722_v24 }
 0xceb   : > { %1281 = vmatprep.subr.bf16.mxu1 %v4301_v3 }
 0xcee   : > { %1282 = vmatpush1.bf16.msra.mxu1 %v4726_v25 }
 0xcef   : > { %1283 = vmatprep.subr.bf16.mxu1 %v4301_v3 }
 0xcf2   : > { %1284 = vmatpush1.bf16.msra.mxu1 %v4730_v26 }
 0xcf3   : > { %1285 = vmatprep.subr.bf16.mxu1 %v4301_v3 }
 0xcf6   : > { %1286 = vmatpush1.bf16.msra.mxu1 %v4734_v27 }
 0xcf7   : > { %1287 = vmatprep.subr.bf16.mxu1 %v4301_v3 }
 0xcfa   : > { %1288 = vmatpush1.bf16.msra.mxu1 %v4738_v28 }
 0xcfb   : > { %3511 = vmatprep.subr.bf16.mxu1 %v4302_v5 }
 0xcfd   : > { %1298 = vmatmul.mubr.bf16.vlgmr.msra.gmra.mrb[16].mxu1 %v1253_v59 }
 0xcfe   : > { %3512 = vmatpush3.bf16.msra.mxu1 %v4688_v8  ;;  %3515 = vmatprep.mubr.msk.bf16.mxu1 %vm4303_vm1, %v4302_v5 }
 0xcff   : > { %3513 = vmatprep.subr.bf16.mxu1 %v4302_v5 }
 0xd02   : > { %3514 = vmatpush3.bf16.msra.mxu1 %v4692_v9 }
 0xd03   : > { %1557 = vmatprep.subr.bf16.mxu1 %v4301_v3 }
 0xda0   : > { %v1232_v60 = vpop.f32.mrb[12].mxu1 }
 0xda1   : > { %v3501_v61 = vpop.f32.mrb[13].mxu1 }
 0xda2   : > { %v1235_v62 = vpop.f32.mrb[14].mxu1 }
 0xda3   : > { %v3502_v63 = vpop.f32.mrb[15].mxu1 }
 0xdd0   : > { %v1299_v0 = vpop.f32.mrb[16].mxu1 }
 0xdd1   : > { %v1300_v1 = vadd.f32 %v1299_v0, %v1232_v60  ;;  %v1301_v10 = vpop.f32.mrb[17].mxu1 }
 0xdd2   : > { %v1302_v11 = vpop.f32.mrb[18].mxu1 }
 0xdd3   : > { %v1305_v14 = vadd.f32 %v4750_v34, %v1300_v1  ;;  %v1303_v15 = vpop.f32.mrb[19].mxu1 }
 0xdd5   : > { %3791 = vtanh.f32 %v1305_v14  ;;  %v3337_v17 = vmul.f32 -1.442695, %v1305_v14 }
 0xdd7   : > { %3793 = vpow2.f32 %v3337_v17  ;;  %v3345_v17 = vld.sshfl [vmem:[%s4645_s30 + $0xc] sm:$0x11 pattern:$0x75316420] }
 0xddf   : > { %v3792_v16 = vpop.eup %3791 }
 0xde0   : > { %1315 = vrot.lane.b32.xlu1 %v3792_v16, %s4305_s28 }
 0xde1   : > { %v3794_v19 = vpop.eup %3793 }
 0xde2   : > { %v1309_v20 = vadd.f32 1.0, %v3794_v19  ;;  %v1538_v19 = vcombine.high %v3345_v17, %v3345_v17 }
 0xde4   : > { %3795 = vrcp.f32 %v1309_v20  ;;  %v1552_v20 = vrot.slane %v1538_v19, %v4707_v21 }
 0xdee   : > { %v3796_v23 = vpop.eup %3795 }
 0xdef   : > { %v1313_v31 = vmul.f32 %v3796_v23, %v4900_v49 }
 0xe52   : > { %v1316_v29 = vpop.permute.xlu1 %1315 }
 0xe53   : > { %v1318_v30 = vmul.f32 %v3796_v23, %v1316_v29 }
 0xe55   : > { %1320 = vrot.lane.b32.xlu0 %v1318_v30, %s4305_s28 }
 0xec7   : > { %v1321_v32 = vpop.permute.xlu0 %1320 }
 0xec8   : > { %v4948_v33 = vadd.f32 %v1321_v32, %v1313_v31 }
 0xeca   : > { %3797 = vtanh.f32 %v4948_v33 }
 0xed4   : > { %v3798_v35 = vpop.eup %3797 }
 0xed5   : > { %1326 = vrot.lane.b32.xlu1 %v3798_v35, %s4305_s28 }
 0xf47   : > { %v1327_v36 = vpop.permute.xlu1 %1326 }
 0xf48   : > { %v4952_v37 = vmul.f32 %v3796_v23, %v1327_v36 }
 0xf4a   : > { %v1337_v39 = vpack.c.bf16 %v4952_v37, %v4952_v37 }
 0xf4c   : > { %1339 = vrot.lane.b32.xlu0 %v1337_v39, %s4306_s24 }
 0xfbe   : > { %v1340_v43 = vpop.permute.xlu0 %1339 }
 0xfbf   : > { %3508 = vmatmul.mubr.msk.bf16.vlgmr.msra.gmra.mrb[20].mxu0 %vm526_vm2, %v1340_v43 }
 0xfc0   : > { %1412 = vmatpush1.bf16.msra.mxu0 %v4671_v2  ;;  %3341 = vmatprep.mubr.msk.bf16.mxu0 %vm666_vm3, %v1406_v42 }
 0xfc1   : > { %1413 = vmatprep.subr.bf16.mxu0 %v4301_v3 }
 0xfc4   : > { %1414 = vmatpush1.bf16.msra.mxu0 %v4675_v4 }
 0xfc5   : > { %1415 = vmatprep.subr.bf16.mxu0 %v4301_v3 }
 0xfc8   : > { %1416 = vmatpush1.bf16.msra.mxu0 %v4682_v6 }
 0xfc9   : > { %1417 = vmatprep.subr.bf16.mxu0 %v4301_v3 }
 0xfcc   : > { %1418 = vmatpush1.bf16.msra.mxu0 %v4685_v7 }
 0xfcd   : > { %1419 = vmatprep.subr.bf16.mxu0 %v4301_v3 }
 0xfd0   : > { %1420 = vmatpush1.bf16.msra.mxu0 %v4696_v12 }
 0xfd1   : > { %1421 = vmatprep.subr.bf16.mxu0 %v4301_v3 }
 0xfd4   : > { %1422 = vmatpush1.bf16.msra.mxu0 %v4703_v18 }
 0xfd5   : > { %1423 = vmatprep.subr.bf16.mxu0 %v4301_v3 }
 0xfd8   : > { %1424 = vmatpush1.bf16.msra.mxu0 %v4714_v22 }
 0xfd9   : > { %1425 = vmatprep.subr.bf16.mxu0 %v4301_v3 }
 0xfdc   : > { %1426 = vmatpush1.bf16.msra.mxu0 %v4722_v24 }
 0xfdd   : > { %1427 = vmatprep.subr.bf16.mxu0 %v4301_v3 }
 0xfe0   : > { %1428 = vmatpush1.bf16.msra.mxu0 %v4726_v25 }
 0xfe1   : > { %1429 = vmatprep.subr.bf16.mxu0 %v4301_v3 }
 0xfe4   : > { %1430 = vmatpush1.bf16.msra.mxu0 %v4730_v26 }
 0xfe5   : > { %1431 = vmatprep.subr.bf16.mxu0 %v4301_v3 }
 0xfe8   : > { %1432 = vmatpush1.bf16.msra.mxu0 %v4734_v27 }
 0xfe9   : > { %1433 = vmatprep.subr.bf16.mxu0 %v4301_v3 }
 0xfec   : > { %1434 = vmatpush1.bf16.msra.mxu0 %v4738_v28 }
 0xfed   : > { %3519 = vmatprep.subr.bf16.mxu0 %v4302_v5 }
 0xfef   : > { %1444 = vmatmul.mubr.bf16.vlgmr.msra.gmra.mrb[24].mxu0 %v1399_v44 }
 0xff0   : > { %3520 = vmatpush3.bf16.msra.mxu0 %v4688_v8  ;;  %3523 = vmatprep.mubr.msk.bf16.mxu0 %vm4303_vm1, %v4302_v5 }
 0xff1   : > { %3521 = vmatprep.subr.bf16.mxu0 %v4302_v5 }
 0xff4   : > { %3522 = vmatpush3.bf16.msra.mxu0 %v4692_v9 }
 0xff5   : > { %1703 = vmatprep.subr.bf16.mxu0 %v4301_v3 }
0x1092   : > { %v1378_v45 = vpop.f32.mrb[20].mxu0 }
0x1093   : > { %v3509_v46 = vpop.f32.mrb[21].mxu0 }
0x1094   : > { %v1381_v47 = vpop.f32.mrb[22].mxu0 }
0x1095   : > { %v3510_v48 = vpop.f32.mrb[23].mxu0 }
0x10c2   : > { %v1445_v49 = vpop.f32.mrb[24].mxu0 }
0x10c3   : > { %v1446_v50 = vadd.f32 %v1445_v49, %v1378_v45  ;;  %v1447_v51 = vpop.f32.mrb[25].mxu0 }
0x10c4   : > { %v1448_v53 = vpop.f32.mrb[26].mxu0 }
0x10c5   : > { %v1451_v54 = vadd.f32 %v4750_v34, %v1446_v50  ;;  %v1449_v56 = vpop.f32.mrb[27].mxu0  ;;  %v3350_v50 = vld.sshfl [vmem:[%s4645_s30 + $0xe] sm:$0x11 pattern:$0x75316420] }
0x10c6   : > { %v1684_v51 = vcombine.high %v3350_v50, %v3350_v50  ;;  %v5056_v56 = vld [vmem:[#allocation11] sm:$0xff]  }
0x10c7   : > { %3799 = vtanh.f32 %v1451_v54  ;;  %v3342_v58 = vmul.f32 -1.442695, %v1451_v54 }
0x10c8   : > { %v1698_v53 = vrot.slane %v1684_v51, %v4707_v21 }
0x10c9   : > { %3801 = vpow2.f32 %v3342_v58  ;;  %v5065_v58 = vld [vmem:[#allocation11 + $0x10] sm:$0xff]  }
0x10d1   : > { %v3800_v57 = vpop.eup %3799 }
0x10d2   : > { %1461 = vrot.lane.b32.xlu1 %v3800_v57, %s4305_s28  ;;  %v5061_v57 = vld [vmem:[#allocation11 + $0x8] sm:$0xff]  }
0x10d3   : > { %v3802_v59 = vpop.eup %3801 }
0x10d4   : > { %v1455_v60 = vadd.f32 1.0, %v3802_v59  ;;  %v5069_v59 = vld [vmem:[#allocation11 + $0x18] sm:$0xff]  }
0x10d6   : > { %3803 = vrcp.f32 %v1455_v60  ;;  %v5073_v60 = vld [vmem:[#allocation11 + $0x20] sm:$0xff]  }
0x10e0   : > { %v3804_v61 = vpop.eup %3803 }
0x10e1   : > { %v1459_v0 = vmul.f32 %v3804_v61, %v4948_v33 }
0x1144   : > { %v1462_v62 = vpop.permute.xlu1 %1461 }
0x1145   : > { %v1464_v63 = vmul.f32 %v3804_v61, %v1462_v62 }
0x1147   : > { %1466 = vrot.lane.b32.xlu0 %v1464_v63, %s4305_s28 }
0x11b9   : > { %v1467_v1 = vpop.permute.xlu0 %1466 }
0x11ba   : > { %v4996_v10 = vadd.f32 %v1467_v1, %v1459_v0 }
0x11bc   : > { %3805 = vtanh.f32 %v4996_v10 }
0x11c6   : > { %v3806_v11 = vpop.eup %3805 }
0x11c7   : > { %1472 = vrot.lane.b32.xlu1 %v3806_v11, %s4305_s28 }
0x1239   : > { %v1473_v14 = vpop.permute.xlu1 %1472 }
0x123a   : > { %v5000_v15 = vmul.f32 %v3804_v61, %v1473_v14 }
0x123c   : > { %v1483_v16 = vpack.c.bf16 %v5000_v15, %v5000_v15 }
0x123e   : > { %1485 = vrot.lane.b32.xlu0 %v1483_v16, %s4306_s24 }
0x12b0   : > { %v1486_v23 = vpop.permute.xlu0 %1485 }
0x12b1   : > { %3516 = vmatmul.mubr.msk.bf16.vlgmr.msra.gmra.mrb[20].mxu1 %vm526_vm2, %v1486_v23 }
0x12b2   : > { %1558 = vmatpush1.bf16.msra.mxu1 %v4671_v2  ;;  %3346 = vmatprep.mubr.msk.bf16.mxu1 %vm666_vm3, %v1552_v20  ;;  %v1545_v2 = vrot.slane %v3345_v17, %v4707_v21 }
0x12b3   : > { %1559 = vmatprep.subr.bf16.mxu1 %v4301_v3 }
0x12b6   : > { %1560 = vmatpush1.bf16.msra.mxu1 %v4675_v4 }
0x12b7   : > { %1561 = vmatprep.subr.bf16.mxu1 %v4301_v3 }
0x12ba   : > { %1562 = vmatpush1.bf16.msra.mxu1 %v4682_v6 }
0x12bb   : > { %1563 = vmatprep.subr.bf16.mxu1 %v4301_v3 }
0x12be   : > { %1564 = vmatpush1.bf16.msra.mxu1 %v4685_v7 }
0x12bf   : > { %1565 = vmatprep.subr.bf16.mxu1 %v4301_v3 }
0x12c2   : > { %1566 = vmatpush1.bf16.msra.mxu1 %v4696_v12 }
0x12c3   : > { %1567 = vmatprep.subr.bf16.mxu1 %v4301_v3 }
0x12c6   : > { %1568 = vmatpush1.bf16.msra.mxu1 %v4703_v18 }
0x12c7   : > { %1569 = vmatprep.subr.bf16.mxu1 %v4301_v3 }
0x12ca   : > { %1570 = vmatpush1.bf16.msra.mxu1 %v4714_v22 }
0x12cb   : > { %1571 = vmatprep.subr.bf16.mxu1 %v4301_v3 }
0x12ce   : > { %1572 = vmatpush1.bf16.msra.mxu1 %v4722_v24 }
0x12cf   : > { %1573 = vmatprep.subr.bf16.mxu1 %v4301_v3 }
0x12d2   : > { %1574 = vmatpush1.bf16.msra.mxu1 %v4726_v25 }
0x12d3   : > { %1575 = vmatprep.subr.bf16.mxu1 %v4301_v3 }
0x12d6   : > { %1576 = vmatpush1.bf16.msra.mxu1 %v4730_v26 }
0x12d7   : > { %1577 = vmatprep.subr.bf16.mxu1 %v4301_v3 }
0x12da   : > { %1578 = vmatpush1.bf16.msra.mxu1 %v4734_v27 }
0x12db   : > { %1579 = vmatprep.subr.bf16.mxu1 %v4301_v3 }
0x12de   : > { %1580 = vmatpush1.bf16.msra.mxu1 %v4738_v28 }
0x12df   : > { %3527 = vmatprep.subr.bf16.mxu1 %v4302_v5 }
0x12e1   : > { %1590 = vmatmul.mubr.bf16.vlgmr.msra.gmra.mrb[24].mxu1 %v1545_v2 }
0x12e2   : > { %3528 = vmatpush3.bf16.msra.mxu1 %v4688_v8  ;;  %3531 = vmatprep.mubr.msk.bf16.mxu1 %vm4303_vm1, %v4302_v5 }
0x12e3   : > { %3529 = vmatprep.subr.bf16.mxu1 %v4302_v5 }
0x12e6   : > { %3530 = vmatpush3.bf16.msra.mxu1 %v4692_v9 }
0x12e7   : > { %1849 = vmatprep.subr.bf16.mxu1 %v4301_v3 }
0x1384   : > { %v1524_v4 = vpop.f32.mrb[20].mxu1 }
0x1385   : > { %v3517_v6 = vpop.f32.mrb[21].mxu1 }
0x1386   : > { %v1527_v7 = vpop.f32.mrb[22].mxu1 }
0x1387   : > { %v3518_v12 = vpop.f32.mrb[23].mxu1 }
0x13b4   : > { %v1591_v29 = vpop.f32.mrb[24].mxu1 }
0x13b5   : > { %v1592_v30 = vadd.f32 %v1591_v29, %v1524_v4  ;;  %v1593_v31 = vpop.f32.mrb[25].mxu1 }
0x13b6   : > { %v1594_v32 = vpop.f32.mrb[26].mxu1 }
0x13b7   : > { %v1597_v33 = vadd.f32 %v4750_v34, %v1592_v30  ;;  %v1595_v8 = vpop.f32.mrb[27].mxu1  ;;  %v3355_v30 = vld.sshfl [vmem:[%s4645_s30 + $0x10] sm:$0x11 pattern:$0x75316420] }
0x13b8   : > { %v1830_v31 = vcombine.high %v3355_v30, %v3355_v30  ;;  %v5129_v8 = vld [vmem:[#allocation11 + $0x28] sm:$0xff]  }
0x13b9   : > { %3807 = vtanh.f32 %v1597_v33  ;;  %v3347_v36 = vmul.f32 -1.442695, %v1597_v33 }
0x13ba   : > { %v1844_v32 = vrot.slane %v1830_v31, %v4707_v21 }
0x13bb   : > { %3809 = vpow2.f32 %v3347_v36  ;;  %v5137_v36 = vld [vmem:[#allocation11 + $0x38] sm:$0xff]  }
0x13c3   : > { %v3808_v35 = vpop.eup %3807 }
0x13c4   : > { %1607 = vrot.lane.b32.xlu1 %v3808_v35, %s4305_s28  ;;  %v5133_v35 = vld [vmem:[#allocation11 + $0x30] sm:$0xff]  }
0x13c5   : > { %v3810_v9 = vpop.eup %3809 }
0x13c6   : > { %v1601_v39 = vadd.f32 1.0, %v3810_v9  ;;  %v5141_v9 = vld [vmem:[#allocation11 + $0x40] sm:$0xff]  }
0x13c8   : > { %3811 = vrcp.f32 %v1601_v39  ;;  %v5145_v39 = vld [vmem:[#allocation11 + $0x48] sm:$0xff]  }
0x13d2   : > { %v3812_v40 = vpop.eup %3811 }
0x13d3   : > { %v1605_v43 = vmul.f32 %v3812_v40, %v4996_v10 }
0x1436   : > { %v1608_v41 = vpop.permute.xlu1 %1607 }
0x1437   : > { %v1610_v42 = vmul.f32 %v3812_v40, %v1608_v41  ;;  %v1837_v41 = vrot.slane %v3355_v30, %v4707_v21 }
0x1439   : > { %1612 = vrot.lane.b32.xlu0 %v1610_v42, %s4305_s28  ;;  %v5154_v42 = vld [vmem:[#allocation11 + $0x58] sm:$0xff]  }
0x14ab   : > { %v1613_v44 = vpop.permute.xlu0 %1612 }
0x14ac   : > { %v5044_v45 = vadd.f32 %v1613_v44, %v1605_v43 }
0x14ae   : > { %3813 = vtanh.f32 %v5044_v45 }
0x14b8   : > { %v3814_v46 = vpop.eup %3813 }
0x14b9   : > { %1618 = vrot.lane.b32.xlu1 %v3814_v46, %s4305_s28 }
0x152b   : > { %v1619_v47 = vpop.permute.xlu1 %1618 }
0x152c   : > { %v5048_v48 = vmul.f32 %v3812_v40, %v1619_v47  ;;  %v5149_v40 = vld [vmem:[#allocation11 + $0x50] sm:$0xff]  }
0x152e   : > { %v1629_v49 = vpack.c.bf16 %v5048_v48, %v5048_v48 }
0x1530   : > { %1631 = vrot.lane.b32.xlu0 %v1629_v49, %s4306_s24 }
0x15a2   : > { %v1632_v54 = vpop.permute.xlu0 %1631 }
0x15a3   : > { %3524 = vmatmul.mubr.msk.bf16.vlgmr.msra.gmra.mrb[28].mxu0 %vm526_vm2, %v1632_v54 }
0x15a4   : > { %1704 = vmatpush1.bf16.msra.mxu0 %v5056_v56  ;;  %3351 = vmatprep.mubr.msk.bf16.mxu0 %vm666_vm3, %v1698_v53  ;;  %v5164_v53 = vld [vmem:[#allocation14] ss:$0 sm:$0xff] }
0x15a5   : > { %1705 = vmatprep.subr.bf16.mxu0 %v4301_v3 }
0x15a8   : > { %1706 = vmatpush1.bf16.msra.mxu0 %v5061_v57 }
0x15a9   : > { %1707 = vmatprep.subr.bf16.mxu0 %v4301_v3 }
0x15ac   : > { %1708 = vmatpush1.bf16.msra.mxu0 %v5065_v58 }
0x15ad   : > { %1709 = vmatprep.subr.bf16.mxu0 %v4301_v3 }
0x15b0   : > { %1710 = vmatpush1.bf16.msra.mxu0 %v5069_v59 }
0x15b1   : > { %1711 = vmatprep.subr.bf16.mxu0 %v4301_v3 }
0x15b4   : > { %1712 = vmatpush1.bf16.msra.mxu0 %v5073_v60 }
0x15b5   : > { %1713 = vmatprep.subr.bf16.mxu0 %v4301_v3 }
0x15b8   : > { %1714 = vmatpush1.bf16.msra.mxu0 %v4703_v18  ;;  %v1691_v18 = vrot.slane %v3350_v50, %v4707_v21 }
0x15b9   : > { %1715 = vmatprep.subr.bf16.mxu0 %v4301_v3 }
0x15bc   : > { %1716 = vmatpush1.bf16.msra.mxu0 %v4714_v22  ;;  %v5092_v22 = vld [vmem:[#allocation13] sm:$0xff]  }
0x15bd   : > { %1717 = vmatprep.subr.bf16.mxu0 %v4301_v3 }
0x15c0   : > { %1718 = vmatpush1.bf16.msra.mxu0 %v4722_v24  ;;  %v5098_v24 = vld [vmem:[#allocation13 + $0x8] sm:$0xff]  }
0x15c1   : > { %1719 = vmatprep.subr.bf16.mxu0 %v4301_v3 }
0x15c4   : > { %1720 = vmatpush1.bf16.msra.mxu0 %v4726_v25 }
0x15c5   : > { %1721 = vmatprep.subr.bf16.mxu0 %v4301_v3 }
0x15c8   : > { %1722 = vmatpush1.bf16.msra.mxu0 %v4730_v26 }
0x15c9   : > { %1723 = vmatprep.subr.bf16.mxu0 %v4301_v3 }
0x15cc   : > { %1724 = vmatpush1.bf16.msra.mxu0 %v4734_v27 }
0x15cd   : > { %1725 = vmatprep.subr.bf16.mxu0 %v4301_v3 }
0x15d0   : > { %1726 = vmatpush1.bf16.msra.mxu0 %v4738_v28 }
0x15d1   : > { %3535 = vmatprep.subr.bf16.mxu0 %v4302_v5 }
0x15d3   : > { %1736 = vmatmul.mubr.bf16.vlgmr.msra.gmra.mrb[32].mxu0 %v1691_v18 }
0x15d4   : > { %3536 = vmatpush3.bf16.msra.mxu0 %v5092_v22  ;;  %3539 = vmatprep.mubr.msk.bf16.mxu0 %vm4303_vm1, %v4302_v5 }
0x15d5   : > { %3537 = vmatprep.subr.bf16.mxu0 %v4302_v5 }
0x15d8   : > { %3538 = vmatpush3.bf16.msra.mxu0 %v5098_v24 }
0x15d9   : > { %1995 = vmatprep.subr.bf16.mxu0 %v4301_v3 }
0x1676   : > { %v1670_v25 = vpop.f32.mrb[28].mxu0 }
0x1677   : > { %v3525_v26 = vpop.f32.mrb[29].mxu0 }
0x1678   : > { %v1673_v27 = vpop.f32.mrb[30].mxu0 }
0x1679   : > { %v3526_v28 = vpop.f32.mrb[31].mxu0 }
0x16a6   : > { %v1737_v61 = vpop.f32.mrb[32].mxu0 }
0x16a7   : > { %v1738_v62 = vadd.f32 %v1737_v61, %v1670_v25  ;;  %v1739_v63 = vpop.f32.mrb[33].mxu0 }
0x16a8   : > { %v1740_v0 = vpop.f32.mrb[34].mxu0 }
0x16a9   : > { %v1743_v1 = vadd.f32 %v4750_v34, %v1738_v62  ;;  %v1741_v10 = vpop.f32.mrb[35].mxu0 }
0x16ab   : > { %3815 = vtanh.f32 %v1743_v1  ;;  %v3352_v14 = vmul.f32 -1.442695, %v1743_v1 }
0x16ad   : > { %3817 = vpow2.f32 %v3352_v14 }
0x16b5   : > { %v3816_v11 = vpop.eup %3815 }
0x16b6   : > { %1753 = vrot.lane.b32.xlu1 %v3816_v11, %s4305_s28 }
0x16b7   : > { %v3818_v16 = vpop.eup %3817 }
0x16b8   : > { %v1747_v17 = vadd.f32 1.0, %v3818_v16 }
0x16ba   : > { %3819 = vrcp.f32 %v1747_v17 }
0x16c4   : > { %v3820_v19 = vpop.eup %3819 }
0x16c5   : > { %v1751_v2 = vmul.f32 %v3820_v19, %v5044_v45 }
0x1728   : > { %v1754_v20 = vpop.permute.xlu1 %1753 }
0x1729   : > { %v1756_v23 = vmul.f32 %v3820_v19, %v1754_v20 }
0x172b   : > { %1758 = vrot.lane.b32.xlu0 %v1756_v23, %s4305_s28 }
0x179d   : > { %v1759_v4 = vpop.permute.xlu0 %1758 }
0x179e   : > { %v5106_v34 = vadd.f32 %v1759_v4, %v1751_v2 }
0x17a0   : > { %3821 = vtanh.f32 %v5106_v34 }
0x17aa   : > { %v3822_v6 = vpop.eup %3821 }
0x17ab   : > { %1764 = vrot.lane.b32.xlu1 %v3822_v6, %s4305_s28 }
0x181d   : > { %v1765_v7 = vpop.permute.xlu1 %1764 }
0x181e   : > { %v5110_v12 = vmul.f32 %v3820_v19, %v1765_v7  ;;  %v3360_v19 = vld.sshfl [vmem:[%s4645_s30 + $0x12] sm:$0x11 pattern:$0x75316420] }
0x181f   : > { %v1976_v20 = vcombine.high %v3360_v19, %v3360_v19  ;;  %v1983_v4 = vrot.slane %v3360_v19, %v4707_v21 }
0x1820   : > { %v1775_v29 = vpack.c.bf16 %v5110_v12, %v5110_v12 }
0x1821   : > { %v1990_v23 = vrot.slane %v1976_v20, %v4707_v21 }
0x1822   : > { %1777 = vrot.lane.b32.xlu0 %v1775_v29, %s4306_s24 }
0x1894   : > { %v1778_v33 = vpop.permute.xlu0 %1777 }
0x1895   : > { %3532 = vmatmul.mubr.msk.bf16.vlgmr.msra.gmra.mrb[28].mxu1 %vm526_vm2, %v1778_v33 }
0x1896   : > { %1850 = vmatpush1.bf16.msra.mxu1 %v5056_v56  ;;  %3356 = vmatprep.mubr.msk.bf16.mxu1 %vm666_vm3, %v1844_v32 }
0x1897   : > { %1851 = vmatprep.subr.bf16.mxu1 %v4301_v3 }
0x189a   : > { %1852 = vmatpush1.bf16.msra.mxu1 %v5061_v57 }
0x189b   : > { %1853 = vmatprep.subr.bf16.mxu1 %v4301_v3 }
0x189e   : > { %1854 = vmatpush1.bf16.msra.mxu1 %v5065_v58 }
0x189f   : > { %1855 = vmatprep.subr.bf16.mxu1 %v4301_v3 }
0x18a2   : > { %1856 = vmatpush1.bf16.msra.mxu1 %v5069_v59 }
0x18a3   : > { %1857 = vmatprep.subr.bf16.mxu1 %v4301_v3 }
0x18a6   : > { %1858 = vmatpush1.bf16.msra.mxu1 %v5073_v60 }
0x18a7   : > { %1859 = vmatprep.subr.bf16.mxu1 %v4301_v3 }
0x18aa   : > { %1860 = vmatpush1.bf16.msra.mxu1 %v5129_v8 }
0x18ab   : > { %1861 = vmatprep.subr.bf16.mxu1 %v4301_v3 }
0x18ae   : > { %1862 = vmatpush1.bf16.msra.mxu1 %v5133_v35 }
0x18af   : > { %1863 = vmatprep.subr.bf16.mxu1 %v4301_v3 }
0x18b2   : > { %1864 = vmatpush1.bf16.msra.mxu1 %v5137_v36 }
0x18b3   : > { %1865 = vmatprep.subr.bf16.mxu1 %v4301_v3 }
0x18b6   : > { %1866 = vmatpush1.bf16.msra.mxu1 %v5141_v9 }
0x18b7   : > { %1867 = vmatprep.subr.bf16.mxu1 %v4301_v3 }
0x18ba   : > { %1868 = vmatpush1.bf16.msra.mxu1 %v5145_v39 }
0x18bb   : > { %1869 = vmatprep.subr.bf16.mxu1 %v4301_v3 }
0x18be   : > { %1870 = vmatpush1.bf16.msra.mxu1 %v5149_v40 }
0x18bf   : > { %1871 = vmatprep.subr.bf16.mxu1 %v4301_v3 }
0x18c2   : > { %1872 = vmatpush1.bf16.msra.mxu1 %v5154_v42 }
0x18c3   : > { %3543 = vmatprep.subr.bf16.mxu1 %v4302_v5 }
0x18c5   : > { %1882 = vmatmul.mubr.bf16.vlgmr.msra.gmra.mrb[32].mxu1 %v1837_v41 }
0x18c6   : > { %3544 = vmatpush3.bf16.msra.mxu1 %v5092_v22  ;;  %3547 = vmatprep.mubr.msk.bf16.mxu1 %vm4303_vm1, %v4302_v5 }
0x18c7   : > { %3545 = vmatprep.subr.bf16.mxu1 %v4302_v5 }
0x18ca   : > { %3546 = vmatpush3.bf16.msra.mxu1 %v5098_v24 }
0x18cb   : > { %2141 = vmatprep.subr.bf16.mxu1 %v4301_v3 }
0x1968   : > { %v1816_v43 = vpop.f32.mrb[28].mxu1 }
0x1969   : > { %v3533_v44 = vpop.f32.mrb[29].mxu1 }
0x196a   : > { %v1819_v45 = vpop.f32.mrb[30].mxu1 }
0x196b   : > { %v3534_v46 = vpop.f32.mrb[31].mxu1 }
0x1998   : > { %v1883_v47 = vpop.f32.mrb[32].mxu1 }
0x1999   : > { %v1884_v49 = vadd.f32 %v1883_v47, %v1816_v43  ;;  %v1885_v50 = vpop.f32.mrb[33].mxu1 }
0x199a   : > { %v1886_v51 = vpop.f32.mrb[34].mxu1 }
0x199b   : > { %v1889_v54 = vadd.f32 %v5164_v53, %v1884_v49  ;;  %v1887_v18 = vpop.f32.mrb[35].mxu1 }
0x199d   : > { %3823 = vtanh.f32 %v1889_v54  ;;  %v3357_v26 = vmul.f32 -1.442695, %v1889_v54 }
0x199f   : > { %3825 = vpow2.f32 %v3357_v26 }
0x19a7   : > { %v3824_v25 = vpop.eup %3823 }
0x19a8   : > { %1899 = vrot.lane.b32.xlu1 %v3824_v25, %s4305_s28 }
0x19a9   : > { %v3826_v27 = vpop.eup %3825 }
0x19aa   : > { %v1893_v28 = vadd.f32 1.0, %v3826_v27 }
0x19ac   : > { %3827 = vrcp.f32 %v1893_v28 }
0x19b6   : > { %v3828_v61 = vpop.eup %3827 }
0x19b7   : > { %v1897_v0 = vmul.f32 %v3828_v61, %v5106_v34 }
0x1a1a   : > { %v1900_v62 = vpop.permute.xlu1 %1899 }
0x1a1b   : > { %v1902_v63 = vmul.f32 %v3828_v61, %v1900_v62  ;;  %v3365_v62 = vld.sshfl [vmem:[%s4645_s30 + $0x14] sm:$0x11 pattern:$0x75316420] }
0x1a1d   : > { %1904 = vrot.lane.b32.xlu0 %v1902_v63, %s4305_s28  ;;  %v2122_v63 = vcombine.high %v3365_v62, %v3365_v62 }
0x1a8f   : > { %v1905_v1 = vpop.permute.xlu0 %1904 }
0x1a90   : > { %v5170_v10 = vadd.f32 %v1905_v1, %v1897_v0  ;;  %v2136_v0 = vrot.slane %v2122_v63, %v4707_v21 }
0x1a92   : > { %3829 = vtanh.f32 %v5170_v10 }
0x1a9c   : > { %v3830_v11 = vpop.eup %3829 }
0x1a9d   : > { %1910 = vrot.lane.b32.xlu1 %v3830_v11, %s4305_s28 }
0x1b0f   : > { %v1911_v14 = vpop.permute.xlu1 %1910 }
0x1b10   : > { %v5174_v16 = vmul.f32 %v3828_v61, %v1911_v14 }
0x1b12   : > { %v1921_v17 = vpack.c.bf16 %v5174_v16, %v5174_v16 }
0x1b14   : > { %1923 = vrot.lane.b32.xlu0 %v1921_v17, %s4306_s24 }
0x1b86   : > { %v1924_v2 = vpop.permute.xlu0 %1923 }
0x1b87   : > { %3540 = vmatmul.mubr.msk.bf16.vlgmr.msra.gmra.mrb[36].mxu0 %vm526_vm2, %v1924_v2 }
0x1b88   : > { %1996 = vmatpush1.bf16.msra.mxu0 %v5056_v56  ;;  %3361 = vmatprep.mubr.msk.bf16.mxu0 %vm666_vm3, %v1990_v23 }
0x1b89   : > { %1997 = vmatprep.subr.bf16.mxu0 %v4301_v3 }
0x1b8c   : > { %1998 = vmatpush1.bf16.msra.mxu0 %v5061_v57 }
0x1b8d   : > { %1999 = vmatprep.subr.bf16.mxu0 %v4301_v3 }
0x1b90   : > { %2000 = vmatpush1.bf16.msra.mxu0 %v5065_v58 }
0x1b91   : > { %2001 = vmatprep.subr.bf16.mxu0 %v4301_v3 }
0x1b94   : > { %2002 = vmatpush1.bf16.msra.mxu0 %v5069_v59 }
0x1b95   : > { %2003 = vmatprep.subr.bf16.mxu0 %v4301_v3 }
0x1b98   : > { %2004 = vmatpush1.bf16.msra.mxu0 %v5073_v60 }
0x1b99   : > { %2005 = vmatprep.subr.bf16.mxu0 %v4301_v3 }
0x1b9c   : > { %2006 = vmatpush1.bf16.msra.mxu0 %v5129_v8 }
0x1b9d   : > { %2007 = vmatprep.subr.bf16.mxu0 %v4301_v3 }
0x1ba0   : > { %2008 = vmatpush1.bf16.msra.mxu0 %v5133_v35 }
0x1ba1   : > { %2009 = vmatprep.subr.bf16.mxu0 %v4301_v3 }
0x1ba4   : > { %2010 = vmatpush1.bf16.msra.mxu0 %v5137_v36 }
0x1ba5   : > { %2011 = vmatprep.subr.bf16.mxu0 %v4301_v3 }
0x1ba8   : > { %2012 = vmatpush1.bf16.msra.mxu0 %v5141_v9 }
0x1ba9   : > { %2013 = vmatprep.subr.bf16.mxu0 %v4301_v3 }
0x1bac   : > { %2014 = vmatpush1.bf16.msra.mxu0 %v5145_v39 }
0x1bad   : > { %2015 = vmatprep.subr.bf16.mxu0 %v4301_v3 }
0x1bb0   : > { %2016 = vmatpush1.bf16.msra.mxu0 %v5149_v40 }
0x1bb1   : > { %2017 = vmatprep.subr.bf16.mxu0 %v4301_v3 }
0x1bb4   : > { %2018 = vmatpush1.bf16.msra.mxu0 %v5154_v42 }
0x1bb5   : > { %3551 = vmatprep.subr.bf16.mxu0 %v4302_v5 }
0x1bb7   : > { %2028 = vmatmul.mubr.bf16.vlgmr.msra.gmra.mrb[40].mxu0 %v1983_v4 }
0x1bb8   : > { %3552 = vmatpush3.bf16.msra.mxu0 %v5092_v22  ;;  %3555 = vmatprep.mubr.msk.bf16.mxu0 %vm4303_vm1, %v4302_v5 }
0x1bb9   : > { %3553 = vmatprep.subr.bf16.mxu0 %v4302_v5 }
0x1bbc   : > { %3554 = vmatpush3.bf16.msra.mxu0 %v5098_v24 }
0x1bbd   : > { %2287 = vmatprep.subr.bf16.mxu0 %v4301_v3 }
0x1c5a   : > { %v1962_v34 = vpop.f32.mrb[36].mxu0 }
0x1c5b   : > { %v3541_v6 = vpop.f32.mrb[37].mxu0 }
0x1c5c   : > { %v1965_v7 = vpop.f32.mrb[38].mxu0 }
0x1c5d   : > { %v3542_v29 = vpop.f32.mrb[39].mxu0 }
0x1c8a   : > { %v2029_v30 = vpop.f32.mrb[40].mxu0 }
0x1c8b   : > { %v2030_v31 = vadd.f32 %v2029_v30, %v1962_v34  ;;  %v2031_v32 = vpop.f32.mrb[41].mxu0 }
0x1c8c   : > { %v2032_v33 = vpop.f32.mrb[42].mxu0 }
0x1c8d   : > { %v2035_v41 = vadd.f32 %v5164_v53, %v2030_v31  ;;  %v2033_v43 = vpop.f32.mrb[43].mxu0 }
0x1c8f   : > { %3831 = vtanh.f32 %v2035_v41  ;;  %v3362_v45 = vmul.f32 -1.442695, %v2035_v41 }
0x1c91   : > { %3833 = vpow2.f32 %v3362_v45 }
0x1c99   : > { %v3832_v44 = vpop.eup %3831 }
0x1c9a   : > { %2045 = vrot.lane.b32.xlu1 %v3832_v44, %s4305_s28 }
0x1c9b   : > { %v3834_v46 = vpop.eup %3833 }
0x1c9c   : > { %v2039_v47 = vadd.f32 1.0, %v3834_v46 }
0x1c9e   : > { %3835 = vrcp.f32 %v2039_v47 }
0x1ca8   : > { %v3836_v49 = vpop.eup %3835 }
0x1ca9   : > { %v2043_v54 = vmul.f32 %v3836_v49, %v5170_v10  ;;  %v2129_v10 = vrot.slane %v3365_v62, %v4707_v21 }
0x1d0c   : > { %v2046_v50 = vpop.permute.xlu1 %2045 }
0x1d0d   : > { %v2048_v51 = vmul.f32 %v3836_v49, %v2046_v50 }
0x1d0f   : > { %2050 = vrot.lane.b32.xlu0 %v2048_v51, %s4305_s28  ;;  %v3370_v51 = vld.sshfl [vmem:[%s4645_s30 + $0x16] sm:$0x11 pattern:$0x75316420] }
0x1d81   : > { %v2051_v18 = vpop.permute.xlu0 %2050 }
0x1d82   : > { %v5218_v25 = vadd.f32 %v2051_v18, %v2043_v54  ;;  %v2268_v54 = vcombine.high %v3370_v51, %v3370_v51 }
0x1d84   : > { %3837 = vtanh.f32 %v5218_v25  ;;  %v2282_v18 = vrot.slane %v2268_v54, %v4707_v21 }
0x1d8e   : > { %v3838_v26 = vpop.eup %3837 }
0x1d8f   : > { %2056 = vrot.lane.b32.xlu1 %v3838_v26, %s4305_s28  ;;  %v2275_v26 = vrot.slane %v3370_v51, %v4707_v21 }
0x1e01   : > { %v2057_v27 = vpop.permute.xlu1 %2056 }
0x1e02   : > { %v5222_v28 = vmul.f32 %v3836_v49, %v2057_v27 }
0x1e04   : > { %v2067_v61 = vpack.c.bf16 %v5222_v28, %v5222_v28 }
0x1e06   : > { %2069 = vrot.lane.b32.xlu0 %v2067_v61, %s4306_s24 }
0x1e78   : > { %v2070_v1 = vpop.permute.xlu0 %2069 }
0x1e79   : > { %3548 = vmatmul.mubr.msk.bf16.vlgmr.msra.gmra.mrb[36].mxu1 %vm526_vm2, %v2070_v1 }
0x1e7a   : > { %2142 = vmatpush1.bf16.msra.mxu1 %v5056_v56  ;;  %3366 = vmatprep.mubr.msk.bf16.mxu1 %vm666_vm3, %v2136_v0 }
0x1e7b   : > { %2143 = vmatprep.subr.bf16.mxu1 %v4301_v3 }
0x1e7e   : > { %2144 = vmatpush1.bf16.msra.mxu1 %v5061_v57 }
0x1e7f   : > { %2145 = vmatprep.subr.bf16.mxu1 %v4301_v3 }
0x1e82   : > { %2146 = vmatpush1.bf16.msra.mxu1 %v5065_v58 }
0x1e83   : > { %2147 = vmatprep.subr.bf16.mxu1 %v4301_v3 }
0x1e86   : > { %2148 = vmatpush1.bf16.msra.mxu1 %v5069_v59 }
0x1e87   : > { %2149 = vmatprep.subr.bf16.mxu1 %v4301_v3 }
0x1e8a   : > { %2150 = vmatpush1.bf16.msra.mxu1 %v5073_v60 }
0x1e8b   : > { %2151 = vmatprep.subr.bf16.mxu1 %v4301_v3 }
0x1e8e   : > { %2152 = vmatpush1.bf16.msra.mxu1 %v5129_v8 }
0x1e8f   : > { %2153 = vmatprep.subr.bf16.mxu1 %v4301_v3 }
0x1e92   : > { %2154 = vmatpush1.bf16.msra.mxu1 %v5133_v35 }
0x1e93   : > { %2155 = vmatprep.subr.bf16.mxu1 %v4301_v3 }
0x1e96   : > { %2156 = vmatpush1.bf16.msra.mxu1 %v5137_v36 }
0x1e97   : > { %2157 = vmatprep.subr.bf16.mxu1 %v4301_v3 }
0x1e9a   : > { %2158 = vmatpush1.bf16.msra.mxu1 %v5141_v9 }
0x1e9b   : > { %2159 = vmatprep.subr.bf16.mxu1 %v4301_v3 }
0x1e9e   : > { %2160 = vmatpush1.bf16.msra.mxu1 %v5145_v39 }
0x1e9f   : > { %2161 = vmatprep.subr.bf16.mxu1 %v4301_v3 }
0x1ea2   : > { %2162 = vmatpush1.bf16.msra.mxu1 %v5149_v40 }
0x1ea3   : > { %2163 = vmatprep.subr.bf16.mxu1 %v4301_v3 }
0x1ea6   : > { %2164 = vmatpush1.bf16.msra.mxu1 %v5154_v42 }
0x1ea7   : > { %3559 = vmatprep.subr.bf16.mxu1 %v4302_v5 }
0x1ea9   : > { %2174 = vmatmul.mubr.bf16.vlgmr.msra.gmra.mrb[40].mxu1 %v2129_v10 }
0x1eaa   : > { %3560 = vmatpush3.bf16.msra.mxu1 %v5092_v22  ;;  %3563 = vmatprep.mubr.msk.bf16.mxu1 %vm4303_vm1, %v4302_v5 }
0x1eab   : > { %3561 = vmatprep.subr.bf16.mxu1 %v4302_v5 }
0x1eae   : > { %3562 = vmatpush3.bf16.msra.mxu1 %v5098_v24 }
0x1eaf   : > { %2433 = vmatprep.subr.bf16.mxu1 %v4301_v3 }
0x1f4c   : > { %v2108_v11 = vpop.f32.mrb[36].mxu1 }
0x1f4d   : > { %v3549_v14 = vpop.f32.mrb[37].mxu1 }
0x1f4e   : > { %v2111_v17 = vpop.f32.mrb[38].mxu1 }
0x1f4f   : > { %v3550_v19 = vpop.f32.mrb[39].mxu1 }
0x1f7c   : > { %v2175_v20 = vpop.f32.mrb[40].mxu1 }
0x1f7d   : > { %v2176_v23 = vadd.f32 %v2175_v20, %v2108_v11  ;;  %v2177_v2 = vpop.f32.mrb[41].mxu1 }
0x1f7e   : > { %v2178_v4 = vpop.f32.mrb[42].mxu1 }
0x1f7f   : > { %v2181_v34 = vadd.f32 %v5164_v53, %v2176_v23  ;;  %v2179_v6 = vpop.f32.mrb[43].mxu1 }
0x1f81   : > { %3839 = vtanh.f32 %v2181_v34  ;;  %v3367_v29 = vmul.f32 -1.442695, %v2181_v34 }
0x1f83   : > { %3841 = vpow2.f32 %v3367_v29 }
0x1f8b   : > { %v3840_v7 = vpop.eup %3839 }
0x1f8c   : > { %2191 = vrot.lane.b32.xlu1 %v3840_v7, %s4305_s28 }
0x1f8d   : > { %v3842_v30 = vpop.eup %3841 }
0x1f8e   : > { %v2185_v31 = vadd.f32 1.0, %v3842_v30 }
0x1f90   : > { %3843 = vrcp.f32 %v2185_v31 }
0x1f9a   : > { %v3844_v32 = vpop.eup %3843 }
0x1f9b   : > { %v2189_v43 = vmul.f32 %v3844_v32, %v5218_v25 }
0x1ffe   : > { %v2192_v33 = vpop.permute.xlu1 %2191 }
0x1fff   : > { %v2194_v41 = vmul.f32 %v3844_v32, %v2192_v33 }
0x2001   : > { %2196 = vrot.lane.b32.xlu0 %v2194_v41, %s4305_s28 }
0x2073   : > { %v2197_v44 = vpop.permute.xlu0 %2196 }
0x2074   : > { %v5266_v45 = vadd.f32 %v2197_v44, %v2189_v43  ;;  %v3375_v43 = vld.sshfl [vmem:[%s4645_s30 + $0x18] sm:$0x11 pattern:$0x75316420] }
0x2075   : > { %v2414_v44 = vcombine.high %v3375_v43, %v3375_v43 }
0x2076   : > { %3845 = vtanh.f32 %v5266_v45 }
0x2080   : > { %v3846_v46 = vpop.eup %3845 }
0x2081   : > { %2202 = vrot.lane.b32.xlu1 %v3846_v46, %s4305_s28 }
0x20f3   : > { %v2203_v47 = vpop.permute.xlu1 %2202 }
0x20f4   : > { %v5270_v49 = vmul.f32 %v3844_v32, %v2203_v47  ;;  %v2421_v47 = vrot.slane %v3375_v43, %v4707_v21 }
0x20f6   : > { %v2213_v50 = vpack.c.bf16 %v5270_v49, %v5270_v49 }
0x20f8   : > { %2215 = vrot.lane.b32.xlu0 %v2213_v50, %s4306_s24 }
0x216a   : > { %v2216_v25 = vpop.permute.xlu0 %2215 }
0x216b   : > { %3556 = vmatmul.mubr.msk.bf16.vlgmr.msra.gmra.mrb[44].mxu0 %vm526_vm2, %v2216_v25 }
0x216c   : > { %2288 = vmatpush1.bf16.msra.mxu0 %v5056_v56  ;;  %3371 = vmatprep.mubr.msk.bf16.mxu0 %vm666_vm3, %v2282_v18 }
0x216d   : > { %2289 = vmatprep.subr.bf16.mxu0 %v4301_v3 }
0x2170   : > { %2290 = vmatpush1.bf16.msra.mxu0 %v5061_v57 }
0x2171   : > { %2291 = vmatprep.subr.bf16.mxu0 %v4301_v3 }
0x2174   : > { %2292 = vmatpush1.bf16.msra.mxu0 %v5065_v58 }
0x2175   : > { %2293 = vmatprep.subr.bf16.mxu0 %v4301_v3 }
0x2178   : > { %2294 = vmatpush1.bf16.msra.mxu0 %v5069_v59 }
0x2179   : > { %2295 = vmatprep.subr.bf16.mxu0 %v4301_v3 }
0x217c   : > { %2296 = vmatpush1.bf16.msra.mxu0 %v5073_v60 }
0x217d   : > { %2297 = vmatprep.subr.bf16.mxu0 %v4301_v3 }
0x2180   : > { %2298 = vmatpush1.bf16.msra.mxu0 %v5129_v8 }
0x2181   : > { %2299 = vmatprep.subr.bf16.mxu0 %v4301_v3 }
0x2184   : > { %2300 = vmatpush1.bf16.msra.mxu0 %v5133_v35 }
0x2185   : > { %2301 = vmatprep.subr.bf16.mxu0 %v4301_v3 }
0x2188   : > { %2302 = vmatpush1.bf16.msra.mxu0 %v5137_v36 }
0x2189   : > { %2303 = vmatprep.subr.bf16.mxu0 %v4301_v3 }
0x218c   : > { %2304 = vmatpush1.bf16.msra.mxu0 %v5141_v9 }
0x218d   : > { %2305 = vmatprep.subr.bf16.mxu0 %v4301_v3 }
0x2190   : > { %2306 = vmatpush1.bf16.msra.mxu0 %v5145_v39 }
0x2191   : > { %2307 = vmatprep.subr.bf16.mxu0 %v4301_v3 }
0x2194   : > { %2308 = vmatpush1.bf16.msra.mxu0 %v5149_v40 }
0x2195   : > { %2309 = vmatprep.subr.bf16.mxu0 %v4301_v3 }
0x2198   : > { %2310 = vmatpush1.bf16.msra.mxu0 %v5154_v42 }
0x2199   : > { %3567 = vmatprep.subr.bf16.mxu0 %v4302_v5 }
0x219b   : > { %2320 = vmatmul.mubr.bf16.vlgmr.msra.gmra.mrb[48].mxu0 %v2275_v26 }
0x219c   : > { %3568 = vmatpush3.bf16.msra.mxu0 %v5092_v22  ;;  %3571 = vmatprep.mubr.msk.bf16.mxu0 %vm4303_vm1, %v4302_v5 }
0x219d   : > { %3569 = vmatprep.subr.bf16.mxu0 %v4302_v5 }
0x21a0   : > { %3570 = vmatpush3.bf16.msra.mxu0 %v5098_v24 }
0x21a1   : > { %2579 = vmatprep.subr.bf16.mxu0 %v4301_v3 }
0x223e   : > { %v2254_v27 = vpop.f32.mrb[44].mxu0 }
0x223f   : > { %v3557_v61 = vpop.f32.mrb[45].mxu0 }
0x2240   : > { %v2257_v62 = vpop.f32.mrb[46].mxu0 }
0x2241   : > { %v3558_v63 = vpop.f32.mrb[47].mxu0 }
0x226e   : > { %v2321_v0 = vpop.f32.mrb[48].mxu0 }
0x226f   : > { %v2322_v1 = vadd.f32 %v2321_v0, %v2254_v27  ;;  %v2323_v10 = vpop.f32.mrb[49].mxu0 }
0x2270   : > { %v2324_v11 = vpop.f32.mrb[50].mxu0 }
0x2271   : > { %v2327_v14 = vadd.f32 %v5164_v53, %v2322_v1  ;;  %v2325_v17 = vpop.f32.mrb[51].mxu0 }
0x2273   : > { %3847 = vtanh.f32 %v2327_v14  ;;  %v3372_v20 = vmul.f32 -1.442695, %v2327_v14 }
0x2275   : > { %3849 = vpow2.f32 %v3372_v20 }
0x227d   : > { %v3848_v19 = vpop.eup %3847 }
0x227e   : > { %2337 = vrot.lane.b32.xlu1 %v3848_v19, %s4305_s28 }
0x227f   : > { %v3850_v23 = vpop.eup %3849 }
0x2280   : > { %v2331_v2 = vadd.f32 1.0, %v3850_v23 }
0x2282   : > { %3851 = vrcp.f32 %v2331_v2 }
0x228c   : > { %v3852_v4 = vpop.eup %3851 }
0x228d   : > { %v2335_v7 = vmul.f32 %v3852_v4, %v5266_v45  ;;  %v2428_v45 = vrot.slane %v2414_v44, %v4707_v21 }
0x22f0   : > { %v2338_v34 = vpop.permute.xlu1 %2337 }
0x22f1   : > { %v2340_v6 = vmul.f32 %v3852_v4, %v2338_v34 }
0x22f3   : > { %2342 = vrot.lane.b32.xlu0 %v2340_v6, %s4305_s28 }
0x2365   : > { %v2343_v29 = vpop.permute.xlu0 %2342 }
0x2366   : > { %v5314_v30 = vadd.f32 %v2343_v29, %v2335_v7  ;;  %v3380_v29 = vld.sshfl [vmem:[%s4645_s30 + $0x1a] sm:$0x11 pattern:$0x75316420] }
0x2368   : > { %3853 = vtanh.f32 %v5314_v30 }
0x2372   : > { %v3854_v31 = vpop.eup %3853 }
0x2373   : > { %2348 = vrot.lane.b32.xlu1 %v3854_v31, %s4305_s28  ;;  %v2560_v31 = vcombine.high %v3380_v29, %v3380_v29 }
0x23e5   : > { %v2349_v32 = vpop.permute.xlu1 %2348 }
0x23e6   : > { %v5318_v33 = vmul.f32 %v3852_v4, %v2349_v32 }
0x23e8   : > { %v2359_v41 = vpack.c.bf16 %v5318_v33, %v5318_v33 }
0x23ea   : > { %2361 = vrot.lane.b32.xlu0 %v2359_v41, %s4306_s24  ;;  %v2567_v41 = vrot.slane %v3380_v29, %v4707_v21 }
0x245c   : > { %v2362_v46 = vpop.permute.xlu0 %2361 }
0x245d   : > { %3564 = vmatmul.mubr.msk.bf16.vlgmr.msra.gmra.mrb[44].mxu1 %vm526_vm2, %v2362_v46 }
0x245e   : > { %2434 = vmatpush1.bf16.msra.mxu1 %v5056_v56  ;;  %3376 = vmatprep.mubr.msk.bf16.mxu1 %vm666_vm3, %v2428_v45 }
0x245f   : > { %2435 = vmatprep.subr.bf16.mxu1 %v4301_v3 }
0x2462   : > { %2436 = vmatpush1.bf16.msra.mxu1 %v5061_v57 }
0x2463   : > { %2437 = vmatprep.subr.bf16.mxu1 %v4301_v3 }
0x2466   : > { %2438 = vmatpush1.bf16.msra.mxu1 %v5065_v58 }
0x2467   : > { %2439 = vmatprep.subr.bf16.mxu1 %v4301_v3 }
0x246a   : > { %2440 = vmatpush1.bf16.msra.mxu1 %v5069_v59 }
0x246b   : > { %2441 = vmatprep.subr.bf16.mxu1 %v4301_v3 }
0x246e   : > { %2442 = vmatpush1.bf16.msra.mxu1 %v5073_v60 }
0x246f   : > { %2443 = vmatprep.subr.bf16.mxu1 %v4301_v3 }
0x2472   : > { %2444 = vmatpush1.bf16.msra.mxu1 %v5129_v8 }
0x2473   : > { %2445 = vmatprep.subr.bf16.mxu1 %v4301_v3 }
0x2476   : > { %2446 = vmatpush1.bf16.msra.mxu1 %v5133_v35 }
0x2477   : > { %2447 = vmatprep.subr.bf16.mxu1 %v4301_v3 }
0x247a   : > { %2448 = vmatpush1.bf16.msra.mxu1 %v5137_v36 }
0x247b   : > { %2449 = vmatprep.subr.bf16.mxu1 %v4301_v3 }
0x247e   : > { %2450 = vmatpush1.bf16.msra.mxu1 %v5141_v9 }
0x247f   : > { %2451 = vmatprep.subr.bf16.mxu1 %v4301_v3 }
0x2482   : > { %2452 = vmatpush1.bf16.msra.mxu1 %v5145_v39 }
0x2483   : > { %2453 = vmatprep.subr.bf16.mxu1 %v4301_v3 }
0x2486   : > { %2454 = vmatpush1.bf16.msra.mxu1 %v5149_v40 }
0x2487   : > { %2455 = vmatprep.subr.bf16.mxu1 %v4301_v3 }
0x248a   : > { %2456 = vmatpush1.bf16.msra.mxu1 %v5154_v42 }
0x248b   : > { %3575 = vmatprep.subr.bf16.mxu1 %v4302_v5 }
0x248d   : > { %2466 = vmatmul.mubr.bf16.vlgmr.msra.gmra.mrb[48].mxu1 %v2421_v47 }
0x248e   : > { %3576 = vmatpush3.bf16.msra.mxu1 %v5092_v22  ;;  %3579 = vmatprep.mubr.msk.bf16.mxu1 %vm4303_vm1, %v4302_v5 }
0x248f   : > { %3577 = vmatprep.subr.bf16.mxu1 %v4302_v5 }
0x2492   : > { %3578 = vmatpush3.bf16.msra.mxu1 %v5098_v24 }
0x2493   : > { %2725 = vmatprep.subr.bf16.mxu1 %v4301_v3 }
0x2530   : > { %v2400_v50 = vpop.f32.mrb[44].mxu1 }
0x2531   : > { %v3565_v51 = vpop.f32.mrb[45].mxu1 }
0x2532   : > { %v2403_v54 = vpop.f32.mrb[46].mxu1 }
0x2533   : > { %v3566_v18 = vpop.f32.mrb[47].mxu1 }
0x2560   : > { %v2467_v25 = vpop.f32.mrb[48].mxu1 }
0x2561   : > { %v2468_v26 = vadd.f32 %v2467_v25, %v2400_v50  ;;  %v2469_v27 = vpop.f32.mrb[49].mxu1 }
0x2562   : > { %v2470_v61 = vpop.f32.mrb[50].mxu1 }
0x2563   : > { %v2473_v62 = vadd.f32 %v5164_v53, %v2468_v26  ;;  %v2471_v63 = vpop.f32.mrb[51].mxu1 }
0x2565   : > { %3855 = vtanh.f32 %v2473_v62  ;;  %v3377_v1 = vmul.f32 -1.442695, %v2473_v62 }
0x2567   : > { %3857 = vpow2.f32 %v3377_v1 }
0x256f   : > { %v3856_v0 = vpop.eup %3855 }
0x2570   : > { %2483 = vrot.lane.b32.xlu1 %v3856_v0, %s4305_s28 }
0x2571   : > { %v3858_v10 = vpop.eup %3857 }
0x2572   : > { %v2477_v11 = vadd.f32 1.0, %v3858_v10 }
0x2574   : > { %3859 = vrcp.f32 %v2477_v11 }
0x257e   : > { %v3860_v14 = vpop.eup %3859 }
0x257f   : > { %v2481_v20 = vmul.f32 %v3860_v14, %v5314_v30  ;;  %v2574_v30 = vrot.slane %v2560_v31, %v4707_v21 }
0x25e2   : > { %v2484_v17 = vpop.permute.xlu1 %2483 }
0x25e3   : > { %v2486_v19 = vmul.f32 %v3860_v14, %v2484_v17 }
0x25e5   : > { %2488 = vrot.lane.b32.xlu0 %v2486_v19, %s4305_s28  ;;  %v3385_v19 = vld.sshfl [vmem:[%s4645_s30 + $0x1c] sm:$0x11 pattern:$0x75316420] }
0x2657   : > { %v2489_v23 = vpop.permute.xlu0 %2488 }
0x2658   : > { %v5362_v2 = vadd.f32 %v2489_v23, %v2481_v20  ;;  %v2706_v20 = vcombine.high %v3385_v19, %v3385_v19 }
0x265a   : > { %3861 = vtanh.f32 %v5362_v2  ;;  %v2720_v23 = vrot.slane %v2706_v20, %v4707_v21 }
0x2664   : > { %v3862_v4 = vpop.eup %3861 }
0x2665   : > { %2494 = vrot.lane.b32.xlu1 %v3862_v4, %s4305_s28 }
0x26d7   : > { %v2495_v34 = vpop.permute.xlu1 %2494 }
0x26d8   : > { %v5366_v6 = vmul.f32 %v3860_v14, %v2495_v34 }
0x26da   : > { %v2505_v7 = vpack.c.bf16 %v5366_v6, %v5366_v6 }
0x26dc   : > { %2507 = vrot.lane.b32.xlu0 %v2505_v7, %s4306_s24 }
0x274e   : > { %v2508_v32 = vpop.permute.xlu0 %2507 }
0x274f   : > { %3572 = vmatmul.mubr.msk.bf16.vlgmr.msra.gmra.mrb[52].mxu0 %vm526_vm2, %v2508_v32 }
0x2750   : > { %2580 = vmatpush1.bf16.msra.mxu0 %v5056_v56  ;;  %3381 = vmatprep.mubr.msk.bf16.mxu0 %vm666_vm3, %v2574_v30 }
0x2751   : > { %2581 = vmatprep.subr.bf16.mxu0 %v4301_v3 }
0x2754   : > { %2582 = vmatpush1.bf16.msra.mxu0 %v5061_v57 }
0x2755   : > { %2583 = vmatprep.subr.bf16.mxu0 %v4301_v3 }
0x2758   : > { %2584 = vmatpush1.bf16.msra.mxu0 %v5065_v58 }
0x2759   : > { %2585 = vmatprep.subr.bf16.mxu0 %v4301_v3 }
0x275c   : > { %2586 = vmatpush1.bf16.msra.mxu0 %v5069_v59 }
0x275d   : > { %2587 = vmatprep.subr.bf16.mxu0 %v4301_v3 }
0x2760   : > { %2588 = vmatpush1.bf16.msra.mxu0 %v5073_v60 }
0x2761   : > { %2589 = vmatprep.subr.bf16.mxu0 %v4301_v3 }
0x2764   : > { %2590 = vmatpush1.bf16.msra.mxu0 %v5129_v8 }
0x2765   : > { %2591 = vmatprep.subr.bf16.mxu0 %v4301_v3 }
0x2768   : > { %2592 = vmatpush1.bf16.msra.mxu0 %v5133_v35 }
0x2769   : > { %2593 = vmatprep.subr.bf16.mxu0 %v4301_v3 }
0x276c   : > { %2594 = vmatpush1.bf16.msra.mxu0 %v5137_v36 }
0x276d   : > { %2595 = vmatprep.subr.bf16.mxu0 %v4301_v3 }
0x2770   : > { %2596 = vmatpush1.bf16.msra.mxu0 %v5141_v9 }
0x2771   : > { %2597 = vmatprep.subr.bf16.mxu0 %v4301_v3 }
0x2774   : > { %2598 = vmatpush1.bf16.msra.mxu0 %v5145_v39 }
0x2775   : > { %2599 = vmatprep.subr.bf16.mxu0 %v4301_v3 }
0x2778   : > { %2600 = vmatpush1.bf16.msra.mxu0 %v5149_v40 }
0x2779   : > { %2601 = vmatprep.subr.bf16.mxu0 %v4301_v3 }
0x277c   : > { %2602 = vmatpush1.bf16.msra.mxu0 %v5154_v42 }
0x277d   : > { %3583 = vmatprep.subr.bf16.mxu0 %v4302_v5 }
0x277f   : > { %2612 = vmatmul.mubr.bf16.vlgmr.msra.gmra.mrb[56].mxu0 %v2567_v41 }
0x2780   : > { %3584 = vmatpush3.bf16.msra.mxu0 %v5092_v22  ;;  %3587 = vmatprep.mubr.msk.bf16.mxu0 %vm4303_vm1, %v4302_v5 }
0x2781   : > { %3585 = vmatprep.subr.bf16.mxu0 %v4302_v5 }
0x2784   : > { %3586 = vmatpush3.bf16.msra.mxu0 %v5098_v24 }
0x2785   : > { %2871 = vmatprep.subr.bf16.mxu0 %v4301_v3 }
0x2822   : > { %v2546_v43 = vpop.f32.mrb[52].mxu0 }
0x2823   : > { %v3573_v44 = vpop.f32.mrb[53].mxu0 }
0x2824   : > { %v2549_v45 = vpop.f32.mrb[54].mxu0 }
0x2825   : > { %v3574_v46 = vpop.f32.mrb[55].mxu0 }
0x2852   : > { %v2613_v47 = vpop.f32.mrb[56].mxu0 }
0x2853   : > { %v2614_v50 = vadd.f32 %v2613_v47, %v2546_v43  ;;  %v2615_v51 = vpop.f32.mrb[57].mxu0 }
0x2854   : > { %v2616_v54 = vpop.f32.mrb[58].mxu0 }
0x2855   : > { %v2619_v18 = vadd.f32 %v5164_v53, %v2614_v50  ;;  %v2617_v22 = vpop.f32.mrb[59].mxu0 }
0x2857   : > { %3863 = vtanh.f32 %v2619_v18  ;;  %v3382_v5 = vmul.f32 -1.442695, %v2619_v18 }
0x2859   : > { %3865 = vpow2.f32 %v3382_v5 }
0x2861   : > { %v3864_v25 = vpop.eup %3863 }
0x2862   : > { %2629 = vrot.lane.b32.xlu1 %v3864_v25, %s4305_s28 }
0x2863   : > { %v3866_v24 = vpop.eup %3865 }
0x2864   : > { %v2623_v26 = vadd.f32 1.0, %v3866_v24  ;;  %v3390_v24 = vld.sshfl [vmem:[%s4645_s30 + $0x1e] sm:$0x11 pattern:$0x75316420] }
0x2866   : > { %3867 = vrcp.f32 %v2623_v26  ;;  %v2852_v26 = vcombine.high %v3390_v24, %v3390_v24 }
0x2870   : > { %v3868_v27 = vpop.eup %3867 }
0x2871   : > { %v2627_v63 = vmul.f32 %v3868_v27, %v5362_v2 }
0x28d4   : > { %v2630_v61 = vpop.permute.xlu1 %2629 }
0x28d5   : > { %v2632_v62 = vmul.f32 %v3868_v27, %v2630_v61 }
0x28d7   : > { %2634 = vrot.lane.b32.xlu0 %v2632_v62, %s4305_s28  ;;  %v3918_v62 = vld [vmem:[#allocation11] sm:$0xff]  }
0x2949   : > { %v2635_v0 = vpop.permute.xlu0 %2634 }
0x294a   : > { %v2637_v1 = vadd.f32 %v2635_v0, %v2627_v63  ;;  %v3919_v63 = vld [vmem:[#allocation11 + $0x8] sm:$0xff]   ;;  %v3920_v0 = vld [vmem:[#allocation11 + $0x10] sm:$0xff]  }
0x294c   : > { %3869 = vtanh.f32 %v2637_v1 }
0x2956   : > { %v3870_v10 = vpop.eup %3869 }
0x2957   : > { %2640 = vrot.lane.b32.xlu1 %v3870_v10, %s4305_s28  ;;  %v3922_v10 = vld [vmem:[#allocation11 + $0x20] sm:$0xff]  }
0x29c9   : > { %v2641_v11 = vpop.permute.xlu1 %2640 }
0x29ca   : > { %v5411_v14 = vmul.f32 %v3868_v27, %v2641_v11  ;;  %v2866_v27 = vrot.slane %v2852_v26, %v4707_v21 }
0x29cc   : > { %v2651_v17 = vpack.c.bf16 %v5411_v14, %v5411_v14 }
0x29ce   : > { %2653 = vrot.lane.b32.xlu0 %v2651_v17, %s4306_s24 }
0x2a40   : > { %v2654_v4 = vpop.permute.xlu0 %2653 }
0x2a41   : > { %3580 = vmatmul.mubr.msk.bf16.vlgmr.msra.gmra.mrb[52].mxu1 %vm526_vm2, %v2654_v4 }
0x2a42   : > { %2726 = vmatpush1.bf16.msra.mxu1 %v5056_v56  ;;  %3386 = vmatprep.mubr.msk.bf16.mxu1 %vm666_vm3, %v2720_v23  ;;  %v2713_v56 = vrot.slane %v3385_v19, %v4707_v21 }
0x2a43   : > { %2727 = vmatprep.subr.bf16.mxu1 %v4301_v3 }
0x2a46   : > { %2728 = vmatpush1.bf16.msra.mxu1 %v5061_v57 }
0x2a47   : > { %2729 = vmatprep.subr.bf16.mxu1 %v4301_v3 }
0x2a4a   : > { %2730 = vmatpush1.bf16.msra.mxu1 %v5065_v58 }
0x2a4b   : > { %2731 = vmatprep.subr.bf16.mxu1 %v4301_v3 }
0x2a4e   : > { %2732 = vmatpush1.bf16.msra.mxu1 %v5069_v59 }
0x2a4f   : > { %2733 = vmatprep.subr.bf16.mxu1 %v4301_v3 }
0x2a52   : > { %2734 = vmatpush1.bf16.msra.mxu1 %v5073_v60 }
0x2a53   : > { %2735 = vmatprep.subr.bf16.mxu1 %v4301_v3 }
0x2a56   : > { %2736 = vmatpush1.bf16.msra.mxu1 %v5129_v8 }
0x2a57   : > { %2737 = vmatprep.subr.bf16.mxu1 %v4301_v3 }
0x2a5a   : > { %2738 = vmatpush1.bf16.msra.mxu1 %v5133_v35 }
0x2a5b   : > { %2739 = vmatprep.subr.bf16.mxu1 %v4301_v3 }
0x2a5e   : > { %2740 = vmatpush1.bf16.msra.mxu1 %v5137_v36 }
0x2a5f   : > { %2741 = vmatprep.subr.bf16.mxu1 %v4301_v3 }
0x2a62   : > { %2742 = vmatpush1.bf16.msra.mxu1 %v5141_v9 }
0x2a63   : > { %2743 = vmatprep.subr.bf16.mxu1 %v4301_v3 }
0x2a66   : > { %2744 = vmatpush1.bf16.msra.mxu1 %v5145_v39 }
0x2a67   : > { %2745 = vmatprep.subr.bf16.mxu1 %v4301_v3 }
0x2a6a   : > { %2746 = vmatpush1.bf16.msra.mxu1 %v5149_v40 }
0x2a6b   : > { %2747 = vmatprep.subr.bf16.mxu1 %v4301_v3 }
0x2a6e   : > { %2748 = vmatpush1.bf16.msra.mxu1 %v5154_v42 }
0x2a71   : > { %2758 = vmatmul.mubr.bf16.vlgmr.msra.gmra.mrb[56].mxu1 %v2713_v56 }
0x2b14   : > { %v2692_v57 = vpop.f32.mrb[52].mxu1 }
0x2b15   : > { %v3581_v58 = vpop.f32.mrb[53].mxu1 }
0x2b16   : > { %v2695_v59 = vpop.f32.mrb[54].mxu1 }
0x2b17   : > { %v3582_v60 = vpop.f32.mrb[55].mxu1 }
0x2b44   : > { %v2759_v2 = vpop.f32.mrb[56].mxu1 }
0x2b45   : > { %v2760_v34 = vadd.f32 %v2759_v2, %v2692_v57  ;;  %v2761_v7 = vpop.f32.mrb[57].mxu1 }
0x2b46   : > { %v2762_v29 = vpop.f32.mrb[58].mxu1 }
0x2b47   : > { %v2765_v31 = vadd.f32 %v5164_v53, %v2760_v34  ;;  %v2763_v30 = vpop.f32.mrb[59].mxu1 }
0x2b49   : > { %3871 = vtanh.f32 %v2765_v31  ;;  %v3387_v41 = vmul.f32 -1.442695, %v2765_v31 }
0x2b4b   : > { %3873 = vpow2.f32 %v3387_v41 }
0x2b53   : > { %v3872_v32 = vpop.eup %3871 }
0x2b54   : > { %2775 = vrot.lane.b32.xlu1 %v3872_v32, %s4305_s28 }
0x2b55   : > { %v3874_v43 = vpop.eup %3873 }
0x2b56   : > { %v2769_v44 = vadd.f32 1.0, %v3874_v43 }
0x2b58   : > { %3875 = vrcp.f32 %v2769_v44 }
0x2b62   : > { %v3876_v45 = vpop.eup %3875 }
0x2b63   : > { %v2773_v50 = vmul.f32 %v3876_v45, %v2637_v1  ;;  %v3921_v1 = vld [vmem:[#allocation11 + $0x18] sm:$0xff]  }
0x2bc6   : > { %v2776_v46 = vpop.permute.xlu1 %2775 }
0x2bc7   : > { %v2778_v47 = vmul.f32 %v3876_v45, %v2776_v46 }
0x2bc9   : > { %2780 = vrot.lane.b32.xlu0 %v2778_v47, %s4305_s28 }
0x2c3b   : > { %v2781_v51 = vpop.permute.xlu0 %2780 }
0x2c3c   : > { %v5447_v54 = vadd.f32 %v2781_v51, %v2773_v50  ;;  %v3393_v50 = vld [vmem:[#allocation17] ss:$0 sm:$0xff] }
0x2c3e   : > { %3877 = vtanh.f32 %v5447_v54 }
0x2c48   : > { %v3878_v18 = vpop.eup %3877 }
0x2c49   : > { %2786 = vrot.lane.b32.xlu1 %v3878_v18, %s4305_s28 }
0x2cbb   : > { %v2787_v22 = vpop.permute.xlu1 %2786 }
0x2cbc   : > { %v5451_v25 = vmul.f32 %v3876_v45, %v2787_v22 }
0x2cbe   : > { %v2797_v5 = vpack.c.bf16 %v5451_v25, %v5451_v25 }
0x2cc0   : > { %2799 = vrot.lane.b32.xlu0 %v2797_v5, %s4306_s24 }
0x2d32   : > { %v2800_v61 = vpop.permute.xlu0 %2799 }
0x2d33   : > { %3588 = vmatmul.mubr.msk.bf16.vlgmr.msra.gmra.mrb[60].mxu0 %vm526_vm2, %v2800_v61 }
0x2d34   : > { %2872 = vmatpush1.bf16.msra.mxu0 %v3918_v62  ;;  %3391 = vmatprep.mubr.msk.bf16.mxu0 %vm666_vm3, %v2866_v27 }
0x2d35   : > { %2873 = vmatprep.subr.bf16.mxu0 %v4301_v3 }
0x2d38   : > { %2874 = vmatpush1.bf16.msra.mxu0 %v3919_v63 }
0x2d39   : > { %2875 = vmatprep.subr.bf16.mxu0 %v4301_v3 }
0x2d3c   : > { %2876 = vmatpush1.bf16.msra.mxu0 %v3920_v0 }
0x2d3d   : > { %2877 = vmatprep.subr.bf16.mxu0 %v4301_v3 }
0x2d40   : > { %2878 = vmatpush1.bf16.msra.mxu0 %v3921_v1 }
0x2d41   : > { %2879 = vmatprep.subr.bf16.mxu0 %v4301_v3 }
0x2d44   : > { %2880 = vmatpush1.bf16.msra.mxu0 %v3922_v10 }
0x2d45   : > { %2881 = vmatprep.subr.bf16.mxu0 %v4301_v3 }
0x2d48   : > { %2882 = vmatpush1.bf16.msra.mxu0 %v5129_v8  ;;  %v2859_v8 = vrot.slane %v3390_v24, %v4707_v21 }
0x2d49   : > { %2883 = vmatprep.subr.bf16.mxu0 %v4301_v3 }
0x2d4c   : > { %2884 = vmatpush1.bf16.msra.mxu0 %v5133_v35 }
0x2d4d   : > { %2885 = vmatprep.subr.bf16.mxu0 %v4301_v3 }
0x2d50   : > { %2886 = vmatpush1.bf16.msra.mxu0 %v5137_v36 }
0x2d51   : > { %2887 = vmatprep.subr.bf16.mxu0 %v4301_v3 }
0x2d54   : > { %2888 = vmatpush1.bf16.msra.mxu0 %v5141_v9 }
0x2d55   : > { %2889 = vmatprep.subr.bf16.mxu0 %v4301_v3 }
0x2d58   : > { %2890 = vmatpush1.bf16.msra.mxu0 %v5145_v39 }
0x2d59   : > { %2891 = vmatprep.subr.bf16.mxu0 %v4301_v3 }
0x2d5c   : > { %2892 = vmatpush1.bf16.msra.mxu0 %v5149_v40 }
0x2d5d   : > { %2893 = vmatprep.subr.bf16.mxu0 %v4301_v3 }
0x2d60   : > { %2894 = vmatpush1.bf16.msra.mxu0 %v5154_v42 }
0x2d63   : > { %2904 = vmatmul.mubr.bf16.vlgmr.msra.gmra.mrb[64].mxu0 %v2859_v8 }
0x2e06   : > { %v2838_v35 = vpop.f32.mrb[60].mxu0 }
0x2e07   : > { %v3589_v36 = vpop.f32.mrb[61].mxu0 }
0x2e08   : > { %v2841_v11 = vpop.f32.mrb[62].mxu0 }
0x2e09   : > { %v3590_v17 = vpop.f32.mrb[63].mxu0 }
0x2e36   : > { %v2905_v9 = vpop.f32.mrb[64].mxu0 }
0x2e37   : > { %v2906_v19 = vadd.f32 %v2905_v9, %v2838_v35  ;;  %v2907_v20 = vpop.f32.mrb[65].mxu0 }
0x2e38   : > { %v2908_v23 = vpop.f32.mrb[66].mxu0 }
0x2e39   : > { %v2911_v39 = vadd.f32 %v5164_v53, %v2906_v19  ;;  %v2909_v4 = vpop.f32.mrb[67].mxu0 }
0x2e3b   : > { %3879 = vtanh.f32 %v2911_v39  ;;  %v3392_v3 = vmul.f32 -1.442695, %v2911_v39 }
0x2e3d   : > { %3881 = vpow2.f32 %v3392_v3 }
0x2e45   : > { %v3880_v40 = vpop.eup %3879 }
0x2e46   : > { %2921 = vrot.lane.b32.xlu1 %v3880_v40, %s4305_s28 }
0x2e47   : > { %v3882_v21 = vpop.eup %3881 }
0x2e48   : > { %v2915_v42 = vadd.f32 1.0, %v3882_v21 }
0x2e4a   : > { %3883 = vrcp.f32 %v2915_v42 }
0x2e54   : > { %v3884_v56 = vpop.eup %3883 }
0x2eb8   : > { %v2922_v57 = vpop.permute.xlu1 %2921 }
0x2eb9   : > { %v2924_v58 = vmul.f32 %v3884_v56, %v2922_v57 }
0x2ebb   : > { %2926 = vrot.lane.b32.xlu0 %v2924_v58, %s4305_s28 }
0x2ebf   : > { %746 = vrot.lane.b32.xlu0 %v4760_v55, %s4306_s24  ;;  %v2919_v55 = vmul.f32 %v3884_v56, %v5447_v54 }
0x2ec3   : > { %1039 = vrot.lane.b32.xlu0 %v4856_v13, %s4306_s24 }
0x2ec7   : > { %1331 = vrot.lane.b32.xlu0 %v4952_v37, %s4306_s24 }
0x2ecb   : > { %1623 = vrot.lane.b32.xlu0 %v5048_v48, %s4306_s24 }
0x2ecf   : > { %1915 = vrot.lane.b32.xlu0 %v5174_v16, %s4306_s24 }
0x2ed3   : > { %2207 = vrot.lane.b32.xlu0 %v5270_v49, %s4306_s24 }
0x2ed7   : > { %2499 = vrot.lane.b32.xlu0 %v5366_v6, %s4306_s24 }
0x2edb   : > { %2791 = vrot.lane.b32.xlu0 %v5451_v25, %s4306_s24 }
0x2f2d   : > { %v2927_v13 = vpop.permute.xlu0 %2926 }
0x2f2e   : > { %v5499_v53 = vadd.f32 %v2927_v13, %v2919_v55 }
0x2f30   : > { %3885 = vtanh.f32 %v5499_v53 }
0x2f31   : > { %v747_v37 = vpop.permute.xlu0 %746 }
0x2f32   : > { %750 = vst.msk [vmem:[#allocation4] sm:$0x3] %vm749_vm4, %v747_v37 }
0x2f35   : > { %v1040_v48 = vpop.permute.xlu0 %1039 }
0x2f36   : > { %1042 = vst.msk [vmem:[#allocation4 + $0x4] sm:$0x3] %vm749_vm4, %v1040_v48 }
0x2f39   : > { %v1332_v16 = vpop.permute.xlu0 %1331 }
0x2f3a   : > { %v3886_v49 = vpop.eup %3885  ;;  %1334 = vst.msk [vmem:[#allocation4 + $0x8] sm:$0x3] %vm749_vm4, %v1332_v16 }
0x2f3b   : > { %2932 = vrot.lane.b32.xlu1 %v3886_v49, %s4305_s28 }
0x2f3d   : > { %v1624_v6 = vpop.permute.xlu0 %1623 }
0x2f3e   : > { %1626 = vst.msk [vmem:[#allocation4 + $0xc] sm:$0x3] %vm749_vm4, %v1624_v6 }
0x2f3f   : > { %893 = vrot.lane.b32.xlu1 %v4808_v38, %s4306_s24  ;;  %v3757_v38 = vld [vmem:[#allocation16] sm:$0xff]  }
0x2f40   : > { %3591 = vmatprep.subr.bf16.mxu1 %v3757_v38 }
0x2f41   : > { %v1916_v59 = vpop.permute.xlu0 %1915  ;;  %3592 = vmatpush3.bf16.msra.mxu1 %v3757_v38 }
0x2f42   : > { %1918 = vst.msk [vmem:[#allocation4 + $0x10] sm:$0x3] %vm749_vm4, %v1916_v59 }
0x2f43   : > { %1185 = vrot.lane.b32.xlu1 %v4904_v52, %s4306_s24  ;;  %v3758_v52 = vld [vmem:[#allocation16 + $0x8] sm:$0xff]  }
0x2f44   : > { %3593 = vmatprep.subr.bf16.mxu1 %v3758_v52 }
0x2f45   : > { %v2208_v60 = vpop.permute.xlu0 %2207  ;;  %3594 = vmatpush3.bf16.msra.mxu1 %v3758_v52 }
0x2f46   : > { %2210 = vst.msk [vmem:[#allocation4 + $0x14] sm:$0x3] %vm749_vm4, %v2208_v60 }
0x2f47   : > { %1477 = vrot.lane.b32.xlu1 %v5000_v15, %s4306_s24 }
0x2f49   : > { %v2500_v2 = vpop.permute.xlu0 %2499 }
0x2f4a   : > { %2502 = vst.msk [vmem:[#allocation4 + $0x18] sm:$0x3] %vm749_vm4, %v2500_v2 }
0x2f4b   : > { %1769 = vrot.lane.b32.xlu1 %v5110_v12, %s4306_s24 }
0x2f4d   : > { %v2792_v34 = vpop.permute.xlu0 %2791 }
0x2f4e   : > { %2794 = vst.msk [vmem:[#allocation4 + $0x1c] sm:$0x3] %vm749_vm4, %v2792_v34 }
0x2f4f   : > { %2061 = vrot.lane.b32.xlu1 %v5222_v28, %s4306_s24 }
0x2f53   : > { %2353 = vrot.lane.b32.xlu1 %v5318_v33, %s4306_s24 }
0x2f57   : > { %2645 = vrot.lane.b32.xlu1 %v5411_v14, %s4306_s24 }
0x2fad   : > { %v2933_v15 = vpop.permute.xlu1 %2932 }
0x2fae   : > { %v2935_v12 = vmul.f32 %v3884_v56, %v2933_v15 }
0x2fb0   : > { %2937 = vrot.lane.b32.xlu1 %v2935_v12, %s4306_s24 }
0x2fb1   : > { %v894_v7 = vpop.permute.xlu1 %893 }
0x2fb2   : > { %896 = vst.msk [vmem:[#allocation4 + $0x2] sm:$0x3] %vm749_vm4, %v894_v7 }
0x2fb5   : > { %v1186_v28 = vpop.permute.xlu1 %1185 }
0x2fb6   : > { %1188 = vst.msk [vmem:[#allocation4 + $0x6] sm:$0x3] %vm749_vm4, %v1186_v28 }
0x2fb9   : > { %v1478_v33 = vpop.permute.xlu1 %1477 }
0x2fba   : > { %1480 = vst.msk [vmem:[#allocation4 + $0xa] sm:$0x3] %vm749_vm4, %v1478_v33 }
0x2fbd   : > { %v1770_v14 = vpop.permute.xlu1 %1769  ;;  %v2947_v30 = vld [vmem:[#allocation4] sm:$0xff] }
0x2fbe   : > { %1772 = vst.msk [vmem:[#allocation4 + $0xe] sm:$0x3] %vm749_vm4, %v1770_v14 }
0x2fc1   : > { %v2062_v29 = vpop.permute.xlu1 %2061 }
0x2fc2   : > { %2064 = vst.msk [vmem:[#allocation4 + $0x12] sm:$0x3] %vm749_vm4, %v2062_v29 }
0x2fc5   : > { %v2354_v31 = vpop.permute.xlu1 %2353  ;;  %v2948_v32 = vld [vmem:[#allocation4 + $0x8] sm:$0xff] }
0x2fc6   : > { %2356 = vst.msk [vmem:[#allocation4 + $0x16] sm:$0x3] %vm749_vm4, %v2354_v31  ;;  %v2951_v41 = vpack.c.bf16 %v2948_v32, %v2947_v30 }
0x2fc8   : > { %3595 = vmatprep.mubr.msk.bf16.mxu1 %vm526_vm2, %v2951_v41 }
0x2fc9   : > { %v2646_v43 = vpop.permute.xlu1 %2645 }
0x2fca   : > { %2648 = vst.msk [vmem:[#allocation4 + $0x1a] sm:$0x3] %vm749_vm4, %v2646_v43 }
0x2fcd   : > { %v2949_v45 = vld [vmem:[#allocation4 + $0x10] sm:$0xff] }
0x3022   : > { %v5534_v44 = vpop.permute.xlu1 %2937 }
0x3023   : > { %2940 = vst.msk [vmem:[#allocation4 + $0x1e] sm:$0x3] %vm749_vm4, %v5534_v44  ;;  %2941 = vst.msk [vmem:[#allocation2] sm:$0x3] %vm749_vm4, %v5534_v44 }
0x3024   : > { %3075 = vst.msk [vmem:[#allocation20] sm:$0x3] (!%p3398_p8), %vm749_vm4, %v5534_v44 }
0x302a   : > { %v2950_v46 = vld [vmem:[#allocation4 + $0x18] sm:$0xff] }
0x302b   : > { %v2952_v47 = vpack.c.bf16 %v2950_v46, %v2949_v45 }
0x302d   : > { %3596 = vmatmul.mubr.msk.bf16.vlgmr.msra.gmra.mrb[60].mxu1 %vm526_vm2, %v2952_v47 }
0x3100   : > { %v3597_v51 = vpop.f32.mrb[60].mxu1 }
0x3101   : > { %v3016_v54 = vpop.f32.mrb[61].mxu1  ;;  %v3025_v24 = vadd.f32 %v3597_v51, %v3393_v50 }
0x3102   : > { %v3017_v18 = vadd.f32 %v3393_v50, %v3016_v54  ;;  %v3598_v22 = vpop.f32.mrb[62].mxu1 }
0x3103   : > { %v3019_v25 = vpop.f32.mrb[63].mxu1  ;;  %v3028_v26 = vadd.f32 %v3598_v22, %v3393_v50 }
0x3104   : > { %v3020_v5 = vadd.f32 %v3393_v50, %v3019_v25  ;;  %3031 = vmax.xlane.f32.xlu0 %v3017_v18 }
0x3106   : > { %3033 = vmax.xlane.f32.xlu1 %v3020_v5 }
0x3108   : > { %3035 = vmax.xlane.f32.xlu0 %v3025_v24 }
0x310c   : > { %3037 = vmax.xlane.f32.xlu0 %v3028_v26 }
0x3191   : > { %v3032_v27 = vpop.xlane.xlu0 %3031 }
0x3192   : > { %v3039_v63 = vsub.f32 %v3017_v18, %v3032_v27 }
0x3193   : > { %v3034_v61 = vpop.xlane.xlu1 %3033 }
0x3194   : > { %v3040_v62 = vsub.f32 %v3020_v5, %v3034_v61  ;;  %v3043_v35 = vmul.f32 1.442695, %v3039_v63 }
0x3195   : > { %v3036_v0 = vpop.xlane.xlu0 %3035 }
0x3196   : > { %v3045_v1 = vmul.f32 1.442695, %v3040_v62  ;;  %v3041_v10 = vsub.f32 %v3025_v24, %v3036_v0 }
0x3198   : > { %3887 = vpow2.f32 %v3045_v1  ;;  %v3047_v8 = vmul.f32 1.442695, %v3041_v10 }
0x3199   : > { %v3038_v36 = vpop.xlane.xlu0 %3037 }
0x319a   : > { %3889 = vpow2.f32 %v3047_v8  ;;  %v3042_v11 = vsub.f32 %v3028_v26, %v3038_v36 }
0x319b   : > { %3891 = vpow2.f32 %v3043_v35 }
0x319c   : > { %v3049_v17 = vmul.f32 1.442695, %v3042_v11 }
0x319e   : > { %3893 = vpow2.f32 %v3049_v17 }
0x31a2   : > { %v3888_v9 = vpop.eup %3887 }
0x31a3   : > { %3053 = vadd.xlane.f32.xlu0 %v3888_v9 }
0x31a4   : > { %v3890_v19 = vpop.eup %3889 }
0x31a5   : > { %3055 = vadd.xlane.f32.xlu1 %v3890_v19  ;;  %v3892_v20 = vpop.eup %3891 }
0x31a8   : > { %v3894_v23 = vpop.eup %3893 }
0x31a9   : > { %3051 = vadd.xlane.f32.xlu1 %v3892_v20  ;;  %3057 = vadd.xlane.f32.xlu0 %v3894_v23 }
0x31ba   : > { %2943 = vrot.lane.b32.xlu1 %v5499_v53, %s4307_s25 }
0x3230   : > { %v3054_v39 = vpop.xlane.xlu0 %3053 }
0x3231   : > { %3895 = vrcp.f32 %v3054_v39 }
0x3232   : > { %v3056_v4 = vpop.xlane.xlu1 %3055 }
0x3233   : > { %3897 = vrcp.f32 %v3056_v4 }
0x3236   : > { %v3052_v40 = vpop.xlane.xlu1 %3051  ;;  %v3058_v3 = vpop.xlane.xlu0 %3057 }
0x3237   : > { %3899 = vrcp.f32 %v3052_v40 }
0x3238   : > { %3901 = vrcp.f32 %v3058_v3 }
0x323a   : > { %v2944_v21 = vpop.permute.xlu1 %2943 }
0x323b   : > { %v3896_v42 = vpop.eup %3895  ;;  %2946 = vst.msk [vmem:[#allocation3] sm:$0x3] %vm749_vm4, %v2944_v21  ;;  %3076 = vst.msk [vmem:[#allocation22] sm:$0x3] (!%p3398_p8), %vm749_vm4, %v2944_v21 }
0x323c   : > { %v3062_v56 = vmul.f32 %v3896_v42, %v3888_v9 }
0x323d   : > { %v3898_v57 = vpop.eup %3897 }
0x323e   : > { %3068 = vst [vmem:[%s4667_s20 + $0x8] sm:$0xff] %v3062_v56  ;;  %v3064_v58 = vmul.f32 %v3898_v57, %v3890_v19 }
0x323f   : > { %3074 = sbr.rel (%p3398_p8) target bundleno = 12870 (0x3246), region = 92 }
0x3240   : > { %3069 = vst [vmem:[%s4667_s20 + $0x10] sm:$0xff] %v3064_v58 }
0x3241   : > { %v3900_v55 = vpop.eup %3899 }
0x3242   : > { %v3902_v13 = vpop.eup %3901  ;;  %v3060_v53 = vmul.f32 %v3900_v55, %v3892_v20 }
0x3243   : > { %v3066_v37 = vmul.f32 %v3902_v13, %v3894_v23 }
0x3244   : > { %3067 = vst [vmem:[%s4667_s20] sm:$0xff] %v3060_v53 }
0x3245   : > { %3070 = vst [vmem:[%s4667_s20 + $0x18] sm:$0xff] %v3066_v37 }
0x3246 PF: > { %s4308_s29 = smov [#allocation20]   ;;  %s3410_s2 = sshll.u32 %s4389_s19, 9 }
0x3247   : > { %s3105_s23 = sshll.u32 %s4308_s29, 4  ;;  %s5555_s22 = scalar_lea.hbm %s5650_s8, %s3410_s2  ;;  %s3106_s23 = int_to_ptr.vmem [resolvable:$true] %s3105_s23 }
0x3248   : > { %s4149_s1 = scalar_lea.vmem %s3106_s23, 32  ;;  %p5687_p4 = scmp.eq.s32.totalorder %s4389_s19, 1 }
0x3249   : > { %p4150_p3 = scmp.ne.s32.totalorder %s3106_s23, %s4149_s1  ;;  %p4156_p7 = scmp.lt.s32.totalorder %s3106_s23, %s3106_s23 }
0x324a   : > { %p4157_p0 = scmp.lt.s32.totalorder %s4149_s1, %s4149_s1 }
0x324b   : > { %p4151_p5 = pnand %p4150_p3, %p5687_p4 }
0x324c   : > { %p4158_p2 = por %p4157_p0, %p4156_p7 }
0x324d   : > { %p4152_p1 = pneg %p4151_p5 }
0x324f   : > { %p4159_p9 = pnand %p4158_p2, %p4152_p1 }
0x3251   : > { %4162 = shalt.err (!%p4159_p9)
}
0x3252   : > { %s4163_s28 = scalar_lea.hbm %s5651_s9, 32  ;;  %p5688_p12 = pmov %p5687_p4 }
0x3253   : > { %p4164_p10 = scmp.ne.s32.totalorder %s5651_s9, %s4163_s28  ;;  %p4169_p6 = scmp.lt.u32.totalorder %s4163_s28, %s5651_s9 }
0x3255   : > { %p4165_p11 = pnand %p4164_p10, %p5688_p12 }
0x3257   : > { %p4166_p13 = pneg %p4165_p11 }
0x3259   : > { %p4171_p8 = pnand %p4169_p6, %p4166_p13 }
0x325b   : > { %4174 = shalt.err (!%p4171_p8)
}
0x325c   : > { %p5689_p3 = pmov %p5687_p4  ;;  %s3091_s1 = sshll.u32 %s4667_s20, 4  ;;  %s5576_s1 = int_to_ptr.vmem [resolvable:$true] %s3091_s1 }
0x325d   : > { %s3078_s26 = scalar_lea.sflag [#allocation7], %s4641_s27  ;;  %s4175_s30 = scalar_lea.vmem %s5576_s1, 512 }
0x325e   : > { %3631 = dma.vmem_to_hbm [thread:$0]  (%p5689_p3), %s3106_s23, 32, %s5651_s9, [#allocation21]  }
0x325f   : > { %p4176_p4 = scmp.ne.s32.totalorder %s5576_s1, %s4175_s30  ;;  %p5690_p5 = scmp.ne.s32.totalorder %s5674_s21, 0 }
0x3260   : > { %s4309_s28 = smov [#allocation19]  }
0x3261   : > { %p4177_p1 = pnand %p4176_p4, %p5690_p5  ;;  %s4179_s24 = sshll.u32 %s4309_s28, 4  ;;  %s4180_s24 = int_to_ptr.vmem [resolvable:$false] %s4179_s24 }
0x3262   : > { %s4181_s25 = scalar_lea.vmem %s4180_s24, 1024  ;;  %p4182_p0 = scmp.lt.s32.totalorder %s5576_s1, %s4180_s24 }
0x3263   : > { %p4178_p7 = pneg %p4177_p1  ;;  %p4183_p2 = scmp.lt.s32.totalorder %s4181_s25, %s4175_s30 }
0x3265   : > { %p4184_p9 = por %p4183_p2, %p4182_p0 }
0x3267   : > { %p4185_p10 = pnand %p4184_p9, %p4178_p7 }
0x3269   : > { %4188 = shalt.err (!%p4185_p10)
}
0x326a   : > { %s4189_s20 = scalar_lea.hbm %s5555_s22, 512  ;;  %s4193_s2 = scalar_lea.hbm %s5650_s8, 1024 }
0x326b   : > { %p4190_p12 = scmp.ne.s32.totalorder %s5555_s22, %s4189_s20  ;;  %p4194_p6 = scmp.lt.u32.totalorder %s5555_s22, %s5650_s8 }
0x326c   : > { %p4195_p8 = scmp.lt.u32.totalorder %s4193_s2, %s4189_s20  ;;  %p4197_p4 = scmp.lt.u32.totalorder %s4189_s20, %s5555_s22 }
0x326d   : > { %p4191_p11 = pnand %p4190_p12, %p5690_p5 }
0x326e   : > { %p4196_p3 = por %p4195_p8, %p4194_p6 }
0x326f   : > { %p4192_p13 = pneg %p4191_p11 }
0x3270   : > { %p4198_p1 = por %p4197_p4, %p4196_p3 }
0x3272   : > { %p4199_p7 = pnand %p4198_p1, %p4192_p13 }
0x3274   : > { %4202 = shalt.err (!%p4199_p7)
}
0x3275   : > { %s4310_s30 = smov 128   ;;  %s4311_s28 = smov 8  }
0x3276   : > { %3629 = dma.vmem_to_hbm [thread:$0]  (%p5690_p5), %s5576_s1, 512, %s5555_s22, %s3078_s26, %s4310_s30, %s4310_s30, %s4311_s28  }
0x3277   : > { %s4312_s24 = smov [#allocation22]   ;;  %p5691_p2 = scmp.eq.s32.totalorder %s4389_s19, 1 }
0x3278   : > { %s3116_s25 = sshll.u32 %s4312_s24, 4  ;;  %s3117_s25 = int_to_ptr.vmem [resolvable:$true] %s3116_s25 }
0x3279   : > { %s4203_s23 = scalar_lea.vmem %s3117_s25, 32  ;;  %p4210_p12 = scmp.lt.s32.totalorder %s3117_s25, %s3117_s25 }
0x327a   : > { %p4204_p0 = scmp.ne.s32.totalorder %s3117_s25, %s4203_s23  ;;  %p4211_p11 = scmp.lt.s32.totalorder %s4203_s23, %s4203_s23 }
0x327c   : > { %p4205_p9 = pnand %p4204_p0, %p5691_p2  ;;  %p4212_p13 = por %p4211_p11, %p4210_p12 }
0x327e   : > { %p4206_p10 = pneg %p4205_p9 }
0x3280   : > { %p4213_p6 = pnand %p4212_p13, %p4206_p10 }
0x3282   : > { %4216 = shalt.err (!%p4213_p6)
}
0x3283   : > { %s4217_s21 = scalar_lea.hbm %s5652_s10, 32  ;;  %p5692_p8 = pmov %p5691_p2 }
0x3284   : > { %p4218_p5 = scmp.ne.s32.totalorder %s5652_s10, %s4217_s21  ;;  %p4223_p1 = scmp.lt.u32.totalorder %s4217_s21, %s5652_s10 }
0x3286   : > { %p4219_p3 = pnand %p4218_p5, %p5692_p8 }
0x3288   : > { %p4220_p4 = pneg %p4219_p3 }
0x328a   : > { %p4225_p7 = pnand %p4223_p1, %p4220_p4 }
0x328c   : > { %4228 = shalt.err (!%p4225_p7)
}
0x328d   : > { %p5693_p0 = pmov %p5691_p2 }
0x328f   : > { %3633 = dma.vmem_to_hbm [thread:$0]  (%p5693_p0), %s3117_s25, 32, %s5652_s10, [#allocation21]  }
0x3290   : > { %p5694_p2 = pmov %p5693_p0 }
0x3291   : > { %p5695_p9 = pmov %p5693_p0 }
0x3292   : > { %4266 = dma.done.wait (%p5694_p2), [#allocation21], 64  }
0x3293   : > { %4268 = vsyncadd (%p5695_p9), [#allocation21], 4294967232 }
0x3294 PF: > { %s3136_s17 = sand.u32 1, %s4275_s13   ;;  %p5696_p10 = scmp.ne.s32.totalorder %s5675_s12, 0 }
0x3295   : > { %p5697_p12 = scmp.ge.s32.totalorder %s4287_s16, 2  ;;  %s3137_s30 = scalar_lea.sflag [#allocation7], %s3136_s17 }
0x3297   : > { %p3666_p11 = pnand %p5697_p12, %p5696_p10 }
0x3299   : > { %4270 = dma.done.wait (!%p3666_p11), %s3137_s30, 512  }
0x329a   : > { %4272 = vsyncadd (!%p3666_p11), %s3137_s30, 4294966784  ;;  %p29_p13 = scmp.ge.s32.totalorder %s4566_s11, 4   ;;  %s5698_s13 = smov %s4279_s14 }
0x329b   : > { %s5699_s14 = smov %s4283_s15  ;;  %s5700_s15 = smov %s4578_s3 }
0x329c   : > { %s5701_s16 = smov %s4566_s11  ;;  %31 = sbr.rel (!%p29_p13) target bundleno = 14 (0xe), region = 164 }
0x32a3   :  { %3142 = vsyncpa [#allocation6], 1 }
0x32a4   :  { %3144 = vsyncpa [#allocation6 + $0x1], 1 }
0x32a5   :  { %3145 = vsyncpa [#allocation9], 1 }
0x32a6   :  { %3146 = vsyncpa [#allocation12], 1 }
0x32a7   :  { %3147 = vsyncpa [#allocation15], 1 }
0x32a8   :  { %3148 = vsyncpa [#allocation18], 1 }
0x32a9   :  { %3149 = vsyncpa [#allocation7], 1 }
0x32aa   :  { %3151 = vsyncpa [#allocation7 + $0x1], 1 }
0x32ab   :  { %3152 = vsyncpa [#allocation21], 1 }

</bundles_post_ra>
